<compile_context>
chip_gen: v6e
topology: v6e:2x2x1
jax: 0.10.0
libtpu: 0.0.40
codegen_flags: <defaults>
</compile_context>

<pallas_src>
import math
import functools

import jax
import jax.numpy as jnp
from jax.experimental import pallas as pl
from jax.experimental.pallas import tpu as pltpu


def fused_res_block_kernel(x_ref, w1_ref, b1_ref, w2_ref, b2_ref,
                           out_ref, mem_ref, xpad_ref, *, threshold, decay):
    """One batch element: conv1+LIF1 -> conv2+LIF2 -> residual, mem average.

    x_ref:   (1, H, W, C)   input block (VMEM)
    w*_ref:  (9*C, C)       im2col-reshaped conv weights (VMEM, grid-resident)
    b*_ref:  (1, C)         biases
    out_ref: (1, H, W, C)   spike2 + identity
    mem_ref: (1, H, W, C)   (mem1 + mem2) / 2
    xpad_ref:(H+2, W+2, C)  VMEM scratch with a zero halo, reused by both convs
    """
    del decay  # no effect for a zero initial membrane (see TODO above)
    H, W, C = x_ref.shape[1], x_ref.shape[2], x_ref.shape[3]

    x = x_ref[0]                                     # (H, W, C)

    # Zero the padded scratch once; the 1-pixel border stays zero for both
    # convolutions (only the interior is overwritten below).
    xpad_ref[...] = jnp.zeros_like(xpad_ref)
    xpad_ref[1:H + 1, 1:W + 1, :] = x

    def conv3x3_lif(w_ref, b_ref):
        # im2col: lane-concatenate the 9 shifted windows -> (H*W, 9*C), then a
        # single MXU matmul with a 9x longer contraction (better MXU cadence
        # than 9 separate K=C matmuls).
        patches = jnp.concatenate(
            [xpad_ref[kh:kh + H, kw:kw + W, :].reshape(H * W, C)
             for kh in range(3) for kw in range(3)],
            axis=-1)                                               # (H*W, 9C)
        z = jnp.dot(patches, w_ref[...],
                    preferred_element_type=jnp.float32) + b_ref[...]
        # Single-step LIF, zero initial membrane (mem = z), strict '>' spike
        # condition as in the previous implementation.
        spike = (z > threshold).astype(jnp.float32)
        mem = z - spike * threshold                  # soft reset
        return spike, mem

    # conv1 + neuron1
    spike1, mem1 = conv3x3_lif(w1_ref, b1_ref)

    # conv2 + neuron2: spike1 goes into the interior of the same scratch
    # (border is still zero), so it never leaves VMEM.
    xpad_ref[1:H + 1, 1:W + 1, :] = spike1.reshape(H, W, C)
    spike2, mem2 = conv3x3_lif(w2_ref, b2_ref)

    out_ref[0] = spike2.reshape(H, W, C) + x                     # residual add
    mem_ref[0] = ((mem1 + mem2) * 0.5).reshape(H, W, C)


def spiking_res_block_nhwc(x, w1_hwio, b1, w2_hwio, b2,
                           threshold=1.0, decay=0.5):
    """x: (N, H, W, C) f32; w*: (3, 3, C, C) HWIO; b*: (C,) or (1, C)."""
    N, H, W, C = x.shape

    # Pre-reshape weights for the in-kernel im2col: row index = (kh*3+kw)*C+ci.
    w1r = w1_hwio.reshape(9 * C, C).astype(jnp.float32)
    w2r = w2_hwio.reshape(9 * C, C).astype(jnp.float32)
    b1r = b1.reshape(1, C).astype(jnp.float32)
    b2r = b2.reshape(1, C).astype(jnp.float32)

    img_spec = pl.BlockSpec((1, H, W, C), lambda n: (n, 0, 0, 0))
    w_spec = pl.BlockSpec((9 * C, C), lambda n: (0, 0))   # resident across grid
    b_spec = pl.BlockSpec((1, C), lambda n: (0, 0))

    out, mem = pl.pallas_call(
        functools.partial(fused_res_block_kernel,
                          threshold=threshold, decay=decay),
        grid=(N,),
        in_specs=[img_spec, w_spec, b_spec, w_spec, b_spec],
        out_specs=[img_spec, img_spec],
        out_shape=(jax.ShapeDtypeStruct((N, H, W, C), jnp.float32),
                   jax.ShapeDtypeStruct((N, H, W, C), jnp.float32)),
        scratch_shapes=[pltpu.VMEM((H + 2, W + 2, C), jnp.float32)],
        compiler_params=pltpu.CompilerParams(
            # batch elements are independent -> megacore / v7x 2-TC sharding
            dimension_semantics=("parallel",)),
    )(x.astype(jnp.float32), w1r, b1r, w2r, b2r)
    return out, mem


def spiking_res_block(x_nchw, w1_oihw, b1, w2_oihw, b2,
                      threshold=1.0, decay=0.5):
    """PyTorch-layout wrapper: x (N,C,H,W), weights (O,I,3,3). Returns NCHW."""
    x = jnp.transpose(x_nchw, (0, 2, 3, 1))          # NCHW -> NHWC
    w1 = jnp.transpose(w1_oihw, (2, 3, 1, 0))        # OIHW -> HWIO
    w2 = jnp.transpose(w2_oihw, (2, 3, 1, 0))
    out, mem = spiking_res_block_nhwc(x, w1, b1, w2, b2, threshold, decay)
    return (jnp.transpose(out, (0, 3, 1, 2)),
            jnp.transpose(mem, (0, 3, 1, 2)))


if __name__ == "__main__":
    N, C, H, W = 2, 4, 16, 16

    key = jax.random.PRNGKey(0)
    kx, kw1, kb1, kw2, kb2 = jax.random.split(key, 5)

    # Deterministic init mirroring nn.Conv2d's U(-1/sqrt(fan_in), +1/sqrt(fan_in))
    fan_in = C * 3 * 3
    bound = 1.0 / math.sqrt(fan_in)
    w1 = jax.random.uniform(kw1, (C, C, 3, 3), jnp.float32, -bound, bound)
    b1 = jax.random.uniform(kb1, (C,), jnp.float32, -bound, bound)
    w2 = jax.random.uniform(kw2, (C, C, 3, 3), jnp.float32, -bound, bound)
    b2 = jax.random.uniform(kb2, (C,), jnp.float32, -bound, bound)

    x = jax.random.normal(kx, (N, C, H, W), dtype=jnp.float32)

    out, mem = jax.jit(spiking_res_block)(x, w1, b1, w2, b2)
    jax.block_until_ready((out, mem))

    assert out.shape == (N, C, H, W) and out.dtype == jnp.float32
    assert mem.shape == (N, C, H, W) and mem.dtype == jnp.float32
    assert bool(jnp.all(jnp.isfinite(out))) and bool(jnp.all(jnp.isfinite(mem)))
    print("KERNEL_OK")
</pallas_src>

<mosaic_0001>
module attributes {stable_mosaic.version = 11 : i64} {
  func.func @fused_res_block_kernel(%arg0: i32, %arg1: memref<1x16x16x4xf32, #tpu.memory_space<vmem>>, %arg2: memref<36x4xf32, #tpu.memory_space<vmem>>, %arg3: memref<1x4xf32, #tpu.memory_space<vmem>>, %arg4: memref<36x4xf32, #tpu.memory_space<vmem>>, %arg5: memref<1x4xf32, #tpu.memory_space<vmem>>, %arg6: memref<1x16x16x4xf32, #tpu.memory_space<vmem>>, %arg7: memref<1x16x16x4xf32, #tpu.memory_space<vmem>>, %arg8: memref<18x18x4xf32, #tpu.memory_space<vmem>>) attributes {dimension_semantics = [#tpu.dimension_semantics<parallel>], iteration_bounds = array<i64: 2>, scalar_prefetch = 0 : i64, scratch_operands = 1 : i64, tpu.core_type = #tpu.core_type<tc>, window_params = [{transform_indices = @transform_0, window_bounds = array<i64: 1, 16, 16, 4>}, {pipeline_mode = #tpu.pipeline_mode<synchronous>, transform_indices = @transform_1, window_bounds = array<i64: 36, 4>}, {pipeline_mode = #tpu.pipeline_mode<synchronous>, transform_indices = @transform_2, window_bounds = array<i64: 1, 4>}, {pipeline_mode = #tpu.pipeline_mode<synchronous>, transform_indices = @transform_3, window_bounds = array<i64: 36, 4>}, {pipeline_mode = #tpu.pipeline_mode<synchronous>, transform_indices = @transform_4, window_bounds = array<i64: 1, 4>}, {transform_indices = @transform_5, window_bounds = array<i64: 1, 16, 16, 4>}, {transform_indices = @transform_6, window_bounds = array<i64: 1, 16, 16, 4>}]} {
    %c0 = arith.constant 0 : index
    %c0_0 = arith.constant 0 : index
    %c0_1 = arith.constant 0 : index
    %c0_2 = arith.constant 0 : index
    %0 = vector.load %arg1[%c0, %c0_0, %c0_1, %c0_2] : memref<1x16x16x4xf32, #tpu.memory_space<vmem>>, vector<1x16x16x4xf32>
    %1 = vector.shape_cast %0 : vector<1x16x16x4xf32> to vector<16x16x4xf32>
    %cst = arith.constant 0.000000e+00 : f32
    %2 = vector.broadcast %cst : f32 to vector<18x18x4xf32>
    %c0_3 = arith.constant 0 : index
    %c0_4 = arith.constant 0 : index
    %c0_5 = arith.constant 0 : index
    %3 = vector.load %arg8[%c0_3, %c0_4, %c0_5] : memref<18x18x4xf32, #tpu.memory_space<vmem>>, vector<18x18x4xf32>
    tpu.vector_store %arg8[%c0_3, %c0_4, %c0_5], %2 {strides = array<i32>} : memref<18x18x4xf32, #tpu.memory_space<vmem>>, vector<18x18x4xf32>,
    %c1 = arith.constant 1 : index
    %c1_6 = arith.constant 1 : index
    %c0_7 = arith.constant 0 : index
    %4 = vector.load %arg8[%c1, %c1_6, %c0_7] : memref<18x18x4xf32, #tpu.memory_space<vmem>>, vector<16x16x4xf32>
    tpu.vector_store %arg8[%c1, %c1_6, %c0_7], %1 {strides = array<i32>} : memref<18x18x4xf32, #tpu.memory_space<vmem>>, vector<16x16x4xf32>,
    %c0_8 = arith.constant 0 : index
    %c0_9 = arith.constant 0 : index
    %c0_10 = arith.constant 0 : index
    %5 = vector.load %arg8[%c0_8, %c0_9, %c0_10] : memref<18x18x4xf32, #tpu.memory_space<vmem>>, vector<16x16x4xf32>
    %6 = vector.shape_cast %5 : vector<16x16x4xf32> to vector<256x4xf32>
    %c0_11 = arith.constant 0 : index
    %c1_12 = arith.constant 1 : index
    %c0_13 = arith.constant 0 : index
    %7 = vector.load %arg8[%c0_11, %c1_12, %c0_13] : memref<18x18x4xf32, #tpu.memory_space<vmem>>, vector<16x16x4xf32>
    %8 = vector.shape_cast %7 : vector<16x16x4xf32> to vector<256x4xf32>
    %c0_14 = arith.constant 0 : index
    %c2 = arith.constant 2 : index
    %c0_15 = arith.constant 0 : index
    %9 = vector.load %arg8[%c0_14, %c2, %c0_15] : memref<18x18x4xf32, #tpu.memory_space<vmem>>, vector<16x16x4xf32>
    %10 = vector.shape_cast %9 : vector<16x16x4xf32> to vector<256x4xf32>
    %c1_16 = arith.constant 1 : index
    %c0_17 = arith.constant 0 : index
    %c0_18 = arith.constant 0 : index
    %11 = vector.load %arg8[%c1_16, %c0_17, %c0_18] : memref<18x18x4xf32, #tpu.memory_space<vmem>>, vector<16x16x4xf32>
    %12 = vector.shape_cast %11 : vector<16x16x4xf32> to vector<256x4xf32>
    %c1_19 = arith.constant 1 : index
    %c1_20 = arith.constant 1 : index
    %c0_21 = arith.constant 0 : index
    %13 = vector.load %arg8[%c1_19, %c1_20, %c0_21] : memref<18x18x4xf32, #tpu.memory_space<vmem>>, vector<16x16x4xf32>
    %14 = vector.shape_cast %13 : vector<16x16x4xf32> to vector<256x4xf32>
    %c1_22 = arith.constant 1 : index
    %c2_23 = arith.constant 2 : index
    %c0_24 = arith.constant 0 : index
    %15 = vector.load %arg8[%c1_22, %c2_23, %c0_24] : memref<18x18x4xf32, #tpu.memory_space<vmem>>, vector<16x16x4xf32>
    %16 = vector.shape_cast %15 : vector<16x16x4xf32> to vector<256x4xf32>
    %c2_25 = arith.constant 2 : index
    %c0_26 = arith.constant 0 : index
    %c0_27 = arith.constant 0 : index
    %17 = vector.load %arg8[%c2_25, %c0_26, %c0_27] : memref<18x18x4xf32, #tpu.memory_space<vmem>>, vector<16x16x4xf32>
    %18 = vector.shape_cast %17 : vector<16x16x4xf32> to vector<256x4xf32>
    %c2_28 = arith.constant 2 : index
    %c1_29 = arith.constant 1 : index
    %c0_30 = arith.constant 0 : index
    %19 = vector.load %arg8[%c2_28, %c1_29, %c0_30] : memref<18x18x4xf32, #tpu.memory_space<vmem>>, vector<16x16x4xf32>
    %20 = vector.shape_cast %19 : vector<16x16x4xf32> to vector<256x4xf32>
    %c2_31 = arith.constant 2 : index
    %c2_32 = arith.constant 2 : index
    %c0_33 = arith.constant 0 : index
    %21 = vector.load %arg8[%c2_31, %c2_32, %c0_33] : memref<18x18x4xf32, #tpu.memory_space<vmem>>, vector<16x16x4xf32>
    %22 = vector.shape_cast %21 : vector<16x16x4xf32> to vector<256x4xf32>
    %23 = tpu.concatenate %6, %8, %10, %12, %14, %16, %18, %20, %22 in 1 : vector<256x4xf32>, vector<256x4xf32>, vector<256x4xf32>, vector<256x4xf32>, vector<256x4xf32>, vector<256x4xf32>, vector<256x4xf32>, vector<256x4xf32>, vector<256x4xf32> -> vector<256x36xf32>
    %c0_34 = arith.constant 0 : index
    %c0_35 = arith.constant 0 : index
    %24 = vector.load %arg2[%c0_34, %c0_35] : memref<36x4xf32, #tpu.memory_space<vmem>>, vector<36x4xf32>
    %cst_36 = arith.constant dense<0.000000e+00> : vector<256x4xf32>
    %25 = tpu.matmul %23, %24, %cst_36 {dimension_numbers = #tpu.dot_dimension_numbers<[1], [0], [0], [1], [0, 0, 1, 1], [], []>} : vector<256x36xf32>, vector<36x4xf32>, vector<256x4xf32> -> vector<256x4xf32>
    %c0_37 = arith.constant 0 : index
    %c0_38 = arith.constant 0 : index
    %26 = vector.load %arg3[%c0_37, %c0_38] : memref<1x4xf32, #tpu.memory_space<vmem>>, vector<1x4xf32>
    %27 = vector.broadcast %26 : vector<1x4xf32> to vector<256x4xf32>
    %28 = arith.addf %25, %27 : vector<256x4xf32>
    %cst_39 = arith.constant 1.000000e+00 : f32
    %29 = vector.broadcast %cst_39 : f32 to vector<256x4xf32>
    %30 = arith.cmpf ogt, %28, %29 : vector<256x4xf32>
    %31 = arith.extui %30 : vector<256x4xi1> to vector<256x4xi32>
    %32 = arith.sitofp %31 : vector<256x4xi32> to vector<256x4xf32>
    %cst_40 = arith.constant 1.000000e+00 : f32
    %33 = vector.broadcast %cst_40 : f32 to vector<256x4xf32>
    %34 = arith.mulf %32, %33 : vector<256x4xf32>
    %35 = arith.subf %28, %34 : vector<256x4xf32>
    %36 = vector.shape_cast %32 : vector<256x4xf32> to vector<16x16x4xf32>
    %c1_41 = arith.constant 1 : index
    %c1_42 = arith.constant 1 : index
    %c0_43 = arith.constant 0 : index
    %37 = vector.load %arg8[%c1_41, %c1_42, %c0_43] : memref<18x18x4xf32, #tpu.memory_space<vmem>>, vector<16x16x4xf32>
    tpu.vector_store %arg8[%c1_41, %c1_42, %c0_43], %36 {strides = array<i32>} : memref<18x18x4xf32, #tpu.memory_space<vmem>>, vector<16x16x4xf32>,
    %c0_44 = arith.constant 0 : index
    %c0_45 = arith.constant 0 : index
    %c0_46 = arith.constant 0 : index
    %38 = vector.load %arg8[%c0_44, %c0_45, %c0_46] : memref<18x18x4xf32, #tpu.memory_space<vmem>>, vector<16x16x4xf32>
    %39 = vector.shape_cast %38 : vector<16x16x4xf32> to vector<256x4xf32>
    %c0_47 = arith.constant 0 : index
    %c1_48 = arith.constant 1 : index
    %c0_49 = arith.constant 0 : index
    %40 = vector.load %arg8[%c0_47, %c1_48, %c0_49] : memref<18x18x4xf32, #tpu.memory_space<vmem>>, vector<16x16x4xf32>
    %41 = vector.shape_cast %40 : vector<16x16x4xf32> to vector<256x4xf32>
    %c0_50 = arith.constant 0 : index
    %c2_51 = arith.constant 2 : index
    %c0_52 = arith.constant 0 : index
    %42 = vector.load %arg8[%c0_50, %c2_51, %c0_52] : memref<18x18x4xf32, #tpu.memory_space<vmem>>, vector<16x16x4xf32>
    %43 = vector.shape_cast %42 : vector<16x16x4xf32> to vector<256x4xf32>
    %c1_53 = arith.constant 1 : index
    %c0_54 = arith.constant 0 : index
    %c0_55 = arith.constant 0 : index
    %44 = vector.load %arg8[%c1_53, %c0_54, %c0_55] : memref<18x18x4xf32, #tpu.memory_space<vmem>>, vector<16x16x4xf32>
    %45 = vector.shape_cast %44 : vector<16x16x4xf32> to vector<256x4xf32>
    %c1_56 = arith.constant 1 : index
    %c1_57 = arith.constant 1 : index
    %c0_58 = arith.constant 0 : index
    %46 = vector.load %arg8[%c1_56, %c1_57, %c0_58] : memref<18x18x4xf32, #tpu.memory_space<vmem>>, vector<16x16x4xf32>
    %47 = vector.shape_cast %46 : vector<16x16x4xf32> to vector<256x4xf32>
    %c1_59 = arith.constant 1 : index
    %c2_60 = arith.constant 2 : index
    %c0_61 = arith.constant 0 : index
    %48 = vector.load %arg8[%c1_59, %c2_60, %c0_61] : memref<18x18x4xf32, #tpu.memory_space<vmem>>, vector<16x16x4xf32>
    %49 = vector.shape_cast %48 : vector<16x16x4xf32> to vector<256x4xf32>
    %c2_62 = arith.constant 2 : index
    %c0_63 = arith.constant 0 : index
    %c0_64 = arith.constant 0 : index
    %50 = vector.load %arg8[%c2_62, %c0_63, %c0_64] : memref<18x18x4xf32, #tpu.memory_space<vmem>>, vector<16x16x4xf32>
    %51 = vector.shape_cast %50 : vector<16x16x4xf32> to vector<256x4xf32>
    %c2_65 = arith.constant 2 : index
    %c1_66 = arith.constant 1 : index
    %c0_67 = arith.constant 0 : index
    %52 = vector.load %arg8[%c2_65, %c1_66, %c0_67] : memref<18x18x4xf32, #tpu.memory_space<vmem>>, vector<16x16x4xf32>
    %53 = vector.shape_cast %52 : vector<16x16x4xf32> to vector<256x4xf32>
    %c2_68 = arith.constant 2 : index
    %c2_69 = arith.constant 2 : index
    %c0_70 = arith.constant 0 : index
    %54 = vector.load %arg8[%c2_68, %c2_69, %c0_70] : memref<18x18x4xf32, #tpu.memory_space<vmem>>, vector<16x16x4xf32>
    %55 = vector.shape_cast %54 : vector<16x16x4xf32> to vector<256x4xf32>
    %56 = tpu.concatenate %39, %41, %43, %45, %47, %49, %51, %53, %55 in 1 : vector<256x4xf32>, vector<256x4xf32>, vector<256x4xf32>, vector<256x4xf32>, vector<256x4xf32>, vector<256x4xf32>, vector<256x4xf32>, vector<256x4xf32>, vector<256x4xf32> -> vector<256x36xf32>
    %c0_71 = arith.constant 0 : index
    %c0_72 = arith.constant 0 : index
    %57 = vector.load %arg4[%c0_71, %c0_72] : memref<36x4xf32, #tpu.memory_space<vmem>>, vector<36x4xf32>
    %cst_73 = arith.constant dense<0.000000e+00> : vector<256x4xf32>
    %58 = tpu.matmul %56, %57, %cst_73 {dimension_numbers = #tpu.dot_dimension_numbers<[1], [0], [0], [1], [0, 0, 1, 1], [], []>} : vector<256x36xf32>, vector<36x4xf32>, vector<256x4xf32> -> vector<256x4xf32>
    %c0_74 = arith.constant 0 : index
    %c0_75 = arith.constant 0 : index
    %59 = vector.load %arg5[%c0_74, %c0_75] : memref<1x4xf32, #tpu.memory_space<vmem>>, vector<1x4xf32>
    %60 = vector.broadcast %59 : vector<1x4xf32> to vector<256x4xf32>
    %61 = arith.addf %58, %60 : vector<256x4xf32>
    %cst_76 = arith.constant 1.000000e+00 : f32
    %62 = vector.broadcast %cst_76 : f32 to vector<256x4xf32>
    %63 = arith.cmpf ogt, %61, %62 : vector<256x4xf32>
    %64 = arith.extui %63 : vector<256x4xi1> to vector<256x4xi32>
    %65 = arith.sitofp %64 : vector<256x4xi32> to vector<256x4xf32>
    %cst_77 = arith.constant 1.000000e+00 : f32
    %66 = vector.broadcast %cst_77 : f32 to vector<256x4xf32>
    %67 = arith.mulf %65, %66 : vector<256x4xf32>
    %68 = arith.subf %61, %67 : vector<256x4xf32>
    %69 = vector.shape_cast %65 : vector<256x4xf32> to vector<16x16x4xf32>
    %70 = arith.addf %69, %1 : vector<16x16x4xf32>
    %c0_78 = arith.constant 0 : index
    %c0_79 = arith.constant 0 : index
    %c0_80 = arith.constant 0 : index
    %c0_81 = arith.constant 0 : index
    %71 = vector.load %arg6[%c0_78, %c0_79, %c0_80, %c0_81] : memref<1x16x16x4xf32, #tpu.memory_space<vmem>>, vector<1x16x16x4xf32>
    %72 = vector.shape_cast %71 : vector<1x16x16x4xf32> to vector<16x16x4xf32>
    %73 = vector.shape_cast %70 : vector<16x16x4xf32> to vector<1x16x16x4xf32>
    tpu.vector_store %arg6[%c0_78, %c0_79, %c0_80, %c0_81], %73 {strides = array<i32>} : memref<1x16x16x4xf32, #tpu.memory_space<vmem>>, vector<1x16x16x4xf32>,
    %74 = arith.addf %35, %68 : vector<256x4xf32>
    %cst_82 = arith.constant 5.000000e-01 : f32
    %75 = vector.broadcast %cst_82 : f32 to vector<256x4xf32>
    %76 = arith.mulf %74, %75 : vector<256x4xf32>
    %77 = vector.shape_cast %76 : vector<256x4xf32> to vector<16x16x4xf32>
    %c0_83 = arith.constant 0 : index
    %c0_84 = arith.constant 0 : index
    %c0_85 = arith.constant 0 : index
    %c0_86 = arith.constant 0 : index
    %78 = vector.load %arg7[%c0_83, %c0_84, %c0_85, %c0_86] : memref<1x16x16x4xf32, #tpu.memory_space<vmem>>, vector<1x16x16x4xf32>
    %79 = vector.shape_cast %78 : vector<1x16x16x4xf32> to vector<16x16x4xf32>
    %80 = vector.shape_cast %77 : vector<16x16x4xf32> to vector<1x16x16x4xf32>
    tpu.vector_store %arg7[%c0_83, %c0_84, %c0_85, %c0_86], %80 {strides = array<i32>} : memref<1x16x16x4xf32, #tpu.memory_space<vmem>>, vector<1x16x16x4xf32>,
    return
  }
  func.func @transform_0(%arg0: i32) -> (i32, i32, i32, i32) {
    %c0_i32 = arith.constant 0 : i32
    %c0_i32_0 = arith.constant 0 : i32
    %c0_i32_1 = arith.constant 0 : i32
    %c0_i32_2 = arith.constant 0 : i32
    return %arg0, %c0_i32, %c0_i32_0, %c0_i32_1 : i32, i32, i32, i32
  }
  func.func @transform_1(%arg0: i32) -> (i32, i32) {
    %c0_i32 = arith.constant 0 : i32
    %c0_i32_0 = arith.constant 0 : i32
    %c0_i32_1 = arith.constant 0 : i32
    return %c0_i32, %c0_i32_0 : i32, i32
  }
  func.func @transform_2(%arg0: i32) -> (i32, i32) {
    %c0_i32 = arith.constant 0 : i32
    %c0_i32_0 = arith.constant 0 : i32
    %c0_i32_1 = arith.constant 0 : i32
    return %c0_i32, %c0_i32_0 : i32, i32
  }
  func.func @transform_3(%arg0: i32) -> (i32, i32) {
    %c0_i32 = arith.constant 0 : i32
    %c0_i32_0 = arith.constant 0 : i32
    %c0_i32_1 = arith.constant 0 : i32
    return %c0_i32, %c0_i32_0 : i32, i32
  }
  func.func @transform_4(%arg0: i32) -> (i32, i32) {
    %c0_i32 = arith.constant 0 : i32
    %c0_i32_0 = arith.constant 0 : i32
    %c0_i32_1 = arith.constant 0 : i32
    return %c0_i32, %c0_i32_0 : i32, i32
  }
  func.func @transform_5(%arg0: i32) -> (i32, i32, i32, i32) {
    %c0_i32 = arith.constant 0 : i32
    %c0_i32_0 = arith.constant 0 : i32
    %c0_i32_1 = arith.constant 0 : i32
    %c0_i32_2 = arith.constant 0 : i32
    return %arg0, %c0_i32, %c0_i32_0, %c0_i32_1 : i32, i32, i32, i32
  }
  func.func @transform_6(%arg0: i32) -> (i32, i32, i32, i32) {
    %c0_i32 = arith.constant 0 : i32
    %c0_i32_0 = arith.constant 0 : i32
    %c0_i32_1 = arith.constant 0 : i32
    %c0_i32_2 = arith.constant 0 : i32
    return %arg0, %c0_i32, %c0_i32_0, %c0_i32_1 : i32, i32, i32, i32
  }
}

</mosaic_0001>

<bundles_post_ra>
// kernel: spiking_res_block.1
= control target key start
LH: loop header
LB: loop body
LE: loop exit
PB: predicated region body
PF: predicated region fallthrough
CT: control target
= control target key end

     0   :  { %s5191_s21 = smov 0   ;;  %s8838_s0 = inlined_call_operand.vmem [shape: f32[2,16,16,4], index: 0, kind: input, shape index: {}]   ;;  %s8839_s1 = inlined_call_operand.vmem [shape: f32[36,4], index: 1, kind: input, shape index: {}]   ;;  %s8840_s2 = inlined_call_operand.vmem [shape: f32[1,4], index: 2, kind: input, shape index: {}]   ;;  %s8841_s3 = inlined_call_operand.vmem [shape: f32[36,4], index: 3, kind: input, shape index: {}]   ;;  %s8842_s4 = inlined_call_operand.vmem [shape: f32[1,4], index: 4, kind: input, shape index: {}]   ;;  %s8843_s5 = inlined_call_operand.vmem [shape: f32[2,16,16,4], index: 5, kind: output, shape index: {0}]   ;;  %s8844_s6 = inlined_call_operand.vmem [shape: f32[2,16,16,4], index: 6, kind: output, shape index: {1}]  }
   0x1 LB: > { %s4740_s22 = sadd.s32 4294967295, %s5145_s21   ;;  %p4744_p0 = scmp.ge.s32.totalorder %s5145_s21, 1  ;;  %s5145_s21 = sphi %s5191_s21, %s17_s21  }
   0x2   : > { %p215_p1 = scmp.lt.s32.totalorder %s5145_s21, 3 }
   0x4   : > { %p216_p2 = pnand %p4744_p0, %p215_p1 }
   0x6   : > { %219 = sbr.rel (%p216_p2) target bundleno = 1642 (0x66a), region = 40 }
   0xb   : > { %vm297_vm0 = vcmask 31744   ;;  %vm300_vm1 = vcmask 25600   ;;  %p5201_p3 = scmp.lt.s32.totalorder %s4740_s22, 1  ;;  %v8845_v0 = vmov 0.0   ;;  %s5148_s28 = smov 4   ;;  %vm2071_vm2 = vcmask 1043456  }
   0xc   : > { %298 = vst.msk [vmem:[#allocation2] sm:$0xff] %vm297_vm0, %v8845_v0  ;;  %299 = vst.msk [vmem:[#allocation2 + $0x8] sm:$0xff] %vm297_vm0, %v8845_v0  ;;  %s5149_s29 = smov 8   ;;  %s5150_s30 = smov 12   ;;  %vm1731_vm3 = vcmask 64512   ;;  %vm1764_vm4 = vcmask 97280  }
   0xd   : > { %302 = vst.msk [vmem:[#allocation2 + $0x18] sm:$0xff] %vm297_vm0, %v8845_v0  ;;  %303 = vst.msk [vmem:[#allocation2 + $0x20] sm:$0xff] %vm297_vm0, %v8845_v0  ;;  %s9733_s22 = smov (!%p5201_p3, %s4740_s22), 1  ;;  %s5151_s7 = smov 16   ;;  %vm1797_vm5 = vcmask 130048   ;;  %vm1830_vm6 = vcmask 162816  }
   0xe   : > { %305 = vst.msk [vmem:[#allocation2 + $0x30] sm:$0xff] %vm297_vm0, %v8845_v0  ;;  %306 = vst.msk [vmem:[#allocation2 + $0x38] sm:$0xff] %vm297_vm0, %v8845_v0  ;;  %s5317_s24 = sshll.u32 %s9733_s22, 8  ;;  %s5152_s8 = smov 20   ;;  %vm1863_vm7 = vcmask 195584   ;;  %vm1896_vm8 = vcmask 228352  }
   0xf   : > { %308 = vst.msk [vmem:[#allocation2 + $0x48] sm:$0xff] %vm297_vm0, %v8845_v0  ;;  %309 = vst.msk [vmem:[#allocation2 + $0x50] sm:$0xff] %vm297_vm0, %v8845_v0  ;;  %s5323_s27 = scalar_lea.vmem %s8838_s0, %s5317_s24  ;;  %s5153_s9 = smov 24   ;;  %vm1929_vm9 = vcmask 261120   ;;  %vm1974_vm10 = vcmask 293888  }
  0x10   : > { %311 = vst.msk [vmem:[#allocation2 + $0x60] sm:$0xff] %vm297_vm0, %v8845_v0  ;;  %312 = vst.msk [vmem:[#allocation2 + $0x68] sm:$0xff] %vm297_vm0, %v8845_v0  ;;  %v5326_v1 = vld [vmem:[%s5323_s27] sm:$0xff]  ;;  %v5329_v2 = vld [vmem:[%s5323_s27 + $0x10] sm:$0xff]  ;;  %s5154_s10 = smov 28   ;;  %s5155_s22 = smov 32  }
  0x11   : > { %314 = vst.msk [vmem:[#allocation2 + $0x78] sm:$0xff] %vm297_vm0, %v8845_v0  ;;  %315 = vst.msk [vmem:[#allocation2 + $0x80] sm:$0xff] %vm297_vm0, %v8845_v0  ;;  %v5332_v3 = vld [vmem:[%s5323_s27 + $0x8] sm:$0xff]  ;;  %v5341_v4 = vld [vmem:[%s5323_s27 + $0x20] sm:$0xff]  ;;  %s8398_s19 = scalar_lea.vmem %s8844_s6, %s5317_s24 }
  0x12   : > { %317 = vst.msk [vmem:[#allocation2 + $0x90] sm:$0xff] %vm297_vm0, %v8845_v0  ;;  %318 = vst.msk [vmem:[#allocation2 + $0x98] sm:$0xff] %vm297_vm0, %v8845_v0  ;;  %v5344_v5 = vld [vmem:[%s5323_s27 + $0x18] sm:$0xff]  ;;  %v5347_v6 = vld [vmem:[%s5323_s27 + $0x30] sm:$0xff] }
  0x13   : > { %320 = vst.msk [vmem:[#allocation2 + $0xa8] sm:$0xff] %vm297_vm0, %v8845_v0  ;;  %321 = vst.msk [vmem:[#allocation2 + $0xb0] sm:$0xff] %vm297_vm0, %v8845_v0  ;;  %v418_v7 = vld [vmem:[#allocation2 + $0x1] sm:$0xff]  ;;  %v5365_v11 = vld [vmem:[%s5323_s27 + $0x38] sm:$0xff] }
  0x14   : > { %323 = vst.msk [vmem:[#allocation2 + $0xc0] sm:$0xff] %vm297_vm0, %v8845_v0  ;;  %324 = vst.msk [vmem:[#allocation2 + $0xc8] sm:$0xff] %vm297_vm0, %v8845_v0  ;;  %v5356_v9 = vld [vmem:[%s5323_s27 + $0x28] sm:$0xff]  ;;  %707 = vrot.lane.b32.xlu0 %v418_v7, %s5148_s28  ;;  %v5362_v10 = vld [vmem:[%s5323_s27 + $0x40] sm:$0xff] }
  0x15   : > { %326 = vst.msk [vmem:[#allocation2 + $0xd8] sm:$0xff] %vm297_vm0, %v8845_v0  ;;  %327 = vst.msk [vmem:[#allocation2 + $0xe0] sm:$0xff] %vm297_vm0, %v8845_v0  ;;  %v5368_v12 = vld [vmem:[%s5323_s27 + $0x50] sm:$0xff]  ;;  %v5377_v13 = vld [vmem:[%s5323_s27 + $0x48] sm:$0xff] }
  0x16   : > { %329 = vst.msk [vmem:[#allocation2 + $0xf0] sm:$0xff] %vm297_vm0, %v8845_v0  ;;  %330 = vst.msk [vmem:[#allocation2 + $0xf8] sm:$0xff] %vm297_vm0, %v8845_v0  ;;  %v5380_v14 = vld [vmem:[%s5323_s27 + $0x60] sm:$0xff]  ;;  %v5383_v15 = vld [vmem:[%s5323_s27 + $0x58] sm:$0xff] }
  0x17   : > { %332 = vst.msk [vmem:[#allocation2 + $0x108] sm:$0xff] %vm297_vm0, %v8845_v0  ;;  %333 = vst.msk [vmem:[#allocation2 + $0x110] sm:$0xff] %vm297_vm0, %v8845_v0  ;;  %v5392_v16 = vld [vmem:[%s5323_s27 + $0x70] sm:$0xff]  ;;  %v5395_v17 = vld [vmem:[%s5323_s27 + $0x68] sm:$0xff] }
  0x18   : > { %335 = vst.msk [vmem:[#allocation2 + $0x120] sm:$0xff] %vm297_vm0, %v8845_v0  ;;  %336 = vst.msk [vmem:[#allocation2 + $0x128] sm:$0xff] %vm297_vm0, %v8845_v0  ;;  %v5398_v18 = vld [vmem:[%s5323_s27 + $0x80] sm:$0xff]  ;;  %v5407_v19 = vld [vmem:[%s5323_s27 + $0x78] sm:$0xff] }
  0x19   : > { %338 = vst.msk [vmem:[#allocation2 + $0x138] sm:$0xff] %vm297_vm0, %v8845_v0  ;;  %339 = vst.msk [vmem:[#allocation2 + $0x140] sm:$0xff] %vm297_vm0, %v8845_v0  ;;  %v5410_v20 = vld [vmem:[%s5323_s27 + $0x90] sm:$0xff]  ;;  %v5413_v21 = vld [vmem:[%s5323_s27 + $0x88] sm:$0xff] }
  0x1a   : > { %341 = vst.msk [vmem:[#allocation2 + $0x150] sm:$0xff] %vm297_vm0, %v8845_v0  ;;  %342 = vst.msk [vmem:[#allocation2 + $0x158] sm:$0xff] %vm297_vm0, %v8845_v0  ;;  %v5423_v22 = vld [vmem:[%s5323_s27 + $0xa0] sm:$0xff]  ;;  %v5426_v23 = vld [vmem:[%s5323_s27 + $0x98] sm:$0xff] }
  0x1b   : > { %344 = vst.msk [vmem:[#allocation2 + $0x168] sm:$0xff] %vm297_vm0, %v8845_v0  ;;  %345 = vst.msk [vmem:[#allocation2 + $0x170] sm:$0xff] %vm297_vm0, %v8845_v0  ;;  %v5429_v24 = vld [vmem:[%s5323_s27 + $0xb0] sm:$0xff]  ;;  %v5446_v28 = vld [vmem:[%s5323_s27 + $0xa8] sm:$0xff] }
  0x1c   : > { %347 = vst.msk [vmem:[#allocation2 + $0x180] sm:$0xff] %vm297_vm0, %v8845_v0  ;;  %348 = vst.msk [vmem:[#allocation2 + $0x188] sm:$0xff] %vm297_vm0, %v8845_v0  ;;  %v5449_v29 = vld [vmem:[%s5323_s27 + $0xc0] sm:$0xff]  ;;  %v5468_v33 = vld [vmem:[%s5323_s27 + $0xb8] sm:$0xff] }
  0x1d   : > { %350 = vst.msk [vmem:[#allocation2 + $0x198] sm:$0xff] %vm297_vm0, %v8845_v0  ;;  %351 = vst.msk [vmem:[#allocation2 + $0x1a0] sm:$0xff] %vm297_vm0, %v8845_v0  ;;  %v5471_v34 = vld [vmem:[%s5323_s27 + $0xd0] sm:$0xff]  ;;  %v5474_v35 = vld [vmem:[%s5323_s27 + $0xc8] sm:$0xff] }
  0x1e   : > { %301 = vst.msk [vmem:[#allocation2 + $0x10] sm:$0x3] %vm300_vm1, %v8845_v0  ;;  %304 = vst.msk [vmem:[#allocation2 + $0x28] sm:$0x3] %vm300_vm1, %v8845_v0  ;;  %v5485_v36 = vld [vmem:[%s5323_s27 + $0xe0] sm:$0xff]  ;;  %v5488_v37 = vld [vmem:[%s5323_s27 + $0xd8] sm:$0xff] }
  0x1f   : > { %307 = vst.msk [vmem:[#allocation2 + $0x40] sm:$0x3] %vm300_vm1, %v8845_v0  ;;  %310 = vst.msk [vmem:[#allocation2 + $0x58] sm:$0x3] %vm300_vm1, %v8845_v0  ;;  %v5497_v39 = vld [vmem:[%s5323_s27 + $0xe8] sm:$0xff]  ;;  %v5574_v58 = vld [vmem:[%s5323_s27 + $0xf0] sm:$0xff] }
  0x20   : > { %313 = vst.msk [vmem:[#allocation2 + $0x70] sm:$0x3] %vm300_vm1, %v8845_v0  ;;  %316 = vst.msk [vmem:[#allocation2 + $0x88] sm:$0x3] %vm300_vm1, %v8845_v0  ;;  %v5591_v62 = vld [vmem:[%s5323_s27 + $0xf8] sm:$0xff]  ;;  %v450_v7 = vld [vmem:[#allocation2 + $0x2] sm:$0xff] }
  0x21   : > { %319 = vst.msk [vmem:[#allocation2 + $0xa0] sm:$0x3] %vm300_vm1, %v8845_v0  ;;  %322 = vst.msk [vmem:[#allocation2 + $0xb8] sm:$0x3] %vm300_vm1, %v8845_v0 }
  0x22   : > { %325 = vst.msk [vmem:[#allocation2 + $0xd0] sm:$0x3] %vm300_vm1, %v8845_v0  ;;  %328 = vst.msk [vmem:[#allocation2 + $0xe8] sm:$0x3] %vm300_vm1, %v8845_v0 }
  0x23   : > { %331 = vst.msk [vmem:[#allocation2 + $0x100] sm:$0x3] %vm300_vm1, %v8845_v0  ;;  %334 = vst.msk [vmem:[#allocation2 + $0x118] sm:$0x3] %vm300_vm1, %v8845_v0 }
  0x24   : > { %337 = vst.msk [vmem:[#allocation2 + $0x130] sm:$0x3] %vm300_vm1, %v8845_v0  ;;  %340 = vst.msk [vmem:[#allocation2 + $0x148] sm:$0x3] %vm300_vm1, %v8845_v0 }
  0x25   : > { %343 = vst.msk [vmem:[#allocation2 + $0x160] sm:$0x3] %vm300_vm1, %v8845_v0  ;;  %346 = vst.msk [vmem:[#allocation2 + $0x178] sm:$0x3] %vm300_vm1, %v8845_v0  ;;  %v419_v8 = vld [vmem:[#allocation2 + $0x9] sm:$0xff] }
  0x26   : > { %349 = vst.msk [vmem:[#allocation2 + $0x190] sm:$0x3] %vm300_vm1, %v8845_v0  ;;  %352 = vst.msk [vmem:[#allocation2 + $0x1a8] sm:$0x3] %vm300_vm1, %v8845_v0  ;;  %709 = vrot.lane.b32.xlu0 %v419_v8, %s5148_s28 }
  0x27   : > { %8980 = vst [vmem:[#allocation3_spill] sm:$0xff] %v5326_v1  ;;  %8981 = vst [vmem:[#allocation4_spill] sm:$0xff] %v5329_v2 }
  0x28   : > { %8982 = vst [vmem:[#allocation5_spill] sm:$0xff] %v5332_v3  ;;  %354 = vst.msk [vmem:[#allocation2 + $0x19] sm:$0xff] %vm297_vm0, %v5326_v1 }
  0x29   : > { %356 = vst.msk [vmem:[#allocation2 + $0x31] sm:$0xff] %vm297_vm0, %v5329_v2  ;;  %355 = vst.msk [vmem:[#allocation2 + $0x21] sm:$0xff] %vm297_vm0, %v5332_v3 }
  0x2a   : > { %8983 = vst [vmem:[#allocation6_spill] sm:$0xff] %v5341_v4  ;;  %8984 = vst [vmem:[#allocation7_spill] sm:$0xff] %v5344_v5 }
  0x2b   : > { %8985 = vst [vmem:[#allocation8_spill] sm:$0xff] %v5347_v6  ;;  %358 = vst.msk [vmem:[#allocation2 + $0x49] sm:$0xff] %vm297_vm0, %v5341_v4 }
  0x2c   : > { %357 = vst.msk [vmem:[#allocation2 + $0x39] sm:$0xff] %vm297_vm0, %v5344_v5  ;;  %360 = vst.msk [vmem:[#allocation2 + $0x61] sm:$0xff] %vm297_vm0, %v5347_v6 }
  0x2d   : > { %8986 = vst [vmem:[#allocation9_spill] sm:$0xff] %v5356_v9  ;;  %359 = vst.msk [vmem:[#allocation2 + $0x51] sm:$0xff] %vm297_vm0, %v5356_v9 }
  0x2e   : > { %8987 = vst [vmem:[#allocation10_spill] sm:$0xff] %v5362_v10  ;;  %8988 = vst [vmem:[#allocation11_spill] sm:$0xff] %v5365_v11 }
  0x2f   : > { %8989 = vst [vmem:[#allocation12_spill] sm:$0xff] %v5368_v12  ;;  %362 = vst.msk [vmem:[#allocation2 + $0x79] sm:$0xff] %vm297_vm0, %v5362_v10  ;;  %v5431_v25 = vld [vmem:[#allocation2 + $0x19] sm:$0xff] }
  0x30   : > { %361 = vst.msk [vmem:[#allocation2 + $0x69] sm:$0xff] %vm297_vm0, %v5365_v11  ;;  %364 = vst.msk [vmem:[#allocation2 + $0x91] sm:$0xff] %vm297_vm0, %v5368_v12  ;;  %v5433_v26 = vld [vmem:[#allocation2 + $0x31] sm:$0xff]  ;;  %711 = vrot.lane.b32.xlu1 %v5431_v25, %s5148_s28  ;;  %v5443_v27 = vld [vmem:[#allocation2 + $0x21] sm:$0xff] }
  0x31   : > { %8990 = vst [vmem:[#allocation13_spill] sm:$0xff] %v5377_v13  ;;  %8991 = vst [vmem:[#allocation14_spill] sm:$0xff] %v5380_v14  ;;  %715 = vrot.lane.b32.xlu0 %v5433_v26, %s5148_s28  ;;  %v5606_v0 = vld [vmem:[#allocation2 + $0x1a] sm:$0xff] }
  0x32   : > { %8992 = vst [vmem:[#allocation15_spill] sm:$0xff] %v5383_v15  ;;  %363 = vst.msk [vmem:[#allocation2 + $0x81] sm:$0xff] %vm297_vm0, %v5377_v13  ;;  %v5457_v30 = vld [vmem:[#allocation2 + $0x49] sm:$0xff] }
  0x33   : > { %366 = vst.msk [vmem:[#allocation2 + $0xa9] sm:$0xff] %vm297_vm0, %v5380_v14  ;;  %365 = vst.msk [vmem:[#allocation2 + $0x99] sm:$0xff] %vm297_vm0, %v5383_v15  ;;  %v5461_v31 = vld [vmem:[#allocation2 + $0x39] sm:$0xff]  ;;  %v5465_v32 = vld [vmem:[#allocation2 + $0x61] sm:$0xff] }
  0x34   : > { %8993 = vst [vmem:[#allocation16_spill] sm:$0xff] %v5392_v16  ;;  %8994 = vst [vmem:[#allocation17_spill] sm:$0xff] %v5395_v17  ;;  %713 = vrot.lane.b32.xlu1 %v5443_v27, %s5148_s28  ;;  %v5490_v38 = vld [vmem:[#allocation2 + $0x51] sm:$0xff] }
  0x35   : > { %8995 = vst [vmem:[#allocation18_spill] sm:$0xff] %v5398_v18  ;;  %368 = vst.msk [vmem:[#allocation2 + $0xc1] sm:$0xff] %vm297_vm0, %v5392_v16  ;;  %719 = vrot.lane.b32.xlu0 %v5457_v30, %s5148_s28 }
  0x36   : > { %367 = vst.msk [vmem:[#allocation2 + $0xb1] sm:$0xff] %vm297_vm0, %v5395_v17  ;;  %370 = vst.msk [vmem:[#allocation2 + $0xd9] sm:$0xff] %vm297_vm0, %v5398_v18  ;;  %v5503_v40 = vld [vmem:[#allocation2 + $0x79] sm:$0xff] }
  0x37   : > { %8996 = vst [vmem:[#allocation19_spill] sm:$0xff] %v5407_v19  ;;  %8997 = vst [vmem:[#allocation20_spill] sm:$0xff] %v5410_v20  ;;  %v5507_v41 = vld [vmem:[#allocation2 + $0x69] sm:$0xff]  ;;  %v5511_v42 = vld [vmem:[#allocation2 + $0x91] sm:$0xff] }
  0x38   : > { %8998 = vst [vmem:[#allocation21_spill] sm:$0xff] %v5413_v21  ;;  %369 = vst.msk [vmem:[#allocation2 + $0xc9] sm:$0xff] %vm297_vm0, %v5407_v19  ;;  %717 = vrot.lane.b32.xlu1 %v5461_v31, %s5148_s28 }
  0x39   : > { %372 = vst.msk [vmem:[#allocation2 + $0xf1] sm:$0xff] %vm297_vm0, %v5410_v20  ;;  %371 = vst.msk [vmem:[#allocation2 + $0xe1] sm:$0xff] %vm297_vm0, %v5413_v21  ;;  %723 = vrot.lane.b32.xlu0 %v5465_v32, %s5148_s28  ;;  %v5515_v43 = vld [vmem:[#allocation2 + $0x81] sm:$0xff] }
  0x3a   : > { %8999 = vst [vmem:[#allocation22_spill] sm:$0xff] %v5423_v22  ;;  %9000 = vst [vmem:[#allocation23_spill] sm:$0xff] %v5426_v23  ;;  %v5519_v44 = vld [vmem:[#allocation2 + $0xa9] sm:$0xff]  ;;  %v5523_v45 = vld [vmem:[#allocation2 + $0x99] sm:$0xff] }
  0x3b   : > { %9001 = vst [vmem:[#allocation24_spill] sm:$0xff] %v5429_v24  ;;  %374 = vst.msk [vmem:[#allocation2 + $0x109] sm:$0xff] %vm297_vm0, %v5423_v22  ;;  %v5655_v22 = vld [vmem:[#allocation2 + $0x9a] sm:$0xff] }
  0x3c   : > { %373 = vst.msk [vmem:[#allocation2 + $0xf9] sm:$0xff] %vm297_vm0, %v5426_v23  ;;  %376 = vst.msk [vmem:[#allocation2 + $0x121] sm:$0xff] %vm297_vm0, %v5429_v24  ;;  %721 = vrot.lane.b32.xlu1 %v5490_v38, %s5148_s28  ;;  %v5527_v46 = vld [vmem:[#allocation2 + $0xc1] sm:$0xff] }
  0x3d   : > { %9002 = vst [vmem:[#allocation25_spill] sm:$0xff] %v5446_v28  ;;  %9003 = vst [vmem:[#allocation26_spill] sm:$0xff] %v5449_v29  ;;  %727 = vrot.lane.b32.xlu0 %v5503_v40, %s5148_s28  ;;  %v5531_v47 = vld [vmem:[#allocation2 + $0xb1] sm:$0xff]  ;;  %v5535_v48 = vld [vmem:[#allocation2 + $0xd9] sm:$0xff] }
  0x3e   : > { %375 = vst.msk [vmem:[#allocation2 + $0x111] sm:$0xff] %vm297_vm0, %v5446_v28  ;;  %378 = vst.msk [vmem:[#allocation2 + $0x139] sm:$0xff] %vm297_vm0, %v5449_v29  ;;  %v5639_v29 = vld [vmem:[#allocation2 + $0x6a] sm:$0xff]  ;;  %v5647_v24 = vld [vmem:[#allocation2 + $0x82] sm:$0xff] }
  0x3f   : > { %9004 = vst [vmem:[#allocation27_spill] sm:$0xff] %v5468_v33  ;;  %9005 = vst [vmem:[#allocation28_spill] sm:$0xff] %v5471_v34  ;;  %v5539_v49 = vld [vmem:[#allocation2 + $0xc9] sm:$0xff]  ;;  %v5663_v20 = vld [vmem:[#allocation2 + $0xb2] sm:$0xff] }
  0x40   : > { %9006 = vst [vmem:[#allocation29_spill] sm:$0xff] %v5474_v35  ;;  %377 = vst.msk [vmem:[#allocation2 + $0x129] sm:$0xff] %vm297_vm0, %v5468_v33  ;;  %725 = vrot.lane.b32.xlu1 %v5507_v41, %s5148_s28  ;;  %v5543_v50 = vld [vmem:[#allocation2 + $0xf1] sm:$0xff]  ;;  %v5547_v51 = vld [vmem:[#allocation2 + $0xe1] sm:$0xff] }
  0x41   : > { %380 = vst.msk [vmem:[#allocation2 + $0x151] sm:$0xff] %vm297_vm0, %v5471_v34  ;;  %379 = vst.msk [vmem:[#allocation2 + $0x141] sm:$0xff] %vm297_vm0, %v5474_v35  ;;  %731 = vrot.lane.b32.xlu0 %v5511_v42, %s5148_s28  ;;  %v5627_v34 = vld [vmem:[#allocation2 + $0x62] sm:$0xff]  ;;  %v5643_v35 = vld [vmem:[#allocation2 + $0x92] sm:$0xff] }
  0x42   : > { %9007 = vst [vmem:[#allocation30_spill] sm:$0xff] %v5485_v36  ;;  %9008 = vst [vmem:[#allocation31_spill] sm:$0xff] %v5488_v37  ;;  %v5551_v52 = vld [vmem:[#allocation2 + $0x109] sm:$0xff]  ;;  %v5667_v23 = vld [vmem:[#allocation2 + $0xda] sm:$0xff] }
  0x43   : > { %382 = vst.msk [vmem:[#allocation2 + $0x169] sm:$0xff] %vm297_vm0, %v5485_v36  ;;  %381 = vst.msk [vmem:[#allocation2 + $0x159] sm:$0xff] %vm297_vm0, %v5488_v37  ;;  %v5555_v53 = vld [vmem:[#allocation2 + $0xf9] sm:$0xff]  ;;  %v5559_v54 = vld [vmem:[#allocation2 + $0x121] sm:$0xff] }
  0x44   : > { %9009 = vst [vmem:[#allocation32_spill] sm:$0xff] %v5497_v39  ;;  %383 = vst.msk [vmem:[#allocation2 + $0x171] sm:$0xff] %vm297_vm0, %v5497_v39  ;;  %729 = vrot.lane.b32.xlu1 %v5515_v43, %s5148_s28  ;;  %v5615_v36 = vld [vmem:[#allocation2 + $0x22] sm:$0xff]  ;;  %v5619_v39 = vld [vmem:[#allocation2 + $0x4a] sm:$0xff] }
  0x45   : > { %735 = vrot.lane.b32.xlu0 %v5519_v44, %s5148_s28  ;;  %v5563_v55 = vld [vmem:[#allocation2 + $0x111] sm:$0xff]  ;;  %v5567_v56 = vld [vmem:[#allocation2 + $0x139] sm:$0xff]  ;;  %9010 = vst [vmem:[#allocation33_spill] sm:$0xff] %v5574_v58  ;;  %384 = vst.msk [vmem:[#allocation2 + $0x181] sm:$0xff] %vm297_vm0, %v5574_v58 }
  0x46   : > { %9011 = vst [vmem:[#allocation34_spill] sm:$0xff] %v5591_v62  ;;  %385 = vst.msk [vmem:[#allocation2 + $0x189] sm:$0xff] %vm297_vm0, %v5591_v62  ;;  %v451_v58 = vld [vmem:[#allocation2 + $0xa] sm:$0xff]  ;;  %v5612_v62 = vld [vmem:[#allocation2 + $0x32] sm:$0xff] }
  0x47   : > { %v5571_v57 = vld [vmem:[#allocation2 + $0x129] sm:$0xff]  ;;  %v5635_v37 = vld [vmem:[#allocation2 + $0x7a] sm:$0xff]  ;;  %v5675_v21 = vld [vmem:[#allocation2 + $0xf2] sm:$0xff] }
  0x48   : > { %733 = vrot.lane.b32.xlu1 %v5523_v45, %s5148_s28  ;;  %v5580_v59 = vld [vmem:[#allocation2 + $0x151] sm:$0xff]  ;;  %v5584_v60 = vld [vmem:[#allocation2 + $0x141] sm:$0xff] }
  0x49   : > { %739 = vrot.lane.b32.xlu0 %v5527_v46, %s5148_s28  ;;  %v5651_v33 = vld [vmem:[#allocation2 + $0xaa] sm:$0xff]  ;;  %v5659_v28 = vld [vmem:[#allocation2 + $0xc2] sm:$0xff]  ;;  %v5687_v14 = vld [vmem:[#allocation2 + $0xfa] sm:$0xff] }
  0x4a   : > { %v5588_v61 = vld [vmem:[#allocation2 + $0x169] sm:$0xff]  ;;  %v5597_v63 = vld [vmem:[#allocation2 + $0x159] sm:$0xff] }
  0x4b   : > { %v5603_v8 = vld [vmem:[#allocation2 + $0x171] sm:$0xff]  ;;  %v5679_v16 = vld [vmem:[#allocation2 + $0xe2] sm:$0xff]  ;;  %v5699_v15 = vld [vmem:[#allocation2 + $0x13a] sm:$0xff] }
  0x4c   : > { %737 = vrot.lane.b32.xlu1 %v5531_v47, %s5148_s28  ;;  %v5671_v18 = vld [vmem:[#allocation2 + $0xca] sm:$0xff]  ;;  %v5691_v17 = vld [vmem:[#allocation2 + $0x122] sm:$0xff]  ;;  %v5695_v12 = vld [vmem:[#allocation2 + $0x112] sm:$0xff] }
  0x4d   : > { %743 = vrot.lane.b32.xlu0 %v5535_v48, %s5148_s28  ;;  %v5683_v19 = vld [vmem:[#allocation2 + $0x10a] sm:$0xff]  ;;  %v5709_v6 = vld [vmem:[#allocation2 + $0x152] sm:$0xff]  ;;  %v5715_v4 = vld [vmem:[#allocation2 + $0x142] sm:$0xff] }
  0x4e   : > { %v5705_v13 = vld [vmem:[#allocation2 + $0x12a] sm:$0xff]  ;;  %9014 = vst [vmem:[#allocation37_spill] sm:$0xff] %v5715_v4  ;;  %v5727_v1 = vld [vmem:[#allocation2 + $0x15a] sm:$0xff] }
  0x4f   : > { %v5721_v2 = vld [vmem:[#allocation2 + $0x16a] sm:$0xff]  ;;  %9018 = vst [vmem:[#allocation41_spill] sm:$0xff] %v5727_v1 }
  0x50   : > { %741 = vrot.lane.b32.xlu1 %v5539_v49, %s5148_s28  ;;  %9016 = vst [vmem:[#allocation39_spill] sm:$0xff] %v5721_v2 }
  0x51   : > { %747 = vrot.lane.b32.xlu0 %v5543_v50, %s5148_s28 }
  0x54   : > { %745 = vrot.lane.b32.xlu1 %v5547_v51, %s5148_s28 }
  0x55   : > { %751 = vrot.lane.b32.xlu0 %v5551_v52, %s5148_s28 }
  0x58   : > { %749 = vrot.lane.b32.xlu1 %v5555_v53, %s5148_s28 }
  0x59   : > { %755 = vrot.lane.b32.xlu0 %v5559_v54, %s5148_s28 }
  0x5c   : > { %753 = vrot.lane.b32.xlu1 %v5563_v55, %s5148_s28 }
  0x5d   : > { %759 = vrot.lane.b32.xlu0 %v5567_v56, %s5148_s28 }
  0x60   : > { %757 = vrot.lane.b32.xlu1 %v5571_v57, %s5148_s28 }
  0x61   : > { %763 = vrot.lane.b32.xlu0 %v5580_v59, %s5148_s28 }
  0x64   : > { %761 = vrot.lane.b32.xlu1 %v5584_v60, %s5148_s28 }
  0x65   : > { %767 = vrot.lane.b32.xlu0 %v5588_v61, %s5148_s28 }
  0x68   : > { %765 = vrot.lane.b32.xlu1 %v5597_v63, %s5148_s28 }
  0x69   : > { %835 = vrot.lane.b32.xlu0 %v450_v7, %s5149_s29  ;;  %v5623_v7 = vld [vmem:[#allocation2 + $0x3a] sm:$0xff] }
  0x6c   : > { %769 = vrot.lane.b32.xlu1 %v5603_v8, %s5148_s28 }
  0x6d   : > { %839 = vrot.lane.b32.xlu0 %v5606_v0, %s5149_s29 }
  0x70   : > { %837 = vrot.lane.b32.xlu1 %v451_v58, %s5149_s29  ;;  %v5631_v58 = vld [vmem:[#allocation2 + $0x52] sm:$0xff] }
  0x71   : > { %843 = vrot.lane.b32.xlu0 %v5612_v62, %s5149_s29 }
  0x74   : > { %841 = vrot.lane.b32.xlu1 %v5615_v36, %s5149_s29 }
  0x75   : > { %847 = vrot.lane.b32.xlu0 %v5619_v39, %s5149_s29 }
  0x78   : > { %845 = vrot.lane.b32.xlu1 %v5623_v7, %s5149_s29 }
  0x79   : > { %851 = vrot.lane.b32.xlu0 %v5627_v34, %s5149_s29 }
  0x7c   : > { %849 = vrot.lane.b32.xlu1 %v5631_v58, %s5149_s29 }
  0x7d   : > { %855 = vrot.lane.b32.xlu0 %v5635_v37, %s5149_s29 }
  0x80   : > { %853 = vrot.lane.b32.xlu1 %v5639_v29, %s5149_s29 }
  0x81   : > { %859 = vrot.lane.b32.xlu0 %v5643_v35, %s5149_s29 }
  0x84   : > { %857 = vrot.lane.b32.xlu1 %v5647_v24, %s5149_s29 }
  0x85   : > { %863 = vrot.lane.b32.xlu0 %v5651_v33, %s5149_s29 }
  0x86   : > { %v5701_v10 = vpop.permute.xlu0 %707 }
  0x87   : > { %9012 = vst [vmem:[#allocation35_spill] sm:$0xff] %v5701_v10  ;;  %v5737_v10 = vld [vmem:[#allocation2 + $0x172] sm:$0xff] }
  0x88   : > { %861 = vrot.lane.b32.xlu1 %v5655_v22, %s5149_s29  ;;  %9021 = vst [vmem:[#allocation44_spill] sm:$0xff] %v5737_v10 }
  0x89   : > { %867 = vrot.lane.b32.xlu0 %v5659_v28, %s5149_s29 }
  0x8c   : > { %865 = vrot.lane.b32.xlu1 %v5663_v20, %s5149_s29 }
  0x8d   : > { %871 = vrot.lane.b32.xlu0 %v5667_v23, %s5149_s29 }
  0x90   : > { %869 = vrot.lane.b32.xlu1 %v5671_v18, %s5149_s29 }
  0x91   : > { %875 = vrot.lane.b32.xlu0 %v5675_v21, %s5149_s29 }
  0x94   : > { %873 = vrot.lane.b32.xlu1 %v5679_v16, %s5149_s29 }
  0x95   : > { %879 = vrot.lane.b32.xlu0 %v5683_v19, %s5149_s29 }
  0x98   : > { %877 = vrot.lane.b32.xlu1 %v5687_v14, %s5149_s29  ;;  %v5711_v11 = vpop.permute.xlu0 %709 }
  0x99   : > { %883 = vrot.lane.b32.xlu0 %v5691_v17, %s5149_s29  ;;  %9013 = vst [vmem:[#allocation36_spill] sm:$0xff] %v5711_v11 }
  0x9c   : > { %881 = vrot.lane.b32.xlu1 %v5695_v12, %s5149_s29 }
  0x9d   : > { %887 = vrot.lane.b32.xlu0 %v5699_v15, %s5149_s29 }
  0xa0   : > { %885 = vrot.lane.b32.xlu1 %v5705_v13, %s5149_s29 }
  0xa1   : > { %891 = vrot.lane.b32.xlu0 %v5709_v6, %s5149_s29 }
  0xa2   : > { %v5719_v9 = vpop.permute.xlu1 %711 }
  0xa3   : > { %9015 = vst [vmem:[#allocation38_spill] sm:$0xff] %v5719_v9  ;;  %v5723_v5 = vpop.permute.xlu0 %715  ;;  %v388_v9 = vld [vmem:[#allocation2 + $0x18] sm:$0xff] }
  0xa4   : > { %9017 = vst [vmem:[#allocation40_spill] sm:$0xff] %v5723_v5  ;;  %889 = vrot.lane.b32.xlu1 %v5715_v4, %s5149_s29 }
  0xa5   : > { %895 = vrot.lane.b32.xlu0 %v5721_v2, %s5149_s29  ;;  %v5746_v2 = vld [vmem:[#allocation2 + $0x30] sm:$0xff] }
  0xa6   : > { %v5731_v3 = vpop.permute.xlu1 %713  ;;  %9024 = vst [vmem:[#allocation47_spill] sm:$0xff] %v5746_v2 }
  0xa7   : > { %9019 = vst [vmem:[#allocation42_spill] sm:$0xff] %v5731_v3  ;;  %v5733_v11 = vpop.permute.xlu0 %719  ;;  %v389_v3 = vld [vmem:[#allocation2 + $0x20] sm:$0xff] }
  0xa8   : > { %9020 = vst [vmem:[#allocation43_spill] sm:$0xff] %v5733_v11  ;;  %893 = vrot.lane.b32.xlu1 %v5727_v1, %s5149_s29 }
  0xa9   : > { %963 = vrot.lane.b32.xlu0 %v388_v9, %s5150_s30  ;;  %v5755_v9 = vld [vmem:[#allocation2 + $0x48] sm:$0xff] }
  0xaa   : > { %v5740_v5 = vpop.permute.xlu1 %717  ;;  %9027 = vst [vmem:[#allocation50_spill] sm:$0xff] %v5755_v9 }
  0xab   : > { %9022 = vst [vmem:[#allocation45_spill] sm:$0xff] %v5740_v5  ;;  %v5742_v4 = vpop.permute.xlu0 %723  ;;  %v5761_v5 = vld [vmem:[#allocation2 + $0x38] sm:$0xff] }
  0xac   : > { %9023 = vst [vmem:[#allocation46_spill] sm:$0xff] %v5742_v4  ;;  %897 = vrot.lane.b32.xlu1 %v5737_v10, %s5149_s29  ;;  %9029 = vst [vmem:[#allocation52_spill] sm:$0xff] %v5761_v5 }
  0xad   : > { %967 = vrot.lane.b32.xlu0 %v5746_v2, %s5150_s30 }
  0xae   : > { %v5750_v11 = vpop.permute.xlu1 %721 }
  0xaf   : > { %9025 = vst [vmem:[#allocation48_spill] sm:$0xff] %v5750_v11  ;;  %v5752_v1 = vpop.permute.xlu0 %727  ;;  %v5767_v11 = vld [vmem:[#allocation2 + $0x60] sm:$0xff] }
  0xb0   : > { %9026 = vst [vmem:[#allocation49_spill] sm:$0xff] %v5752_v1  ;;  %965 = vrot.lane.b32.xlu1 %v389_v3, %s5150_s30  ;;  %9031 = vst [vmem:[#allocation54_spill] sm:$0xff] %v5767_v11  ;;  %v5773_v1 = vld [vmem:[#allocation2 + $0x50] sm:$0xff] }
  0xb1   : > { %971 = vrot.lane.b32.xlu0 %v5755_v9, %s5150_s30  ;;  %9033 = vst [vmem:[#allocation56_spill] sm:$0xff] %v5773_v1 }
  0xb2   : > { %v5759_v4 = vpop.permute.xlu1 %725 }
  0xb3   : > { %9028 = vst [vmem:[#allocation51_spill] sm:$0xff] %v5759_v4  ;;  %v5763_v10 = vpop.permute.xlu0 %731  ;;  %v5779_v4 = vld [vmem:[#allocation2 + $0x78] sm:$0xff] }
  0xb4   : > { %9030 = vst [vmem:[#allocation53_spill] sm:$0xff] %v5763_v10  ;;  %969 = vrot.lane.b32.xlu1 %v5761_v5, %s5150_s30  ;;  %9035 = vst [vmem:[#allocation58_spill] sm:$0xff] %v5779_v4  ;;  %v5785_v5 = vld [vmem:[#allocation2 + $0x68] sm:$0xff] }
  0xb5   : > { %975 = vrot.lane.b32.xlu0 %v5767_v11, %s5150_s30  ;;  %9037 = vst [vmem:[#allocation60_spill] sm:$0xff] %v5785_v5 }
  0xb6   : > { %v5771_v3 = vpop.permute.xlu1 %729 }
  0xb7   : > { %9032 = vst [vmem:[#allocation55_spill] sm:$0xff] %v5771_v3  ;;  %v5775_v2 = vpop.permute.xlu0 %735  ;;  %v5791_v3 = vld [vmem:[#allocation2 + $0x90] sm:$0xff] }
  0xb8   : > { %9034 = vst [vmem:[#allocation57_spill] sm:$0xff] %v5775_v2  ;;  %973 = vrot.lane.b32.xlu1 %v5773_v1, %s5150_s30  ;;  %9039 = vst [vmem:[#allocation62_spill] sm:$0xff] %v5791_v3  ;;  %v5797_v1 = vld [vmem:[#allocation2 + $0x80] sm:$0xff] }
  0xb9   : > { %979 = vrot.lane.b32.xlu0 %v5779_v4, %s5150_s30  ;;  %9041 = vst [vmem:[#allocation64_spill] sm:$0xff] %v5797_v1 }
  0xba   : > { %v5783_v10 = vpop.permute.xlu1 %733 }
  0xbb   : > { %9036 = vst [vmem:[#allocation59_spill] sm:$0xff] %v5783_v10  ;;  %v5787_v9 = vpop.permute.xlu0 %739  ;;  %v5803_v10 = vld [vmem:[#allocation2 + $0xa8] sm:$0xff] }
  0xbc   : > { %9038 = vst [vmem:[#allocation61_spill] sm:$0xff] %v5787_v9  ;;  %977 = vrot.lane.b32.xlu1 %v5785_v5, %s5150_s30  ;;  %9043 = vst [vmem:[#allocation66_spill] sm:$0xff] %v5803_v10  ;;  %v5809_v5 = vld [vmem:[#allocation2 + $0x98] sm:$0xff] }
  0xbd   : > { %983 = vrot.lane.b32.xlu0 %v5791_v3, %s5150_s30  ;;  %9045 = vst [vmem:[#allocation68_spill] sm:$0xff] %v5809_v5 }
  0xbe   : > { %v5795_v2 = vpop.permute.xlu1 %737 }
  0xbf   : > { %9040 = vst [vmem:[#allocation63_spill] sm:$0xff] %v5795_v2  ;;  %v5799_v11 = vpop.permute.xlu0 %743  ;;  %v5815_v2 = vld [vmem:[#allocation2 + $0xc0] sm:$0xff] }
  0xc0   : > { %9042 = vst [vmem:[#allocation65_spill] sm:$0xff] %v5799_v11  ;;  %981 = vrot.lane.b32.xlu1 %v5797_v1, %s5150_s30  ;;  %9047 = vst [vmem:[#allocation70_spill] sm:$0xff] %v5815_v2  ;;  %v5821_v1 = vld [vmem:[#allocation2 + $0xb0] sm:$0xff] }
  0xc1   : > { %987 = vrot.lane.b32.xlu0 %v5803_v10, %s5150_s30  ;;  %9049 = vst [vmem:[#allocation72_spill] sm:$0xff] %v5821_v1 }
  0xc2   : > { %v5807_v9 = vpop.permute.xlu1 %741 }
  0xc3   : > { %9044 = vst [vmem:[#allocation67_spill] sm:$0xff] %v5807_v9  ;;  %v5811_v4 = vpop.permute.xlu0 %747  ;;  %v5827_v9 = vld [vmem:[#allocation2 + $0xd8] sm:$0xff] }
  0xc4   : > { %9046 = vst [vmem:[#allocation69_spill] sm:$0xff] %v5811_v4  ;;  %985 = vrot.lane.b32.xlu1 %v5809_v5, %s5150_s30  ;;  %9051 = vst [vmem:[#allocation74_spill] sm:$0xff] %v5827_v9  ;;  %v5833_v5 = vld [vmem:[#allocation2 + $0xc8] sm:$0xff] }
  0xc5   : > { %991 = vrot.lane.b32.xlu0 %v5815_v2, %s5150_s30  ;;  %9053 = vst [vmem:[#allocation76_spill] sm:$0xff] %v5833_v5 }
  0xc6   : > { %v5819_v11 = vpop.permute.xlu1 %745 }
  0xc7   : > { %9048 = vst [vmem:[#allocation71_spill] sm:$0xff] %v5819_v11  ;;  %v5823_v3 = vpop.permute.xlu0 %751  ;;  %v5839_v11 = vld [vmem:[#allocation2 + $0xf0] sm:$0xff] }
  0xc8   : > { %9050 = vst [vmem:[#allocation73_spill] sm:$0xff] %v5823_v3  ;;  %989 = vrot.lane.b32.xlu1 %v5821_v1, %s5150_s30  ;;  %9055 = vst [vmem:[#allocation78_spill] sm:$0xff] %v5839_v11  ;;  %v5845_v1 = vld [vmem:[#allocation2 + $0xe0] sm:$0xff] }
  0xc9   : > { %995 = vrot.lane.b32.xlu0 %v5827_v9, %s5150_s30  ;;  %9057 = vst [vmem:[#allocation80_spill] sm:$0xff] %v5845_v1 }
  0xca   : > { %v5831_v4 = vpop.permute.xlu1 %749 }
  0xcb   : > { %9052 = vst [vmem:[#allocation75_spill] sm:$0xff] %v5831_v4  ;;  %v5835_v10 = vpop.permute.xlu0 %755  ;;  %v5851_v4 = vld [vmem:[#allocation2 + $0x108] sm:$0xff] }
  0xcc   : > { %9054 = vst [vmem:[#allocation77_spill] sm:$0xff] %v5835_v10  ;;  %993 = vrot.lane.b32.xlu1 %v5833_v5, %s5150_s30  ;;  %9059 = vst [vmem:[#allocation82_spill] sm:$0xff] %v5851_v4  ;;  %v5857_v5 = vld [vmem:[#allocation2 + $0xf8] sm:$0xff] }
  0xcd   : > { %999 = vrot.lane.b32.xlu0 %v5839_v11, %s5150_s30  ;;  %9061 = vst [vmem:[#allocation84_spill] sm:$0xff] %v5857_v5 }
  0xce   : > { %v5843_v3 = vpop.permute.xlu1 %753 }
  0xcf   : > { %9056 = vst [vmem:[#allocation79_spill] sm:$0xff] %v5843_v3  ;;  %v5847_v2 = vpop.permute.xlu0 %759  ;;  %v5863_v3 = vld [vmem:[#allocation2 + $0x120] sm:$0xff] }
  0xd0   : > { %9058 = vst [vmem:[#allocation81_spill] sm:$0xff] %v5847_v2  ;;  %997 = vrot.lane.b32.xlu1 %v5845_v1, %s5150_s30  ;;  %9063 = vst [vmem:[#allocation86_spill] sm:$0xff] %v5863_v3  ;;  %v5869_v1 = vld [vmem:[#allocation2 + $0x110] sm:$0xff] }
  0xd1   : > { %1003 = vrot.lane.b32.xlu0 %v5851_v4, %s5150_s30  ;;  %9065 = vst [vmem:[#allocation88_spill] sm:$0xff] %v5869_v1 }
  0xd2   : > { %v5855_v10 = vpop.permute.xlu1 %757 }
  0xd3   : > { %9060 = vst [vmem:[#allocation83_spill] sm:$0xff] %v5855_v10  ;;  %v5859_v9 = vpop.permute.xlu0 %763  ;;  %v5875_v10 = vld [vmem:[#allocation2 + $0x138] sm:$0xff] }
  0xd4   : > { %9062 = vst [vmem:[#allocation85_spill] sm:$0xff] %v5859_v9  ;;  %1001 = vrot.lane.b32.xlu1 %v5857_v5, %s5150_s30  ;;  %9067 = vst [vmem:[#allocation90_spill] sm:$0xff] %v5875_v10  ;;  %v5881_v5 = vld [vmem:[#allocation2 + $0x128] sm:$0xff] }
  0xd5   : > { %1007 = vrot.lane.b32.xlu0 %v5863_v3, %s5150_s30  ;;  %9069 = vst [vmem:[#allocation92_spill] sm:$0xff] %v5881_v5 }
  0xd6   : > { %v5867_v2 = vpop.permute.xlu1 %761 }
  0xd7   : > { %9064 = vst [vmem:[#allocation87_spill] sm:$0xff] %v5867_v2  ;;  %v5871_v11 = vpop.permute.xlu0 %767  ;;  %v5887_v2 = vld [vmem:[#allocation2 + $0x150] sm:$0xff] }
  0xd8   : > { %9066 = vst [vmem:[#allocation89_spill] sm:$0xff] %v5871_v11  ;;  %1005 = vrot.lane.b32.xlu1 %v5869_v1, %s5150_s30  ;;  %9071 = vst [vmem:[#allocation94_spill] sm:$0xff] %v5887_v2  ;;  %v5893_v1 = vld [vmem:[#allocation2 + $0x140] sm:$0xff] }
  0xd9   : > { %1011 = vrot.lane.b32.xlu0 %v5875_v10, %s5150_s30  ;;  %9073 = vst [vmem:[#allocation96_spill] sm:$0xff] %v5893_v1  ;;  %v5907_v10 = vld [vmem:[#allocation2 + $0x180] sm:$0xff] }
  0xda   : > { %v5879_v9 = vpop.permute.xlu1 %765 }
  0xdb   : > { %9068 = vst [vmem:[#allocation91_spill] sm:$0xff] %v5879_v9  ;;  %v5883_v4 = vpop.permute.xlu0 %835  ;;  %v5899_v9 = vld [vmem:[#allocation2 + $0x168] sm:$0xff] }
  0xdc   : > { %9070 = vst [vmem:[#allocation93_spill] sm:$0xff] %v5883_v4  ;;  %1009 = vrot.lane.b32.xlu1 %v5881_v5, %s5150_s30  ;;  %v5905_v5 = vld [vmem:[#allocation2 + $0x158] sm:$0xff] }
  0xdd   : > { %1015 = vrot.lane.b32.xlu0 %v5887_v2, %s5150_s30  ;;  %9076 = vst [vmem:[#allocation99_spill] sm:$0xff] %v5905_v5 }
  0xde   : > { %v5891_v11 = vpop.permute.xlu1 %769 }
  0xdf   : > { %9072 = vst [vmem:[#allocation95_spill] sm:$0xff] %v5891_v11  ;;  %v5895_v3 = vpop.permute.xlu0 %839 }
  0xe0   : > { %9074 = vst [vmem:[#allocation97_spill] sm:$0xff] %v5895_v3  ;;  %1013 = vrot.lane.b32.xlu1 %v5893_v1, %s5150_s30  ;;  %v5917_v3 = vld [vmem:[#allocation2 + $0x170] sm:$0xff] }
  0xe1   : > { %1019 = vrot.lane.b32.xlu0 %v5899_v9, %s5150_s30 }
  0xe2   : > { %v5903_v4 = vpop.permute.xlu1 %837 }
  0xe3   : > { %9075 = vst [vmem:[#allocation98_spill] sm:$0xff] %v5903_v4  ;;  %v5909_v2 = vpop.permute.xlu0 %843  ;;  %v5923_v4 = vld [vmem:[#allocation2 + $0x188] sm:$0xff] }
  0xe4   : > { %9077 = vst [vmem:[#allocation100_spill] sm:$0xff] %v5909_v2  ;;  %1017 = vrot.lane.b32.xlu1 %v5905_v5, %s5150_s30 }
  0xe5   : > { %1023 = vrot.lane.b32.xlu0 %v5907_v10, %s5150_s30 }
  0xe6   : > { %v5915_v11 = vpop.permute.xlu1 %841 }
  0xe7   : > { %9078 = vst [vmem:[#allocation101_spill] sm:$0xff] %v5915_v11  ;;  %v5919_v1 = vpop.permute.xlu0 %847 }
  0xe8   : > { %9079 = vst [vmem:[#allocation102_spill] sm:$0xff] %v5919_v1  ;;  %1021 = vrot.lane.b32.xlu1 %v5917_v3, %s5150_s30 }
  0xe9   : > { %1091 = vrot.lane.b32.xlu0 %v5431_v25, %s5151_s7 }
  0xea   : > { %v5927_v2 = vpop.permute.xlu1 %845 }
  0xeb   : > { %9080 = vst [vmem:[#allocation103_spill] sm:$0xff] %v5927_v2  ;;  %v5929_v5 = vpop.permute.xlu0 %851 }
  0xec   : > { %9081 = vst [vmem:[#allocation104_spill] sm:$0xff] %v5929_v5  ;;  %1025 = vrot.lane.b32.xlu1 %v5923_v4, %s5150_s30 }
  0xed   : > { %1095 = vrot.lane.b32.xlu0 %v5433_v26, %s5151_s7 }
  0xee   : > { %v5935_v1 = vpop.permute.xlu1 %849 }
  0xef   : > { %v5937_v11 = vpop.permute.xlu0 %855 }
  0xf0   : > { %1093 = vrot.lane.b32.xlu1 %v5443_v27, %s5151_s7 }
  0xf1   : > { %1099 = vrot.lane.b32.xlu0 %v5457_v30, %s5151_s7 }
  0xf2   : > { %v5943_v25 = vpop.permute.xlu1 %853 }
  0xf3   : > { %v5945_v2 = vpop.permute.xlu0 %859 }
  0xf4   : > { %9082 = vst [vmem:[#allocation105_spill] sm:$0xff] %v5945_v2  ;;  %1097 = vrot.lane.b32.xlu1 %v5461_v31, %s5151_s7 }
  0xf5   : > { %1103 = vrot.lane.b32.xlu0 %v5465_v32, %s5151_s7 }
  0xf6   : > { %v5951_v26 = vpop.permute.xlu1 %857 }
  0xf7   : > { %9083 = vst [vmem:[#allocation106_spill] sm:$0xff] %v5951_v26  ;;  %v5953_v5 = vpop.permute.xlu0 %863  ;;  %v5096_v26 = vld [vmem:[#allocation2 + $0x30] sm:$0xff] }
  0xf8   : > { %9084 = vst [vmem:[#allocation107_spill] sm:$0xff] %v5953_v5  ;;  %1101 = vrot.lane.b32.xlu1 %v5490_v38, %s5151_s7  ;;  %v656_v5 = vld [vmem:[#allocation2 + $0xca] sm:$0xff] }
  0xf9   : > { %1107 = vrot.lane.b32.xlu0 %v5503_v40, %s5151_s7 }
  0xfa   : > { %v5959_v27 = vpop.permute.xlu1 %861 }
  0xfb   : > { %9085 = vst [vmem:[#allocation108_spill] sm:$0xff] %v5959_v27  ;;  %v5961_v30 = vpop.permute.xlu0 %867  ;;  %v662_v27 = vld [vmem:[#allocation2 + $0x112] sm:$0xff] }
  0xfc   : > { %9086 = vst [vmem:[#allocation109_spill] sm:$0xff] %v5961_v30  ;;  %1105 = vrot.lane.b32.xlu1 %v5507_v41, %s5151_s7 }
  0xfd   : > { %1111 = vrot.lane.b32.xlu0 %v5511_v42, %s5151_s7 }
  0xfe   : > { %v5967_v31 = vpop.permute.xlu1 %865 }
  0xff   : > { %9087 = vst [vmem:[#allocation110_spill] sm:$0xff] %v5967_v31  ;;  %v5969_v32 = vpop.permute.xlu0 %871  ;;  %v644_v31 = vld [vmem:[#allocation2 + $0x3a] sm:$0xff] }
 0x100   : > { %9088 = vst [vmem:[#allocation111_spill] sm:$0xff] %v5969_v32  ;;  %1109 = vrot.lane.b32.xlu1 %v5515_v43, %s5151_s7 }
 0x101   : > { %1115 = vrot.lane.b32.xlu0 %v5519_v44, %s5151_s7 }
 0x102   : > { %v5975_v38 = vpop.permute.xlu1 %869 }
 0x103   : > { %9089 = vst [vmem:[#allocation112_spill] sm:$0xff] %v5975_v38  ;;  %v5977_v40 = vpop.permute.xlu0 %875  ;;  %v619_v38 = vld [vmem:[#allocation2 + $0x91] sm:$0xff] }
 0x104   : > { %9090 = vst [vmem:[#allocation113_spill] sm:$0xff] %v5977_v40  ;;  %1113 = vrot.lane.b32.xlu1 %v5523_v45, %s5151_s7 }
 0x105   : > { %1119 = vrot.lane.b32.xlu0 %v5527_v46, %s5151_s7 }
 0x106   : > { %v5983_v41 = vpop.permute.xlu1 %873 }
 0x107   : > { %9091 = vst [vmem:[#allocation114_spill] sm:$0xff] %v5983_v41  ;;  %v5985_v42 = vpop.permute.xlu0 %879 }
 0x108   : > { %9092 = vst [vmem:[#allocation115_spill] sm:$0xff] %v5985_v42  ;;  %1117 = vrot.lane.b32.xlu1 %v5531_v47, %s5151_s7 }
 0x109   : > { %1123 = vrot.lane.b32.xlu0 %v5535_v48, %s5151_s7 }
 0x10a   : > { %v5991_v43 = vpop.permute.xlu1 %877 }
 0x10b   : > { %9093 = vst [vmem:[#allocation116_spill] sm:$0xff] %v5991_v43  ;;  %v5993_v44 = vpop.permute.xlu0 %883 }
 0x10c   : > { %9094 = vst [vmem:[#allocation117_spill] sm:$0xff] %v5993_v44  ;;  %1121 = vrot.lane.b32.xlu1 %v5539_v49, %s5151_s7  ;;  %v9135_v44 = vld [vmem:[#allocation56_spill] sm:$0xff] }
 0x10d   : > { %1127 = vrot.lane.b32.xlu0 %v5543_v50, %s5151_s7 }
 0x10e   : > { %v5999_v45 = vpop.permute.xlu1 %881 }
 0x10f   : > { %9095 = vst [vmem:[#allocation118_spill] sm:$0xff] %v5999_v45  ;;  %v6001_v46 = vpop.permute.xlu0 %887 }
 0x110   : > { %9096 = vst [vmem:[#allocation119_spill] sm:$0xff] %v6001_v46  ;;  %1125 = vrot.lane.b32.xlu1 %v5547_v51, %s5151_s7 }
 0x111   : > { %1131 = vrot.lane.b32.xlu0 %v5551_v52, %s5151_s7 }
 0x112   : > { %v6007_v47 = vpop.permute.xlu1 %885 }
 0x113   : > { %9097 = vst [vmem:[#allocation120_spill] sm:$0xff] %v6007_v47  ;;  %v6009_v48 = vpop.permute.xlu0 %891  ;;  %v9133_v47 = vld [vmem:[#allocation54_spill] sm:$0xff] }
 0x114   : > { %9098 = vst [vmem:[#allocation121_spill] sm:$0xff] %v6009_v48  ;;  %1129 = vrot.lane.b32.xlu1 %v5555_v53, %s5151_s7 }
 0x115   : > { %1135 = vrot.lane.b32.xlu0 %v5559_v54, %s5151_s7 }
 0x116   : > { %v6015_v49 = vpop.permute.xlu1 %889 }
 0x117   : > { %9099 = vst [vmem:[#allocation122_spill] sm:$0xff] %v6015_v49  ;;  %v6017_v50 = vpop.permute.xlu0 %895 }
 0x118   : > { %9100 = vst [vmem:[#allocation123_spill] sm:$0xff] %v6017_v50  ;;  %1133 = vrot.lane.b32.xlu1 %v5563_v55, %s5151_s7 }
 0x119   : > { %1139 = vrot.lane.b32.xlu0 %v5567_v56, %s5151_s7  ;;  %v6041_v56 = vld [vmem:[#allocation2 + $0x181] sm:$0xff] }
 0x11a   : > { %v6023_v51 = vpop.permute.xlu1 %893 }
 0x11b   : > { %9101 = vst [vmem:[#allocation124_spill] sm:$0xff] %v6023_v51  ;;  %v6025_v52 = vpop.permute.xlu0 %963 }
 0x11c   : > { %1137 = vrot.lane.b32.xlu1 %v5571_v57, %s5151_s7 }
 0x11d   : > { %1143 = vrot.lane.b32.xlu0 %v5580_v59, %s5151_s7 }
 0x11e   : > { %v6031_v53 = vpop.permute.xlu1 %897 }
 0x11f   : > { %9102 = vst [vmem:[#allocation125_spill] sm:$0xff] %v6031_v53  ;;  %v6033_v54 = vpop.permute.xlu0 %967 }
 0x120   : > { %1141 = vrot.lane.b32.xlu1 %v5584_v60, %s5151_s7  ;;  %v6055_v60 = vld [vmem:[#allocation2 + $0x189] sm:$0xff] }
 0x121   : > { %1147 = vrot.lane.b32.xlu0 %v5588_v61, %s5151_s7 }
 0x122   : > { %v6039_v55 = vpop.permute.xlu1 %965 }
 0x123   : > { %v6043_v50 = vpop.permute.xlu0 %971 }
 0x124   : > { %1145 = vrot.lane.b32.xlu1 %v5597_v63, %s5151_s7 }
 0x125   : > { %1151 = vrot.lane.b32.xlu0 %v6041_v56, %s5151_s7 }
 0x126   : > { %v6049_v57 = vpop.permute.xlu1 %969 }
 0x127   : > { %v6051_v59 = vpop.permute.xlu0 %975 }
 0x128   : > { %1149 = vrot.lane.b32.xlu1 %v5603_v8, %s5151_s7 }
 0x129   : > { %1219 = vrot.lane.b32.xlu0 %v5606_v0, %s5152_s8 }
 0x12a   : > { %v6059_v61 = vpop.permute.xlu1 %973 }
 0x12b   : > { %v6061_v53 = vpop.permute.xlu0 %979 }
 0x12c   : > { %1153 = vrot.lane.b32.xlu1 %v6055_v60, %s5151_s7 }
 0x12d   : > { %1223 = vrot.lane.b32.xlu0 %v5612_v62, %s5152_s8 }
 0x12e   : > { %v6067_v63 = vpop.permute.xlu1 %977 }
 0x12f   : > { %v6069_v51 = vpop.permute.xlu0 %983 }
 0x130   : > { %9103 = vst [vmem:[#allocation126_spill] sm:$0xff] %v6069_v51  ;;  %1221 = vrot.lane.b32.xlu1 %v5615_v36, %s5152_s8 }
 0x131   : > { %1227 = vrot.lane.b32.xlu0 %v5619_v39, %s5152_s8 }
 0x132   : > { %v6075_v0 = vpop.permute.xlu1 %981 }
 0x133   : > { %v6077_v8 = vpop.permute.xlu0 %987 }
 0x134   : > { %9104 = vst [vmem:[#allocation127_spill] sm:$0xff] %v6077_v8  ;;  %1225 = vrot.lane.b32.xlu1 %v5623_v7, %s5152_s8 }
 0x135   : > { %1231 = vrot.lane.b32.xlu0 %v5627_v34, %s5152_s8 }
 0x136   : > { %v6083_v62 = vpop.permute.xlu1 %985 }
 0x137   : > { %9105 = vst [vmem:[#allocation128_spill] sm:$0xff] %v6083_v62  ;;  %v6085_v48 = vpop.permute.xlu0 %991 }
 0x138   : > { %9106 = vst [vmem:[#allocation129_spill] sm:$0xff] %v6085_v48  ;;  %1229 = vrot.lane.b32.xlu1 %v5631_v58, %s5152_s8 }
 0x139   : > { %1235 = vrot.lane.b32.xlu0 %v5635_v37, %s5152_s8 }
 0x13a   : > { %v6091_v36 = vpop.permute.xlu1 %989 }
 0x13b   : > { %9107 = vst [vmem:[#allocation130_spill] sm:$0xff] %v6091_v36  ;;  %v6093_v39 = vpop.permute.xlu0 %995  ;;  %v660_v36 = vld [vmem:[#allocation2 + $0xfa] sm:$0xff] }
 0x13c   : > { %9108 = vst [vmem:[#allocation131_spill] sm:$0xff] %v6093_v39  ;;  %1233 = vrot.lane.b32.xlu1 %v5639_v29, %s5152_s8 }
 0x13d   : > { %1239 = vrot.lane.b32.xlu0 %v5643_v35, %s5152_s8 }
 0x13e   : > { %v6099_v34 = vpop.permute.xlu1 %993 }
 0x13f   : > { %9109 = vst [vmem:[#allocation132_spill] sm:$0xff] %v6099_v34  ;;  %v6101_v7 = vpop.permute.xlu0 %999  ;;  %v623_v34 = vld [vmem:[#allocation2 + $0xc1] sm:$0xff] }
 0x140   : > { %9110 = vst [vmem:[#allocation133_spill] sm:$0xff] %v6101_v7  ;;  %1237 = vrot.lane.b32.xlu1 %v5647_v24, %s5152_s8  ;;  %v9151_v7 = vld [vmem:[#allocation72_spill] sm:$0xff] }
 0x141   : > { %1243 = vrot.lane.b32.xlu0 %v5651_v33, %s5152_s8 }
 0x142   : > { %v6107_v37 = vpop.permute.xlu1 %997 }
 0x143   : > { %9111 = vst [vmem:[#allocation134_spill] sm:$0xff] %v6107_v37  ;;  %v6109_v58 = vpop.permute.xlu0 %1003  ;;  %v617_v37 = vld [vmem:[#allocation2 + $0x79] sm:$0xff] }
 0x144   : > { %9112 = vst [vmem:[#allocation135_spill] sm:$0xff] %v6109_v58  ;;  %1241 = vrot.lane.b32.xlu1 %v5655_v22, %s5152_s8  ;;  %v9147_v58 = vld [vmem:[#allocation68_spill] sm:$0xff] }
 0x145   : > { %1247 = vrot.lane.b32.xlu0 %v5659_v28, %s5152_s8 }
 0x146   : > { %v6115_v29 = vpop.permute.xlu1 %1001 }
 0x147   : > { %9113 = vst [vmem:[#allocation136_spill] sm:$0xff] %v6115_v29  ;;  %v6117_v35 = vpop.permute.xlu0 %1007 }
 0x148   : > { %9114 = vst [vmem:[#allocation137_spill] sm:$0xff] %v6117_v35  ;;  %1245 = vrot.lane.b32.xlu1 %v5663_v20, %s5152_s8  ;;  %v9139_v35 = vld [vmem:[#allocation60_spill] sm:$0xff] }
 0x149   : > { %1251 = vrot.lane.b32.xlu0 %v5667_v23, %s5152_s8 }
 0x14a   : > { %v6123_v24 = vpop.permute.xlu1 %1005 }
 0x14b   : > { %9115 = vst [vmem:[#allocation138_spill] sm:$0xff] %v6123_v24  ;;  %v6125_v33 = vpop.permute.xlu0 %1011  ;;  %v9143_v24 = vld [vmem:[#allocation64_spill] sm:$0xff] }
 0x14c   : > { %9116 = vst [vmem:[#allocation139_spill] sm:$0xff] %v6125_v33  ;;  %1249 = vrot.lane.b32.xlu1 %v5671_v18, %s5152_s8 }
 0x14d   : > { %1255 = vrot.lane.b32.xlu0 %v5675_v21, %s5152_s8 }
 0x14e   : > { %v6131_v22 = vpop.permute.xlu1 %1009 }
 0x14f   : > { %9117 = vst [vmem:[#allocation140_spill] sm:$0xff] %v6131_v22  ;;  %v6133_v28 = vpop.permute.xlu0 %1015  ;;  %v9136_v22 = vld [vmem:[#allocation58_spill] sm:$0xff] }
 0x150   : > { %9118 = vst [vmem:[#allocation141_spill] sm:$0xff] %v6133_v28  ;;  %1253 = vrot.lane.b32.xlu1 %v5679_v16, %s5152_s8 }
 0x151   : > { %1259 = vrot.lane.b32.xlu0 %v5683_v19, %s5152_s8 }
 0x152   : > { %v6139_v20 = vpop.permute.xlu1 %1013 }
 0x153   : > { %9119 = vst [vmem:[#allocation142_spill] sm:$0xff] %v6139_v20  ;;  %v6141_v23 = vpop.permute.xlu0 %1019 }
 0x154   : > { %9120 = vst [vmem:[#allocation143_spill] sm:$0xff] %v6141_v23  ;;  %1257 = vrot.lane.b32.xlu1 %v5687_v14, %s5152_s8 }
 0x155   : > { %1263 = vrot.lane.b32.xlu0 %v5691_v17, %s5152_s8 }
 0x156   : > { %v6147_v18 = vpop.permute.xlu1 %1017 }
 0x157   : > { %9121 = vst [vmem:[#allocation144_spill] sm:$0xff] %v6147_v18  ;;  %v6149_v21 = vpop.permute.xlu0 %1023  ;;  %v9129_v18 = vld [vmem:[#allocation47_spill] sm:$0xff] }
 0x158   : > { %9122 = vst [vmem:[#allocation145_spill] sm:$0xff] %v6149_v21  ;;  %1261 = vrot.lane.b32.xlu1 %v5695_v12, %s5152_s8  ;;  %v9125_v21 = vld [vmem:[#allocation37_spill] sm:$0xff]  ;;  %v9126_v12 = vld [vmem:[#allocation39_spill] sm:$0xff] }
 0x159   : > { %1267 = vrot.lane.b32.xlu0 %v5699_v15, %s5152_s8 }
 0x15a   : > { %v6155_v16 = vpop.permute.xlu1 %1021 }
 0x15b   : > { %9123 = vst [vmem:[#allocation146_spill] sm:$0xff] %v6155_v16  ;;  %v6157_v19 = vpop.permute.xlu0 %1091  ;;  %v6173_v16 = vld [vmem:[#allocation2 + $0x182] sm:$0xff] }
 0x15c   : > { %1265 = vrot.lane.b32.xlu1 %v5705_v13, %s5152_s8  ;;  %v9127_v13 = vld [vmem:[#allocation41_spill] sm:$0xff] }
 0x15d   : > { %1271 = vrot.lane.b32.xlu0 %v5709_v6, %s5152_s8 }
 0x15e   : > { %v6163_v14 = vpop.permute.xlu1 %1025 }
 0x15f   : > { %9124 = vst [vmem:[#allocation147_spill] sm:$0xff] %v6163_v14  ;;  %v6165_v17 = vpop.permute.xlu0 %1095 }
 0x160   : > { %1269 = vrot.lane.b32.xlu1 %v9125_v21, %s5152_s8  ;;  %v9128_v21 = vld [vmem:[#allocation44_spill] sm:$0xff] }
 0x161   : > { %1275 = vrot.lane.b32.xlu0 %v9126_v12, %s5152_s8  ;;  %v6187_v12 = vld [vmem:[#allocation2 + $0x18a] sm:$0xff] }
 0x162   : > { %v6171_v15 = vpop.permute.xlu1 %1093 }
 0x163   : > { %v6175_v23 = vpop.permute.xlu0 %1099 }
 0x164   : > { %1273 = vrot.lane.b32.xlu1 %v9127_v13, %s5152_s8  ;;  %v9130_v13 = vld [vmem:[#allocation50_spill] sm:$0xff] }
 0x165   : > { %1279 = vrot.lane.b32.xlu0 %v6173_v16, %s5152_s8 }
 0x166   : > { %v6181_v6 = vpop.permute.xlu1 %1097 }
 0x167   : > { %v6183_v14 = vpop.permute.xlu0 %1103 }
 0x168   : > { %1277 = vrot.lane.b32.xlu1 %v9128_v21, %s5152_s8  ;;  %v9132_v21 = vld [vmem:[#allocation52_spill] sm:$0xff] }
 0x169   : > { %1347 = vrot.lane.b32.xlu0 %v9129_v18, %s5153_s9 }
 0x16a   : > { %v6191_v49 = vpop.permute.xlu1 %1101 }
 0x16b   : > { %v6193_v28 = vpop.permute.xlu0 %1107 }
 0x16c   : > { %1281 = vrot.lane.b32.xlu1 %v6187_v12, %s5152_s8 }
 0x16d   : > { %1351 = vrot.lane.b32.xlu0 %v9130_v13, %s5153_s9 }
 0x16e   : > { %v6199_v46 = vpop.permute.xlu1 %1105 }
 0x16f   : > { %v6201_v20 = vpop.permute.xlu0 %1111 }
 0x170   : > { %9131 = vst [vmem:[#allocation37_spill] sm:$0xff] %v6201_v20  ;;  %1349 = vrot.lane.b32.xlu1 %v9132_v21, %s5153_s9  ;;  %v9140_v21 = vld [vmem:[#allocation62_spill] sm:$0xff] }
 0x171   : > { %1355 = vrot.lane.b32.xlu0 %v9133_v47, %s5153_s9 }
 0x172   : > { %v6207_v18 = vpop.permute.xlu1 %1109 }
 0x173   : > { %v6209_v33 = vpop.permute.xlu0 %1115 }
 0x174   : > { %9134 = vst [vmem:[#allocation39_spill] sm:$0xff] %v6209_v33  ;;  %1353 = vrot.lane.b32.xlu1 %v9135_v44, %s5153_s9  ;;  %v9144_v44 = vld [vmem:[#allocation66_spill] sm:$0xff] }
 0x175   : > { %1359 = vrot.lane.b32.xlu0 %v9136_v22, %s5153_s9 }
 0x176   : > { %v6215_v13 = vpop.permute.xlu1 %1113 }
 0x177   : > { %9137 = vst [vmem:[#allocation41_spill] sm:$0xff] %v6215_v13  ;;  %v6217_v45 = vpop.permute.xlu0 %1119 }
 0x178   : > { %9138 = vst [vmem:[#allocation44_spill] sm:$0xff] %v6217_v45  ;;  %1357 = vrot.lane.b32.xlu1 %v9139_v35, %s5153_s9  ;;  %v9148_v35 = vld [vmem:[#allocation70_spill] sm:$0xff] }
 0x179   : > { %1363 = vrot.lane.b32.xlu0 %v9140_v21, %s5153_s9 }
 0x17a   : > { %v6223_v47 = vpop.permute.xlu1 %1117 }
 0x17b   : > { %9141 = vst [vmem:[#allocation47_spill] sm:$0xff] %v6223_v47  ;;  %v6225_v42 = vpop.permute.xlu0 %1123  ;;  %v658_v47 = vld [vmem:[#allocation2 + $0xe2] sm:$0xff] }
 0x17c   : > { %9142 = vst [vmem:[#allocation50_spill] sm:$0xff] %v6225_v42  ;;  %1361 = vrot.lane.b32.xlu1 %v9143_v24, %s5153_s9  ;;  %v9152_v24 = vld [vmem:[#allocation74_spill] sm:$0xff] }
 0x17d   : > { %1367 = vrot.lane.b32.xlu0 %v9144_v44, %s5153_s9 }
 0x17e   : > { %v6231_v22 = vpop.permute.xlu1 %1121 }
 0x17f   : > { %9145 = vst [vmem:[#allocation52_spill] sm:$0xff] %v6231_v22  ;;  %v6233_v43 = vpop.permute.xlu0 %1127  ;;  %v621_v22 = vld [vmem:[#allocation2 + $0xa9] sm:$0xff] }
 0x180   : > { %9146 = vst [vmem:[#allocation54_spill] sm:$0xff] %v6233_v43  ;;  %1365 = vrot.lane.b32.xlu1 %v9147_v58, %s5153_s9  ;;  %v9155_v43 = vld [vmem:[#allocation76_spill] sm:$0xff]  ;;  %v9156_v58 = vld [vmem:[#allocation78_spill] sm:$0xff] }
 0x181   : > { %1371 = vrot.lane.b32.xlu0 %v9148_v35, %s5153_s9 }
 0x182   : > { %v6239_v21 = vpop.permute.xlu1 %1125 }
 0x183   : > { %9149 = vst [vmem:[#allocation56_spill] sm:$0xff] %v6239_v21  ;;  %v6241_v29 = vpop.permute.xlu0 %1131  ;;  %v615_v21 = vld [vmem:[#allocation2 + $0x61] sm:$0xff] }
 0x184   : > { %9150 = vst [vmem:[#allocation58_spill] sm:$0xff] %v6241_v29  ;;  %1369 = vrot.lane.b32.xlu1 %v9151_v7, %s5153_s9  ;;  %v9159_v29 = vld [vmem:[#allocation80_spill] sm:$0xff]  ;;  %v9160_v7 = vld [vmem:[#allocation82_spill] sm:$0xff] }
 0x185   : > { %1375 = vrot.lane.b32.xlu0 %v9152_v24, %s5153_s9 }
 0x186   : > { %v6247_v44 = vpop.permute.xlu1 %1129 }
 0x187   : > { %9153 = vst [vmem:[#allocation60_spill] sm:$0xff] %v6247_v44  ;;  %v6249_v41 = vpop.permute.xlu0 %1135 }
 0x188   : > { %9154 = vst [vmem:[#allocation62_spill] sm:$0xff] %v6249_v41  ;;  %1373 = vrot.lane.b32.xlu1 %v9155_v43, %s5153_s9  ;;  %v9163_v41 = vld [vmem:[#allocation84_spill] sm:$0xff]  ;;  %v9164_v43 = vld [vmem:[#allocation86_spill] sm:$0xff] }
 0x189   : > { %1379 = vrot.lane.b32.xlu0 %v9156_v58, %s5153_s9 }
 0x18a   : > { %v6255_v35 = vpop.permute.xlu1 %1133 }
 0x18b   : > { %9157 = vst [vmem:[#allocation64_spill] sm:$0xff] %v6255_v35  ;;  %v6257_v40 = vpop.permute.xlu0 %1139 }
 0x18c   : > { %9158 = vst [vmem:[#allocation66_spill] sm:$0xff] %v6257_v40  ;;  %1377 = vrot.lane.b32.xlu1 %v9159_v29, %s5153_s9  ;;  %v9167_v40 = vld [vmem:[#allocation88_spill] sm:$0xff]  ;;  %v9168_v29 = vld [vmem:[#allocation90_spill] sm:$0xff] }
 0x18d   : > { %1383 = vrot.lane.b32.xlu0 %v9160_v7, %s5153_s9 }
 0x18e   : > { %v6263_v24 = vpop.permute.xlu1 %1137 }
 0x18f   : > { %9161 = vst [vmem:[#allocation68_spill] sm:$0xff] %v6263_v24  ;;  %v6265_v44 = vpop.permute.xlu0 %1143 }
 0x190   : > { %9162 = vst [vmem:[#allocation70_spill] sm:$0xff] %v6265_v44  ;;  %1381 = vrot.lane.b32.xlu1 %v9163_v41, %s5153_s9  ;;  %v9171_v44 = vld [vmem:[#allocation92_spill] sm:$0xff]  ;;  %v9172_v41 = vld [vmem:[#allocation94_spill] sm:$0xff] }
 0x191   : > { %1387 = vrot.lane.b32.xlu0 %v9164_v43, %s5153_s9 }
 0x192   : > { %v6271_v58 = vpop.permute.xlu1 %1141 }
 0x193   : > { %9165 = vst [vmem:[#allocation72_spill] sm:$0xff] %v6271_v58  ;;  %v6273_v35 = vpop.permute.xlu0 %1147 }
 0x194   : > { %9166 = vst [vmem:[#allocation74_spill] sm:$0xff] %v6273_v35  ;;  %1385 = vrot.lane.b32.xlu1 %v9167_v40, %s5153_s9  ;;  %v9174_v35 = vld [vmem:[#allocation96_spill] sm:$0xff] }
 0x195   : > { %1391 = vrot.lane.b32.xlu0 %v9168_v29, %s5153_s9 }
 0x196   : > { %v6279_v7 = vpop.permute.xlu1 %1145 }
 0x197   : > { %9169 = vst [vmem:[#allocation76_spill] sm:$0xff] %v6279_v7  ;;  %v6281_v24 = vpop.permute.xlu0 %1151  ;;  %v613_v7 = vld [vmem:[#allocation2 + $0x49] sm:$0xff] }
 0x198   : > { %9170 = vst [vmem:[#allocation78_spill] sm:$0xff] %v6281_v24  ;;  %1389 = vrot.lane.b32.xlu1 %v9171_v44, %s5153_s9  ;;  %v9176_v24 = vld [vmem:[#allocation99_spill] sm:$0xff] }
 0x199   : > { %1395 = vrot.lane.b32.xlu0 %v9172_v41, %s5153_s9  ;;  %v609_v41 = vld [vmem:[#allocation2 + $0x198] sm:$0xff] }
 0x19a   : > { %v6287_v43 = vpop.permute.xlu1 %1149 }
 0x19b   : > { %9173 = vst [vmem:[#allocation80_spill] sm:$0xff] %v6287_v43  ;;  %v6289_v58 = vpop.permute.xlu0 %1219 }
 0x19c   : > { %1393 = vrot.lane.b32.xlu1 %v9174_v35, %s5153_s9  ;;  %v611_v35 = vld [vmem:[#allocation2 + $0x31] sm:$0xff] }
 0x19d   : > { %1399 = vrot.lane.b32.xlu0 %v5899_v9, %s5153_s9 }
 0x19e   : > { %v6295_v40 = vpop.permute.xlu1 %1153 }
 0x19f   : > { %9175 = vst [vmem:[#allocation82_spill] sm:$0xff] %v6295_v40  ;;  %v6297_v29 = vpop.permute.xlu0 %1223 }
 0x1a0   : > { %1397 = vrot.lane.b32.xlu1 %v9176_v24, %s5153_s9  ;;  %v610_v24 = vld [vmem:[#allocation2 + $0x1a0] sm:$0xff] }
 0x1a1   : > { %1403 = vrot.lane.b32.xlu0 %v5907_v10, %s5153_s9 }
 0x1a2   : > { %v6303_v44 = vpop.permute.xlu1 %1221 }
 0x1a3   : > { %v6305_v43 = vpop.permute.xlu0 %1227 }
 0x1a4   : > { %1401 = vrot.lane.b32.xlu1 %v5917_v3, %s5153_s9  ;;  %v612_v3 = vld [vmem:[#allocation2 + $0x39] sm:$0xff] }
 0x1a5   : > { %1407 = vrot.lane.b32.xlu0 %v609_v41, %s5153_s9 }
 0x1a6   : > { %v6310_v9 = vpop.permute.xlu1 %1225 }
 0x1a7   : > { %v6312_v40 = vpop.permute.xlu0 %1231 }
 0x1a8   : > { %1405 = vrot.lane.b32.xlu1 %v5923_v4, %s5153_s9  ;;  %v614_v4 = vld [vmem:[#allocation2 + $0x51] sm:$0xff] }
 0x1a9   : > { %1475 = vrot.lane.b32.xlu0 %v611_v35, %s5154_s10 }
 0x1aa   : > { %v6317_v10 = vpop.permute.xlu1 %1229 }
 0x1ab   : > { %v6319_v32 = vpop.permute.xlu0 %1235 }
 0x1ac   : > { %1409 = vrot.lane.b32.xlu1 %v610_v24, %s5153_s9  ;;  %v616_v24 = vld [vmem:[#allocation2 + $0x69] sm:$0xff] }
 0x1ad   : > { %1479 = vrot.lane.b32.xlu0 %v613_v7, %s5154_s10 }
 0x1ae   : > { %v6323_v41 = vpop.permute.xlu1 %1233 }
 0x1af   : > { %v6325_v42 = vpop.permute.xlu0 %1239 }
 0x1b0   : > { %9177 = vst [vmem:[#allocation84_spill] sm:$0xff] %v6325_v42  ;;  %1477 = vrot.lane.b32.xlu1 %v612_v3, %s5154_s10  ;;  %v618_v3 = vld [vmem:[#allocation2 + $0x81] sm:$0xff] }
 0x1b1   : > { %1483 = vrot.lane.b32.xlu0 %v615_v21, %s5154_s10 }
 0x1b2   : > { %v6329_v35 = vpop.permute.xlu1 %1237 }
 0x1b3   : > { %9178 = vst [vmem:[#allocation86_spill] sm:$0xff] %v6329_v35  ;;  %v6331_v39 = vpop.permute.xlu0 %1243  ;;  %v9241_v35 = vld [vmem:[#allocation98_spill] sm:$0xff] }
 0x1b4   : > { %9179 = vst [vmem:[#allocation88_spill] sm:$0xff] %v6331_v39  ;;  %1481 = vrot.lane.b32.xlu1 %v614_v4, %s5154_s10  ;;  %v620_v4 = vld [vmem:[#allocation2 + $0x99] sm:$0xff] }
 0x1b5   : > { %1487 = vrot.lane.b32.xlu0 %v617_v37, %s5154_s10 }
 0x1b6   : > { %v6335_v7 = vpop.permute.xlu1 %1241 }
 0x1b7   : > { %9180 = vst [vmem:[#allocation90_spill] sm:$0xff] %v6335_v7  ;;  %v6337_v30 = vpop.permute.xlu0 %1247 }
 0x1b8   : > { %9181 = vst [vmem:[#allocation92_spill] sm:$0xff] %v6337_v30  ;;  %1485 = vrot.lane.b32.xlu1 %v616_v24, %s5154_s10  ;;  %v622_v24 = vld [vmem:[#allocation2 + $0xb1] sm:$0xff] }
 0x1b9   : > { %1491 = vrot.lane.b32.xlu0 %v619_v38, %s5154_s10 }
 0x1ba   : > { %v6341_v21 = vpop.permute.xlu1 %1245 }
 0x1bb   : > { %9182 = vst [vmem:[#allocation94_spill] sm:$0xff] %v6341_v21  ;;  %v6343_v45 = vpop.permute.xlu0 %1251 }
 0x1bc   : > { %9183 = vst [vmem:[#allocation96_spill] sm:$0xff] %v6343_v45  ;;  %1489 = vrot.lane.b32.xlu1 %v618_v3, %s5154_s10  ;;  %v1966_v45 = vld [vmem:[%s8839_s1 + $0x20] sm:$0xf] }
 0x1bd   : > { %1495 = vrot.lane.b32.xlu0 %v621_v22, %s5154_s10  ;;  %v625_v3 = vld [vmem:[#allocation2 + $0xd9] sm:$0xff]  ;;  %4962 = vmatprep.subr.msk.mxu0 %vm2071_vm2, %v1966_v45 }
 0x1be   : > { %v6347_v37 = vpop.permute.xlu1 %1249  ;;  %4963 = vmatpush3.msk.msra.mxu0 %vm2071_vm2, %v1966_v45  ;;  %v1963_v45 = vld [vmem:[%s8839_s1 + $0x8] sm:$0xff] }
 0x1bf   : > { %9184 = vst [vmem:[#allocation99_spill] sm:$0xff] %v6347_v37  ;;  %v6349_v48 = vpop.permute.xlu0 %1255  ;;  %v626_v37 = vld [vmem:[#allocation2 + $0xe1] sm:$0xff] }
 0x1c0   : > { %9185 = vst [vmem:[#allocation148_spill] sm:$0xff] %v6349_v48  ;;  %1493 = vrot.lane.b32.xlu1 %v620_v4, %s5154_s10  ;;  %v624_v4 = vld [vmem:[#allocation2 + $0xc9] sm:$0xff] }
 0x1c1   : > { %1499 = vrot.lane.b32.xlu0 %v623_v34, %s5154_s10  ;;  %v1965_v34 = vld [vmem:[%s8839_s1 + $0x18] sm:$0xff] }
 0x1c2   : > { %v6353_v38 = vpop.permute.xlu1 %1253  ;;  %4964 = vmatprep.subr.mxu0 %v1965_v34 }
 0x1c3   : > { %9186 = vst [vmem:[#allocation149_spill] sm:$0xff] %v6353_v38  ;;  %v6359_v22 = vpop.permute.xlu0 %1259  ;;  %4965 = vmatpush3.msra.mxu0 %v1965_v34  ;;  %v1964_v38 = vld [vmem:[%s8839_s1 + $0x10] sm:$0xff]  ;;  %v1962_v34 = vld [vmem:[%s8839_s1] sm:$0xff] }
 0x1c4   : > { %9187 = vst [vmem:[#allocation150_spill] sm:$0xff] %v6359_v22  ;;  %1497 = vrot.lane.b32.xlu1 %v622_v24, %s5154_s10  ;;  %v627_v22 = vld [vmem:[#allocation2 + $0xf1] sm:$0xff]  ;;  %4966 = vmatprep.subr.mxu0 %v1964_v38 }
 0x1c5   : > { %1503 = vrot.lane.b32.xlu0 %v625_v3, %s5154_s10  ;;  %4967 = vmatpush3.msra.mxu0 %v1964_v38  ;;  %v628_v38 = vld [vmem:[#allocation2 + $0xf9] sm:$0xff] }
 0x1c6   : > { %v6367_v48 = vpop.permute.xlu1 %1257  ;;  %4968 = vmatprep.subr.mxu0 %v1963_v45 }
 0x1c7   : > { %9188 = vst [vmem:[#allocation151_spill] sm:$0xff] %v6367_v48  ;;  %v6372_v24 = vpop.permute.xlu0 %1263  ;;  %4969 = vmatpush3.msra.mxu0 %v1963_v45  ;;  %v629_v48 = vld [vmem:[#allocation2 + $0x109] sm:$0xff]  ;;  %v630_v45 = vld [vmem:[#allocation2 + $0x111] sm:$0xff] }
 0x1c8   : > { %9189 = vst [vmem:[#allocation152_spill] sm:$0xff] %v6372_v24  ;;  %1501 = vrot.lane.b32.xlu1 %v624_v4, %s5154_s10  ;;  %4970 = vmatprep.subr.mxu0 %v1962_v34 }
 0x1c9   : > { %1507 = vrot.lane.b32.xlu0 %v627_v22, %s5154_s10  ;;  %4971 = vmatpush3.msra.mxu0 %v1962_v34  ;;  %v631_v22 = vld [vmem:[#allocation2 + $0x121] sm:$0xff]  ;;  %v646_v34 = vld [vmem:[#allocation2 + $0x52] sm:$0xff] }
 0x1ca   : > { %v6379_v3 = vpop.permute.xlu1 %1261 }
 0x1cb   : > { %9190 = vst [vmem:[#allocation153_spill] sm:$0xff] %v6379_v3  ;;  %v6384_v24 = vpop.permute.xlu0 %1267 }
 0x1cc   : > { %9191 = vst [vmem:[#allocation154_spill] sm:$0xff] %v6384_v24  ;;  %1505 = vrot.lane.b32.xlu1 %v626_v37, %s5154_s10  ;;  %v643_v37 = vld [vmem:[#allocation2 + $0x32] sm:$0xff] }
 0x1cd   : > { %1511 = vrot.lane.b32.xlu0 %v629_v48, %s5154_s10 }
 0x1ce   : > { %v6388_v4 = vpop.permute.xlu1 %1265 }
 0x1cf   : > { %9192 = vst [vmem:[#allocation155_spill] sm:$0xff] %v6388_v4  ;;  %v6390_v30 = vpop.permute.xlu0 %1271 }
 0x1d0   : > { %9193 = vst [vmem:[#allocation156_spill] sm:$0xff] %v6390_v30  ;;  %1509 = vrot.lane.b32.xlu1 %v628_v38, %s5154_s10  ;;  %v645_v38 = vld [vmem:[#allocation2 + $0x4a] sm:$0xff] }
 0x1d1   : > { %1515 = vrot.lane.b32.xlu0 %v631_v22, %s5154_s10 }
 0x1d2   : > { %v6394_v3 = vpop.permute.xlu1 %1269 }
 0x1d3   : > { %9194 = vst [vmem:[#allocation157_spill] sm:$0xff] %v6394_v3  ;;  %v6396_v24 = vpop.permute.xlu0 %1275  ;;  %v648_v3 = vld [vmem:[#allocation2 + $0x6a] sm:$0xff] }
 0x1d4   : > { %9195 = vst [vmem:[#allocation158_spill] sm:$0xff] %v6396_v24  ;;  %1513 = vrot.lane.b32.xlu1 %v630_v45, %s5154_s10  ;;  %v647_v45 = vld [vmem:[#allocation2 + $0x62] sm:$0xff] }
 0x1d5   : > { %1605 = vrot.lane.b32.xlu0 %v644_v31, %s5155_s22 }
 0x1d6   : > { %v6400_v48 = vpop.permute.xlu1 %1273 }
 0x1d7   : > { %9196 = vst [vmem:[#allocation159_spill] sm:$0xff] %v6400_v48  ;;  %v6402_v30 = vpop.permute.xlu0 %1279  ;;  %v650_v48 = vld [vmem:[#allocation2 + $0x82] sm:$0xff] }
 0x1d8   : > { %9197 = vst [vmem:[#allocation160_spill] sm:$0xff] %v6402_v30  ;;  %1603 = vrot.lane.b32.xlu1 %v643_v37, %s5155_s22  ;;  %v649_v37 = vld [vmem:[#allocation2 + $0x7a] sm:$0xff] }
 0x1d9   : > { %1609 = vrot.lane.b32.xlu0 %v646_v34, %s5155_s22  ;;  %v652_v30 = vld [vmem:[#allocation2 + $0x9a] sm:$0xff] }
 0x1da   : > { %v6406_v22 = vpop.permute.xlu1 %1277 }
 0x1db   : > { %9198 = vst [vmem:[#allocation161_spill] sm:$0xff] %v6406_v22  ;;  %v6408_v24 = vpop.permute.xlu0 %1347 }
 0x1dc   : > { %1607 = vrot.lane.b32.xlu1 %v645_v38, %s5155_s22  ;;  %v651_v38 = vld [vmem:[#allocation2 + $0x92] sm:$0xff] }
 0x1dd   : > { %1613 = vrot.lane.b32.xlu0 %v648_v3, %s5155_s22 }
 0x1de   : > { %v6412_v31 = vpop.permute.xlu1 %1281 }
 0x1df   : > { %9199 = vst [vmem:[#allocation162_spill] sm:$0xff] %v6412_v31  ;;  %v6414_v4 = vpop.permute.xlu0 %1351  ;;  %v654_v31 = vld [vmem:[#allocation2 + $0xb2] sm:$0xff] }
 0x1e0   : > { %1611 = vrot.lane.b32.xlu1 %v647_v45, %s5155_s22  ;;  %v653_v45 = vld [vmem:[#allocation2 + $0xaa] sm:$0xff] }
 0x1e1   : > { %1617 = vrot.lane.b32.xlu0 %v650_v48, %s5155_s22 }
 0x1e2   : > { %v6418_v34 = vpop.permute.xlu1 %1349 }
 0x1e3   : > { %v6420_v22 = vpop.permute.xlu0 %1355 }
 0x1e4   : > { %1615 = vrot.lane.b32.xlu1 %v649_v37, %s5155_s22  ;;  %v655_v37 = vld [vmem:[#allocation2 + $0xc2] sm:$0xff] }
 0x1e5   : > { %1621 = vrot.lane.b32.xlu0 %v652_v30, %s5155_s22 }
 0x1e6   : > { %v6424_v3 = vpop.permute.xlu1 %1353 }
 0x1e7   : > { %v6426_v21 = vpop.permute.xlu0 %1359 }
 0x1e8   : > { %1619 = vrot.lane.b32.xlu1 %v651_v38, %s5155_s22  ;;  %v657_v38 = vld [vmem:[#allocation2 + $0xda] sm:$0xff] }
 0x1e9   : > { %1625 = vrot.lane.b32.xlu0 %v654_v31, %s5155_s22 }
 0x1ea   : > { %v6430_v48 = vpop.permute.xlu1 %1357 }
 0x1eb   : > { %v6432_v39 = vpop.permute.xlu0 %1363 }
 0x1ec   : > { %9200 = vst [vmem:[#allocation163_spill] sm:$0xff] %v6432_v39  ;;  %1623 = vrot.lane.b32.xlu1 %v653_v45, %s5155_s22  ;;  %v659_v45 = vld [vmem:[#allocation2 + $0xf2] sm:$0xff] }
 0x1ed   : > { %1629 = vrot.lane.b32.xlu0 %v656_v5, %s5155_s22 }
 0x1ee   : > { %v6436_v30 = vpop.permute.xlu1 %1361 }
 0x1ef   : > { %v6438_v33 = vpop.permute.xlu0 %1367 }
 0x1f0   : > { %9201 = vst [vmem:[#allocation164_spill] sm:$0xff] %v6438_v33  ;;  %1627 = vrot.lane.b32.xlu1 %v655_v37, %s5155_s22  ;;  %v661_v37 = vld [vmem:[#allocation2 + $0x10a] sm:$0xff]  ;;  %v663_v33 = vld [vmem:[#allocation2 + $0x122] sm:$0xff] }
 0x1f1   : > { %1633 = vrot.lane.b32.xlu0 %v658_v47, %s5155_s22 }
 0x1f2   : > { %v6442_v31 = vpop.permute.xlu1 %1365 }
 0x1f3   : > { %9202 = vst [vmem:[#allocation165_spill] sm:$0xff] %v6442_v31  ;;  %v6444_v8 = vpop.permute.xlu0 %1371  ;;  %v9238_v31 = vld [vmem:[#allocation38_spill] sm:$0xff] }
 0x1f4   : > { %9203 = vst [vmem:[#allocation166_spill] sm:$0xff] %v6444_v8  ;;  %1631 = vrot.lane.b32.xlu1 %v657_v38, %s5155_s22  ;;  %v632_v38 = vld [vmem:[#allocation2 + $0x129] sm:$0xff]  ;;  %v633_v8 = vld [vmem:[#allocation2 + $0x139] sm:$0xff] }
 0x1f5   : > { %1637 = vrot.lane.b32.xlu0 %v660_v36, %s5155_s22 }
 0x1f6   : > { %v6448_v5 = vpop.permute.xlu1 %1369 }
 0x1f7   : > { %9204 = vst [vmem:[#allocation167_spill] sm:$0xff] %v6448_v5  ;;  %v6450_v7 = vpop.permute.xlu0 %1375 }
 0x1f8   : > { %9205 = vst [vmem:[#allocation168_spill] sm:$0xff] %v6450_v7  ;;  %1635 = vrot.lane.b32.xlu1 %v659_v45, %s5155_s22  ;;  %v664_v45 = vld [vmem:[#allocation2 + $0x12a] sm:$0xff]  ;;  %v665_v7 = vld [vmem:[#allocation2 + $0x13a] sm:$0xff] }
 0x1f9   : > { %1641 = vrot.lane.b32.xlu0 %v662_v27, %s5155_s22 }
 0x1fa   : > { %v6454_v47 = vpop.permute.xlu1 %1373 }
 0x1fb   : > { %9206 = vst [vmem:[#allocation169_spill] sm:$0xff] %v6454_v47  ;;  %v6456_v2 = vpop.permute.xlu0 %1379 }
 0x1fc   : > { %9207 = vst [vmem:[#allocation170_spill] sm:$0xff] %v6456_v2  ;;  %1639 = vrot.lane.b32.xlu1 %v661_v37, %s5155_s22  ;;  %v634_v37 = vld [vmem:[#allocation2 + $0x141] sm:$0xff]  ;;  %v635_v2 = vld [vmem:[#allocation2 + $0x151] sm:$0xff] }
 0x1fd   : > { %1643 = vrot.lane.b32.xlu0 %v663_v33, %s5155_s22 }
 0x1fe   : > { %v6460_v36 = vpop.permute.xlu1 %1377 }
 0x1ff   : > { %9208 = vst [vmem:[#allocation171_spill] sm:$0xff] %v6460_v36  ;;  %v6462_v5 = vpop.permute.xlu0 %1383 }
 0x200   : > { %9209 = vst [vmem:[#allocation172_spill] sm:$0xff] %v6462_v5  ;;  %1517 = vrot.lane.b32.xlu1 %v632_v38, %s5154_s10  ;;  %v666_v38 = vld [vmem:[#allocation2 + $0x142] sm:$0xff]  ;;  %v667_v5 = vld [vmem:[#allocation2 + $0x152] sm:$0xff] }
 0x201   : > { %1519 = vrot.lane.b32.xlu0 %v633_v8, %s5154_s10 }
 0x202   : > { %v6466_v27 = vpop.permute.xlu1 %1381 }
 0x203   : > { %9210 = vst [vmem:[#allocation173_spill] sm:$0xff] %v6466_v27  ;;  %v6468_v47 = vpop.permute.xlu0 %1387 }
 0x204   : > { %9211 = vst [vmem:[#allocation174_spill] sm:$0xff] %v6468_v47  ;;  %1645 = vrot.lane.b32.xlu1 %v664_v45, %s5155_s22  ;;  %v636_v45 = vld [vmem:[#allocation2 + $0x159] sm:$0xff]  ;;  %v637_v47 = vld [vmem:[#allocation2 + $0x169] sm:$0xff] }
 0x205   : > { %1647 = vrot.lane.b32.xlu0 %v665_v7, %s5155_s22 }
 0x206   : > { %v6472_v33 = vpop.permute.xlu1 %1385 }
 0x207   : > { %9212 = vst [vmem:[#allocation175_spill] sm:$0xff] %v6472_v33  ;;  %v6474_v36 = vpop.permute.xlu0 %1391 }
 0x208   : > { %9213 = vst [vmem:[#allocation176_spill] sm:$0xff] %v6474_v36  ;;  %1521 = vrot.lane.b32.xlu1 %v634_v37, %s5154_s10  ;;  %v668_v37 = vld [vmem:[#allocation2 + $0x15a] sm:$0xff]  ;;  %v669_v36 = vld [vmem:[#allocation2 + $0x16a] sm:$0xff] }
 0x209   : > { %1523 = vrot.lane.b32.xlu0 %v635_v2, %s5154_s10 }
 0x20a   : > { %v6478_v8 = vpop.permute.xlu1 %1389 }
 0x20b   : > { %9214 = vst [vmem:[#allocation177_spill] sm:$0xff] %v6478_v8  ;;  %v6480_v27 = vpop.permute.xlu0 %1395 }
 0x20c   : > { %9215 = vst [vmem:[#allocation178_spill] sm:$0xff] %v6480_v27  ;;  %1649 = vrot.lane.b32.xlu1 %v666_v38, %s5155_s22  ;;  %v638_v38 = vld [vmem:[#allocation2 + $0x171] sm:$0xff] }
 0x20d   : > { %1651 = vrot.lane.b32.xlu0 %v667_v5, %s5155_s22 }
 0x20e   : > { %v6484_v7 = vpop.permute.xlu1 %1393 }
 0x20f   : > { %9216 = vst [vmem:[#allocation179_spill] sm:$0xff] %v6484_v7  ;;  %v6486_v33 = vpop.permute.xlu0 %1399 }
 0x210   : > { %9217 = vst [vmem:[#allocation180_spill] sm:$0xff] %v6486_v33  ;;  %1525 = vrot.lane.b32.xlu1 %v636_v45, %s5154_s10  ;;  %v670_v45 = vld [vmem:[#allocation2 + $0x172] sm:$0xff] }
 0x211   : > { %1527 = vrot.lane.b32.xlu0 %v637_v47, %s5154_s10 }
 0x212   : > { %v6490_v2 = vpop.permute.xlu1 %1397 }
 0x213   : > { %9218 = vst [vmem:[#allocation181_spill] sm:$0xff] %v6490_v2  ;;  %v6492_v8 = vpop.permute.xlu0 %1403 }
 0x214   : > { %9219 = vst [vmem:[#allocation182_spill] sm:$0xff] %v6492_v8  ;;  %1653 = vrot.lane.b32.xlu1 %v668_v37, %s5155_s22  ;;  %v641_v37 = vld [vmem:[#allocation2 + $0x199] sm:$0xff] }
 0x215   : > { %1655 = vrot.lane.b32.xlu0 %v669_v36, %s5155_s22 }
 0x216   : > { %v6496_v5 = vpop.permute.xlu1 %1401 }
 0x217   : > { %9220 = vst [vmem:[#allocation183_spill] sm:$0xff] %v6496_v5  ;;  %v6498_v27 = vpop.permute.xlu0 %1407 }
 0x218   : > { %9221 = vst [vmem:[#allocation184_spill] sm:$0xff] %v6498_v27  ;;  %1529 = vrot.lane.b32.xlu1 %v638_v38, %s5154_s10  ;;  %v673_v38 = vld [vmem:[#allocation2 + $0x19a] sm:$0xff] }
 0x219   : > { %1531 = vrot.lane.b32.xlu0 %v6041_v56, %s5154_s10 }
 0x21a   : > { %v6503_v47 = vpop.permute.xlu1 %1405 }
 0x21b   : > { %9222 = vst [vmem:[#allocation185_spill] sm:$0xff] %v6503_v47  ;;  %v6505_v33 = vpop.permute.xlu0 %1475 }
 0x21c   : > { %1657 = vrot.lane.b32.xlu1 %v670_v45, %s5155_s22  ;;  %v642_v45 = vld [vmem:[#allocation2 + $0x1a1] sm:$0xff] }
 0x21d   : > { %1659 = vrot.lane.b32.xlu0 %v6173_v16, %s5155_s22 }
 0x21e   : > { %v6510_v36 = vpop.permute.xlu1 %1409 }
 0x21f   : > { %9223 = vst [vmem:[#allocation186_spill] sm:$0xff] %v6510_v36  ;;  %v6512_v8 = vpop.permute.xlu0 %1479 }
 0x220   : > { %1533 = vrot.lane.b32.xlu1 %v6055_v60, %s5154_s10  ;;  %v674_v60 = vld [vmem:[#allocation2 + $0x1a2] sm:$0xff] }
 0x221   : > { %1535 = vrot.lane.b32.xlu0 %v641_v37, %s5154_s10 }
 0x222   : > { %v6517_v56 = vpop.permute.xlu1 %1477 }
 0x223   : > { %v6519_v27 = vpop.permute.xlu0 %1483 }
 0x224   : > { %1661 = vrot.lane.b32.xlu1 %v6187_v12, %s5155_s22 }
 0x225   : > { %1663 = vrot.lane.b32.xlu0 %v673_v38, %s5155_s22 }
 0x226   : > { %v6524_v16 = vpop.permute.xlu1 %1481 }
 0x227   : > { %v6526_v36 = vpop.permute.xlu0 %1487 }
 0x228   : > { %1537 = vrot.lane.b32.xlu1 %v642_v45, %s5154_s10 }
 0x22a   : > { %v6529_v47 = vpop.permute.xlu1 %1485 }
 0x22b   : > { %v6531_v37 = vpop.permute.xlu0 %1491 }
 0x22c   : > { %9224 = vst [vmem:[#allocation187_spill] sm:$0xff] %v6531_v37  ;;  %1665 = vrot.lane.b32.xlu1 %v674_v60, %s5155_s22  ;;  %v386_v60 = vld [vmem:[#allocation2] sm:$0xff]  ;;  %v387_v37 = vld [vmem:[#allocation2 + $0x8] sm:$0xff] }
 0x22e   : > { %v6534_v5 = vpop.permute.xlu1 %1489 }
 0x22f   : > { %v6536_v2 = vpop.permute.xlu0 %1495 }
 0x230   : > { %9225 = vst [vmem:[#allocation188_spill] sm:$0xff] %v6536_v2 }
 0x232   : > { %v6538_v12 = vpop.permute.xlu1 %1493 }
 0x233   : > { %9226 = vst [vmem:[#allocation189_spill] sm:$0xff] %v6538_v12  ;;  %v6540_v38 = vpop.permute.xlu0 %1499  ;;  %v9235_v12 = vld [vmem:[#allocation35_spill] sm:$0xff] }
 0x234   : > { %9227 = vst [vmem:[#allocation190_spill] sm:$0xff] %v6540_v38  ;;  %v1699_v38 = vsel %vm297_vm0, %v386_v60, %v9235_v12 }
 0x236   : > { %v6542_v7 = vpop.permute.xlu1 %1497 }
 0x237   : > { %9228 = vst [vmem:[#allocation191_spill] sm:$0xff] %v6542_v7  ;;  %v6544_v42 = vpop.permute.xlu0 %1503 }
 0x238   : > { %9229 = vst [vmem:[#allocation192_spill] sm:$0xff] %v6544_v42  ;;  %v9237_v42 = vld [vmem:[#allocation36_spill] sm:$0xff] }
 0x23a   : > { %v6546_v45 = vpop.permute.xlu1 %1501 }
 0x23b   : > { %9230 = vst [vmem:[#allocation193_spill] sm:$0xff] %v6546_v45  ;;  %v6548_v13 = vpop.permute.xlu0 %1507  ;;  %v1700_v45 = vsel %vm297_vm0, %v387_v37, %v9237_v42  ;;  %v5097_v37 = vld [vmem:[#allocation2 + $0x20] sm:$0xff] }
 0x23c   : > { %9231 = vst [vmem:[#allocation194_spill] sm:$0xff] %v6548_v13  ;;  %v5095_v13 = vld [vmem:[#allocation2 + $0x18] sm:$0xff]  ;;  %v1733_v12 = vsel %vm1731_vm3, %v1700_v45, %v9241_v35 }
 0x23e   : > { %v6550_v20 = vpop.permute.xlu1 %1505 }
 0x23f   : > { %9232 = vst [vmem:[#allocation195_spill] sm:$0xff] %v6550_v20  ;;  %v6552_v62 = vpop.permute.xlu0 %1511  ;;  %v1701_v20 = vsel %vm297_vm0, %v5095_v13, %v9238_v31 }
 0x240   : > { %9233 = vst [vmem:[#allocation196_spill] sm:$0xff] %v6552_v62  ;;  %v9239_v62 = vld [vmem:[#allocation93_spill] sm:$0xff] }
 0x241   : > { %v1732_v51 = vsel %vm1731_vm3, %v1699_v38, %v9239_v62  ;;  %v1766_v62 = vsel %vm1764_vm4, %v1733_v12, %v6039_v55  ;;  %v9244_v38 = vld [vmem:[#allocation97_spill] sm:$0xff] }
 0x242   : > { %v6554_v2 = vpop.permute.xlu1 %1509  ;;  %v1765_v60 = vsel %vm1764_vm4, %v1732_v51, %v6025_v52  ;;  %v1734_v51 = vsel %vm1731_vm3, %v1701_v20, %v9244_v38  ;;  %v1799_v52 = vsel %vm1797_vm5, %v1766_v62, %v6171_v15  ;;  %v9245_v12 = vld [vmem:[#allocation101_spill] sm:$0xff]  ;;  %v9247_v38 = vld [vmem:[#allocation46_spill] sm:$0xff] }
 0x243   : > { %9234 = vst [vmem:[#allocation197_spill] sm:$0xff] %v6554_v2  ;;  %v6558_v7 = vpop.permute.xlu0 %1515  ;;  %v9240_v2 = vld [vmem:[#allocation40_spill] sm:$0xff]  ;;  %v1798_v31 = vsel %vm1797_vm5, %v1765_v60, %v6157_v19  ;;  %v1832_v55 = vsel %vm1830_vm6, %v1799_v52, %v6303_v44  ;;  %v1767_v20 = vsel %vm1764_vm4, %v1734_v51, %v6033_v54  ;;  %v9246_v54 = vld [vmem:[#allocation45_spill] sm:$0xff] }
 0x244   : > { %9236 = vst [vmem:[#allocation35_spill] sm:$0xff] %v6558_v7  ;;  %v1703_v39 = vsel %vm297_vm0, %v5096_v26, %v9240_v2  ;;  %v9242_v7 = vld [vmem:[#allocation42_spill] sm:$0xff]  ;;  %v9243_v2 = vld [vmem:[#allocation43_spill] sm:$0xff]  ;;  %v1865_v15 = vsel %vm1863_vm7, %v1832_v55, %v6418_v34  ;;  %v9248_v51 = vld [vmem:[#allocation100_spill] sm:$0xff] }
 0x245   : > { %v1702_v13 = vsel %vm297_vm0, %v5097_v37, %v9242_v7  ;;  %v5098_v26 = vld [vmem:[#allocation2 + $0x48] sm:$0xff]  ;;  %v1831_v7 = vsel %vm1830_vm6, %v1798_v31, %v6289_v58  ;;  %v1898_v62 = vsel %vm1896_vm8, %v1865_v15, %v6517_v56  ;;  %v5099_v31 = vld [vmem:[#allocation2 + $0x38] sm:$0xff]  ;;  %v1736_v52 = vsel %vm1731_vm3, %v1703_v39, %v9248_v51  ;;  %v5101_v15 = vld [vmem:[#allocation2 + $0x50] sm:$0xff] }
 0x246   : > { %v6572_v42 = vpop.permute.xlu1 %1513  ;;  %v1705_v35 = vsel %vm297_vm0, %v5098_v26, %v9243_v2  ;;  %v1864_v19 = vsel %vm1863_vm7, %v1831_v7, %v6408_v24  ;;  %v1735_v60 = vsel %vm1731_vm3, %v1702_v13, %v9245_v12  ;;  %v1800_v24 = vsel %vm1797_vm5, %v1767_v20, %v6165_v17  ;;  %v5100_v17 = vld [vmem:[#allocation2 + $0x60] sm:$0xff] }
 0x247   : > { %v1606_v45 = vpop.permute.xlu0 %1605  ;;  %v1897_v58 = vsel %vm1896_vm8, %v1864_v19, %v6505_v33  ;;  %v1768_v44 = vsel %vm1764_vm4, %v1735_v60, %v6049_v57  ;;  %v1704_v26 = vsel %vm297_vm0, %v5099_v31, %v9246_v54  ;;  %v1833_v33 = vsel %vm1830_vm6, %v1800_v24, %v6297_v29  ;;  %v9249_v29 = vld [vmem:[#allocation103_spill] sm:$0xff]  ;;  %v9252_v24 = vld [vmem:[#allocation102_spill] sm:$0xff] }
 0x248   : > { %v1801_v34 = vsel %vm1797_vm5, %v1768_v44, %v6181_v6  ;;  %v1931_v57 = vsel %vm1929_vm9, %v1898_v62, %v1606_v45  ;;  %v1707_v56 = vsel %vm297_vm0, %v5100_v17, %v9247_v38  ;;  %v1866_v6 = vsel %vm1863_vm7, %v1833_v33, %v6414_v4  ;;  %v9251_v44 = vld [vmem:[#allocation49_spill] sm:$0xff]  ;;  %v5103_v33 = vld [vmem:[#allocation2 + $0x68] sm:$0xff]  ;;  %v9255_v38 = vld [vmem:[#allocation104_spill] sm:$0xff] }
 0x249   : > { %v1834_v7 = vsel %vm1830_vm6, %v1801_v34, %v6310_v9  ;;  %v1737_v45 = vsel %vm1731_vm3, %v1704_v26, %v9249_v29  ;;  %v1769_v55 = vsel %vm1764_vm4, %v1736_v52, %v6043_v50  ;;  %v1899_v39 = vsel %vm1896_vm8, %v1866_v6, %v6512_v8  ;;  %v9250_v50 = vld [vmem:[#allocation48_spill] sm:$0xff]  ;;  %v9254_v17 = vld [vmem:[#allocation53_spill] sm:$0xff] }
 0x24a   : > { %v1604_v37 = vpop.permute.xlu1 %1603  ;;  %v1867_v19 = vsel %vm1863_vm7, %v1834_v7, %v6424_v3  ;;  %v1770_v9 = vsel %vm1764_vm4, %v1737_v45, %v6059_v61  ;;  %v1802_v4 = vsel %vm1797_vm5, %v1769_v55, %v6175_v23  ;;  %v5102_v23 = vld [vmem:[#allocation2 + $0x78] sm:$0xff]  ;;  %v1738_v62 = vsel %vm1731_vm3, %v1705_v35, %v9252_v24  ;;  %v5105_v55 = vld [vmem:[#allocation2 + $0x80] sm:$0xff] }
 0x24b   : > { %v1930_v13 = vsel %vm1929_vm9, %v1897_v58, %v1604_v37  ;;  %v1610_v2 = vpop.permute.xlu0 %1609  ;;  %v1900_v60 = vsel %vm1896_vm8, %v1867_v19, %v6524_v16  ;;  %v1706_v58 = vsel %vm297_vm0, %v5101_v15, %v9250_v50  ;;  %v1803_v3 = vsel %vm1797_vm5, %v1770_v9, %v6191_v49  ;;  %v9261_v50 = vld [vmem:[#allocation126_spill] sm:$0xff] }
 0x24c   : > { %4972 = vmatprep.mubr.msk.f32.mxu0 %vm1974_vm10, %v1930_v13  ;;  %v1835_v8 = vsel %vm1830_vm6, %v1802_v4, %v6305_v43  ;;  %v1933_v61 = vsel %vm1929_vm9, %v1900_v60, %v1610_v2  ;;  %v1709_v16 = vsel %vm297_vm0, %v5102_v23, %v9251_v44  ;;  %v1836_v13 = vsel %vm1830_vm6, %v1803_v3, %v6317_v10  ;;  %v9258_v4 = vld [vmem:[#allocation86_spill] sm:$0xff]  ;;  %v9262_v3 = vld [vmem:[#allocation165_spill] sm:$0xff]  ;;  %v9264_v23 = vld [vmem:[#allocation128_spill] sm:$0xff] }
 0x24d   : > { %4973 = vmatmul.mubr.msk.f32.vlgmr.msra.gmra.mxu0 %vm1974_vm10, %v1931_v57  ;;  %v1868_v49 = vsel %vm1863_vm7, %v1835_v8, %v6420_v22  ;;  %v1739_v43 = vsel %vm1731_vm3, %v1706_v58, %v5935_v1  ;;  %v1771_v31 = vsel %vm1764_vm4, %v1738_v62, %v6051_v59  ;;  %v1869_v54 = vsel %vm1863_vm7, %v1836_v13, %v6430_v48  ;;  %v9253_v59 = vld [vmem:[#allocation51_spill] sm:$0xff]  ;;  %v9266_v62 = vld [vmem:[#allocation189_spill] sm:$0xff] }
 0x24e   : > { %v1608_v12 = vpop.permute.xlu1 %1607  ;;  %v1901_v35 = vsel %vm1896_vm8, %v1868_v49, %v6519_v27  ;;  %v1772_v10 = vsel %vm1764_vm4, %v1739_v43, %v6067_v63  ;;  %v1804_v22 = vsel %vm1797_vm5, %v1771_v31, %v6183_v14  ;;  %v1902_v34 = vsel %vm1896_vm8, %v1869_v54, %v6529_v47  ;;  %v5104_v14 = vld [vmem:[#allocation2 + $0x90] sm:$0xff]  ;;  %v5107_v43 = vld [vmem:[#allocation2 + $0x98] sm:$0xff] }
 0x24f   : > { %v1932_v20 = vsel %vm1929_vm9, %v1899_v39, %v1608_v12  ;;  %v1614_v37 = vpop.permute.xlu0 %1613  ;;  %v1708_v57 = vsel %vm297_vm0, %v5103_v33, %v9253_v59  ;;  %v1805_v48 = vsel %vm1797_vm5, %v1772_v10, %v6199_v46  ;;  %v1837_v27 = vsel %vm1830_vm6, %v1804_v22, %v6312_v40  ;;  %v9257_v12 = vld [vmem:[#allocation57_spill] sm:$0xff]  ;;  %v9267_v31 = vld [vmem:[#allocation59_spill] sm:$0xff]  ;;  %v9269_v10 = vld [vmem:[#allocation84_spill] sm:$0xff] }
 0x250   : > { %4975 = vmatprep.mubr.msk.f32.mxu0 %vm1974_vm10, %v1932_v20  ;;  %v1935_v63 = vsel %vm1929_vm9, %v1902_v34, %v1614_v37  ;;  %v1711_v47 = vsel %vm297_vm0, %v5104_v14, %v9254_v17  ;;  %v1740_v51 = vsel %vm1731_vm3, %v1707_v56, %v9255_v38  ;;  %v1838_v52 = vsel %vm1830_vm6, %v1805_v48, %v6323_v41  ;;  %v9259_v20 = vld [vmem:[#allocation163_spill] sm:$0xff]  ;;  %v5108_v33 = vld [vmem:[#allocation2 + $0xc0] sm:$0xff]  ;;  %v9273_v14 = vld [vmem:[#allocation164_spill] sm:$0xff] }
 0x251   : > { %4976 = vmatmul.mubr.msk.f32.gmra.mxu0 %vm1974_vm10, %v1933_v61  ;;  %v1870_v46 = vsel %vm1863_vm7, %v1837_v27, %v6426_v21  ;;  %v1741_v40 = vsel %vm1731_vm3, %v1708_v57, %v5943_v25  ;;  %v1773_v7 = vsel %vm1764_vm4, %v1740_v51, %v6061_v53  ;;  %v1871_v6 = vsel %vm1863_vm7, %v1838_v52, %v6436_v30  ;;  %v9256_v53 = vld [vmem:[#allocation55_spill] sm:$0xff]  ;;  %v9270_v59 = vld [vmem:[#allocation61_spill] sm:$0xff]  ;;  %v9274_v38 = vld [vmem:[#allocation108_spill] sm:$0xff] }
 0x252   : > { %v1612_v26 = vpop.permute.xlu1 %1611  ;;  %v1903_v56 = vsel %vm1896_vm8, %v1870_v46, %v6526_v36  ;;  %v1774_v41 = vsel %vm1764_vm4, %v1741_v40, %v6075_v0  ;;  %v1806_v21 = vsel %vm1797_vm5, %v1773_v7, %v6193_v28  ;;  %v1904_v45 = vsel %vm1896_vm8, %v1871_v6, %v6534_v5  ;;  %v5106_v28 = vld [vmem:[#allocation2 + $0xa8] sm:$0xff]  ;;  %v9263_v61 = vld [vmem:[#allocation187_spill] sm:$0xff]  ;;  %v9271_v48 = vld [vmem:[#allocation105_spill] sm:$0xff] }
 0x253   : > { %v1934_v1 = vsel %vm1929_vm9, %v1901_v35, %v1612_v26  ;;  %v1618_v2 = vpop.permute.xlu0 %1617  ;;  %v1710_v19 = vsel %vm297_vm0, %v5105_v55, %v9256_v53  ;;  %v1807_v30 = vsel %vm1797_vm5, %v1774_v41, %v6207_v18  ;;  %v1839_v36 = vsel %vm1830_vm6, %v1806_v21, %v6319_v32  ;;  %v9260_v32 = vld [vmem:[#allocation106_spill] sm:$0xff]  ;;  %v9268_v35 = vld [vmem:[#allocation41_spill] sm:$0xff]  ;;  %v9275_v52 = vld [vmem:[#allocation127_spill] sm:$0xff] }
 0x254   : > { %4978 = vmatprep.mubr.msk.f32.mxu0 %vm1974_vm10, %v1934_v1  ;;  %v1937_v0 = vsel %vm1929_vm9, %v1904_v45, %v1618_v2  ;;  %v1713_v5 = vsel %vm297_vm0, %v5106_v28, %v9257_v12  ;;  %v1742_v9 = vsel %vm1731_vm3, %v1709_v16, %v5937_v11  ;;  %v1840_v60 = vsel %vm1830_vm6, %v1807_v30, %v9258_v4  ;;  %v9265_v16 = vld [vmem:[#allocation37_spill] sm:$0xff]  ;;  %v9276_v40 = vld [vmem:[#allocation167_spill] sm:$0xff]  ;;  %v9277_v6 = vld [vmem:[#allocation188_spill] sm:$0xff] }
 0x255   : > { %4979 = vmatmul.mubr.msk.f32.gmra.mxu0 %vm1974_vm10, %v1935_v63  ;;  %v1872_v18 = vsel %vm1863_vm7, %v1839_v36, %v9259_v20  ;;  %v1743_v15 = vsel %vm1731_vm3, %v1710_v19, %v9260_v32  ;;  %v1775_v58 = vsel %vm1764_vm4, %v1742_v9, %v9261_v50  ;;  %v1873_v8 = vsel %vm1863_vm7, %v1840_v60, %v9262_v3  ;;  %v9272_v63 = vld [vmem:[#allocation90_spill] sm:$0xff]  ;;  %v9279_v21 = vld [vmem:[#allocation39_spill] sm:$0xff]  ;;  %v9283_v28 = vld [vmem:[#allocation88_spill] sm:$0xff] }
 0x256   : > { %v1616_v29 = vpop.permute.xlu1 %1615  ;;  %v1905_v11 = vsel %vm1896_vm8, %v1872_v18, %v9263_v61  ;;  %v1776_v44 = vsel %vm1764_vm4, %v1743_v15, %v9264_v23  ;;  %v1808_v24 = vsel %vm1797_vm5, %v1775_v58, %v9265_v16  ;;  %v1906_v13 = vsel %vm1896_vm8, %v1873_v8, %v9266_v62  ;;  %v5109_v19 = vld [vmem:[#allocation2 + $0xb0] sm:$0xff]  ;;  %v5110_v60 = vld [vmem:[#allocation2 + $0xd8] sm:$0xff]  ;;  %v9284_v20 = vld [vmem:[#allocation65_spill] sm:$0xff] }
 0x257   : > { %v1936_v25 = vsel %vm1929_vm9, %v1903_v56, %v1616_v29  ;;  %v1622_v39 = vpop.permute.xlu0 %1621  ;;  %v1712_v54 = vsel %vm297_vm0, %v5107_v43, %v9267_v31  ;;  %v1809_v26 = vsel %vm1797_vm5, %v1776_v44, %v9268_v35  ;;  %v1841_v22 = vsel %vm1830_vm6, %v1808_v24, %v9269_v10  ;;  %v9278_v29 = vld [vmem:[#allocation130_spill] sm:$0xff]  ;;  %v9281_v30 = vld [vmem:[#allocation63_spill] sm:$0xff]  ;;  %v9290_v44 = vld [vmem:[#allocation169_spill] sm:$0xff] }
 0x258   : > { %4981 = vmatprep.mubr.msk.f32.mxu0 %vm1974_vm10, %v1936_v25  ;;  %v1939_v34 = vsel %vm1929_vm9, %v1906_v13, %v1622_v39  ;;  %v1715_v57 = vsel %vm297_vm0, %v5108_v33, %v9270_v59  ;;  %v1744_v27 = vsel %vm1731_vm3, %v1711_v47, %v9271_v48  ;;  %v1842_v2 = vsel %vm1830_vm6, %v1809_v26, %v9272_v63  ;;  %v9280_v25 = vld [vmem:[#allocation191_spill] sm:$0xff]  ;;  %v9286_v50 = vld [vmem:[#allocation94_spill] sm:$0xff]  ;;  %v9292_v13 = vld [vmem:[#allocation132_spill] sm:$0xff] }
 0x259   : > { %4982 = vmatmul.mubr.msk.f32.gmra.mxu0 %vm1974_vm10, %v1937_v0  ;;  %v1874_v17 = vsel %vm1863_vm7, %v1841_v22, %v9273_v14  ;;  %v1745_v51 = vsel %vm1731_vm3, %v1712_v54, %v9274_v38  ;;  %v1777_v46 = vsel %vm1764_vm4, %v1744_v27, %v9275_v52  ;;  %v1875_v7 = vsel %vm1863_vm7, %v1842_v2, %v9276_v40  ;;  %v9282_v0 = vld [vmem:[#allocation47_spill] sm:$0xff]  ;;  %v9287_v3 = vld [vmem:[#allocation166_spill] sm:$0xff]  ;;  %v9293_v43 = vld [vmem:[#allocation44_spill] sm:$0xff] }
 0x25a   : > { %v1620_v37 = vpop.permute.xlu1 %1619  ;;  %v1907_v47 = vsel %vm1896_vm8, %v1874_v17, %v9277_v6  ;;  %v1778_v41 = vsel %vm1764_vm4, %v1745_v51, %v9278_v29  ;;  %v1810_v45 = vsel %vm1797_vm5, %v1777_v46, %v9279_v21  ;;  %v1908_v55 = vsel %vm1896_vm8, %v1875_v7, %v9280_v25  ;;  %v9285_v32 = vld [vmem:[#allocation107_spill] sm:$0xff]  ;;  %v9288_v61 = vld [vmem:[#allocation110_spill] sm:$0xff]  ;;  %v9294_v54 = vld [vmem:[#allocation193_spill] sm:$0xff] }
 0x25b   : > { %v1938_v49 = vsel %vm1929_vm9, %v1905_v11, %v1620_v37  ;;  %v1626_v1 = vpop.permute.xlu0 %1625  ;;  %v1714_v36 = vsel %vm297_vm0, %v5109_v19, %v9281_v30  ;;  %v1811_v39 = vsel %vm1797_vm5, %v1778_v41, %v9282_v0  ;;  %v1843_v12 = vsel %vm1830_vm6, %v1810_v45, %v9283_v28  ;;  %v9289_v37 = vld [vmem:[#allocation129_spill] sm:$0xff]  ;;  %v9291_v24 = vld [vmem:[#allocation190_spill] sm:$0xff]  ;;  %v9295_v22 = vld [vmem:[#allocation67_spill] sm:$0xff] }
 0x25c   : > { %4984 = vmatprep.mubr.msk.f32.mxu0 %vm1974_vm10, %v1938_v49  ;;  %v1941_v9 = vsel %vm1929_vm9, %v1908_v55, %v1626_v1  ;;  %v1717_v18 = vsel %vm297_vm0, %v5110_v60, %v9284_v20  ;;  %v1746_v15 = vsel %vm1731_vm3, %v1713_v5, %v9285_v32  ;;  %v1844_v58 = vsel %vm1830_vm6, %v1811_v39, %v9286_v50  ;;  %v5111_v10 = vld [vmem:[#allocation2 + $0xc8] sm:$0xff]  ;;  %v9296_v1 = vld [vmem:[#allocation52_spill] sm:$0xff]  ;;  %v5112_v2 = vld [vmem:[#allocation2 + $0xf0] sm:$0xff] }
 0x25d   : > { %4985 = vmatmul.mubr.msk.f32.gmra.mxu0 %vm1974_vm10, %v1939_v34  ;;  %v1876_v8 = vsel %vm1863_vm7, %v1843_v12, %v9287_v3  ;;  %v1747_v11 = vsel %vm1731_vm3, %v1714_v36, %v9288_v61  ;;  %v1779_v23 = vsel %vm1764_vm4, %v1746_v15, %v9289_v37  ;;  %v1877_v16 = vsel %vm1863_vm7, %v1844_v58, %v9290_v44  ;;  %v9297_v59 = vld [vmem:[#allocation92_spill] sm:$0xff]  ;;  %v9298_v14 = vld [vmem:[#allocation69_spill] sm:$0xff]  ;;  %v9300_v52 = vld [vmem:[#allocation99_spill] sm:$0xff] }
 0x25e   : > { %v1624_v56 = vpop.permute.xlu1 %1623  ;;  %v1909_v5 = vsel %vm1896_vm8, %v1876_v8, %v9291_v24  ;;  %v1780_v49 = vsel %vm1764_vm4, %v1747_v11, %v9292_v13  ;;  %v1812_v31 = vsel %vm1797_vm5, %v1779_v23, %v9293_v43  ;;  %v1910_v35 = vsel %vm1896_vm8, %v1877_v16, %v9294_v54  ;;  %v9299_v38 = vld [vmem:[#allocation109_spill] sm:$0xff]  ;;  %v9301_v40 = vld [vmem:[#allocation168_spill] sm:$0xff]  ;;  %v9304_v41 = vld [vmem:[#allocation171_spill] sm:$0xff] }
 0x25f   : > { %v1940_v53 = vsel %vm1929_vm9, %v1907_v47, %v1624_v56  ;;  %v1630_v4 = vpop.permute.xlu0 %1629  ;;  %v1716_v34 = vsel %vm297_vm0, %v5111_v10, %v9295_v22  ;;  %v1813_v33 = vsel %vm1797_vm5, %v1780_v49, %v9296_v1  ;;  %v1845_v48 = vsel %vm1830_vm6, %v1812_v31, %v9297_v59  ;;  %v9302_v6 = vld [vmem:[#allocation112_spill] sm:$0xff]  ;;  %v9303_v56 = vld [vmem:[#allocation131_spill] sm:$0xff]  ;;  %v9306_v55 = vld [vmem:[#allocation134_spill] sm:$0xff] }
 0x260   : > { %4987 = vmatprep.mubr.msk.f32.mxu0 %vm1974_vm10, %v1940_v53  ;;  %v1943_v27 = vsel %vm1929_vm9, %v1910_v35, %v1630_v4  ;;  %v1719_v17 = vsel %vm297_vm0, %v5112_v2, %v9298_v14  ;;  %v1748_v51 = vsel %vm1731_vm3, %v1715_v57, %v9299_v38  ;;  %v1846_v46 = vsel %vm1830_vm6, %v1813_v33, %v9300_v52  ;;  %v9305_v45 = vld [vmem:[#allocation192_spill] sm:$0xff]  ;;  %v9307_v19 = vld [vmem:[#allocation50_spill] sm:$0xff]  ;;  %v9308_v36 = vld [vmem:[#allocation195_spill] sm:$0xff] }
 0x261   : > { %4988 = vmatmul.mubr.msk.f32.gmra.mxu0 %vm1974_vm10, %v1941_v9  ;;  %v1878_v7 = vsel %vm1863_vm7, %v1845_v48, %v9301_v40  ;;  %v1749_v47 = vsel %vm1731_vm3, %v1716_v34, %v9302_v6  ;;  %v1781_v29 = vsel %vm1764_vm4, %v1748_v51, %v9303_v56  ;;  %v1879_v21 = vsel %vm1863_vm7, %v1846_v46, %v9304_v41  ;;  %v5113_v28 = vld [vmem:[#allocation2 + $0xe0] sm:$0xff]  ;;  %v9309_v12 = vld [vmem:[#allocation71_spill] sm:$0xff]  ;;  %v9310_v4 = vld [vmem:[#allocation56_spill] sm:$0xff] }
 0x262   : > { %v1628_v62 = vpop.permute.xlu1 %1627  ;;  %v1911_v57 = vsel %vm1896_vm8, %v1878_v7, %v9305_v45  ;;  %v1782_v53 = vsel %vm1764_vm4, %v1749_v47, %v9306_v55  ;;  %v1814_v30 = vsel %vm1797_vm5, %v1781_v29, %v9307_v19  ;;  %v1912_v0 = vsel %vm1896_vm8, %v1879_v21, %v9308_v36  ;;  %v9311_v20 = vld [vmem:[#allocation96_spill] sm:$0xff]  ;;  %v9312_v58 = vld [vmem:[#allocation111_spill] sm:$0xff]  ;;  %v9313_v8 = vld [vmem:[#allocation113_spill] sm:$0xff] }
 0x263   : > { %v1942_v26 = vsel %vm1929_vm9, %v1909_v5, %v1628_v62  ;;  %v1634_v63 = vpop.permute.xlu0 %1633  ;;  %v1718_v9 = vsel %vm297_vm0, %v5113_v28, %v9309_v12  ;;  %v1815_v60 = vsel %vm1797_vm5, %v1782_v53, %v9310_v4  ;;  %v1847_v32 = vsel %vm1830_vm6, %v1814_v30, %v9311_v20  ;;  %v9314_v11 = vld [vmem:[#allocation149_spill] sm:$0xff]  ;;  %v9315_v23 = vld [vmem:[#allocation170_spill] sm:$0xff]  ;;  %v9320_v54 = vld [vmem:[#allocation136_spill] sm:$0xff] }
 0x264   : > { %4990 = vmatprep.mubr.msk.f32.mxu0 %vm1974_vm10, %v1942_v26  ;;  %v1945_v15 = vsel %vm1929_vm9, %v1912_v0, %v1634_v63  ;;  %v1750_v3 = vsel %vm1731_vm3, %v1717_v18, %v9312_v58  ;;  %v1752_v61 = vsel %vm1731_vm3, %v1719_v17, %v9313_v8  ;;  %v1848_v37 = vsel %vm1830_vm6, %v1815_v60, %v9314_v11  ;;  %v9316_v16 = vld [vmem:[#allocation114_spill] sm:$0xff]  ;;  %v9317_v5 = vld [vmem:[#allocation133_spill] sm:$0xff]  ;;  %v9323_v33 = vld [vmem:[#allocation135_spill] sm:$0xff] }
 0x265   : > { %4991 = vmatmul.mubr.msk.f32.gmra.mxu0 %vm1974_vm10, %v1943_v27  ;;  %v1880_v44 = vsel %vm1863_vm7, %v1847_v32, %v9315_v23  ;;  %v1751_v24 = vsel %vm1731_vm3, %v1718_v9, %v9316_v16  ;;  %v1783_v62 = vsel %vm1764_vm4, %v1750_v3, %v9317_v5  ;;  %v9318_v13 = vld [vmem:[#allocation173_spill] sm:$0xff]  ;;  %v9319_v49 = vld [vmem:[#allocation194_spill] sm:$0xff]  ;;  %v1785_v59 = vsel %vm1764_vm4, %v1752_v61, %v9323_v33  ;;  %v9324_v48 = vld [vmem:[#allocation60_spill] sm:$0xff] }
 0x266   : > { %v1632_v25 = vpop.permute.xlu1 %1631  ;;  %v1881_v18 = vsel %vm1863_vm7, %v1848_v37, %v9318_v13  ;;  %v1913_v43 = vsel %vm1896_vm8, %v1880_v44, %v9319_v49  ;;  %v1784_v35 = vsel %vm1764_vm4, %v1751_v24, %v9320_v54  ;;  %v9321_v26 = vld [vmem:[#allocation54_spill] sm:$0xff]  ;;  %v9322_v22 = vld [vmem:[#allocation197_spill] sm:$0xff]  ;;  %v9325_v63 = vld [vmem:[#allocation148_spill] sm:$0xff] }
 0x267   : > { %v1944_v39 = vsel %vm1929_vm9, %v1911_v57, %v1632_v25  ;;  %v1638_v50 = vpop.permute.xlu0 %1637  ;;  %v1816_v10 = vsel %vm1797_vm5, %v1783_v62, %v9321_v26  ;;  %v1914_v34 = vsel %vm1896_vm8, %v1881_v18, %v9322_v22  ;;  %v1817_v27 = vsel %vm1797_vm5, %v1784_v35, %v9324_v48  ;;  %v9326_v38 = vld [vmem:[#allocation58_spill] sm:$0xff]  ;;  %v9327_v52 = vld [vmem:[#allocation151_spill] sm:$0xff]  ;;  %v9328_v40 = vld [vmem:[#allocation172_spill] sm:$0xff] }
 0x268   : > { %4993 = vmatprep.mubr.msk.f32.mxu0 %vm1974_vm10, %v1944_v39  ;;  %v1849_v2 = vsel %vm1830_vm6, %v1816_v10, %v9325_v63  ;;  %v1947_v14 = vsel %vm1929_vm9, %v1914_v34, %v1638_v50  ;;  %v1818_v51 = vsel %vm1797_vm5, %v1785_v59, %v9326_v38  ;;  %v1850_v46 = vsel %vm1830_vm6, %v1817_v27, %v9327_v52  ;;  %v9329_v6 = vld [vmem:[#allocation150_spill] sm:$0xff]  ;;  %v9330_v56 = vld [vmem:[#allocation175_spill] sm:$0xff]  ;;  %v9331_v41 = vld [vmem:[#allocation196_spill] sm:$0xff] }
 0x269   : > { %4994 = vmatmul.mubr.msk.f32.gmra.mxu0 %vm1974_vm10, %v1945_v15  ;;  %v1882_v7 = vsel %vm1863_vm7, %v1849_v2, %v9328_v40  ;;  %v1851_v47 = vsel %vm1830_vm6, %v1818_v51, %v9329_v6  ;;  %v1883_v29 = vsel %vm1863_vm7, %v1850_v46, %v9330_v56  ;;  %v9332_v57 = vld [vmem:[#allocation174_spill] sm:$0xff]  ;;  %v5114_v19 = vld [vmem:[#allocation2 + $0xf8] sm:$0xff]  ;;  %v9333_v30 = vld [vmem:[#allocation75_spill] sm:$0xff] }
 0x26a   : > { %v1636_v31 = vpop.permute.xlu1 %1635  ;;  %v1915_v21 = vsel %vm1896_vm8, %v1882_v7, %v9331_v41  ;;  %v1884_v25 = vsel %vm1863_vm7, %v1851_v47, %v9332_v57  ;;  %v1916_v55 = vsel %vm1896_vm8, %v1883_v29, %v6572_v42  ;;  %v1720_v36 = vsel %vm297_vm0, %v5114_v19, %v9333_v30  ;;  %v9334_v0 = vld [vmem:[#allocation35_spill] sm:$0xff]  ;;  %v9335_v9 = vld [vmem:[#allocation116_spill] sm:$0xff]  ;;  %v5115_v42 = vld [vmem:[#allocation2 + $0x108] sm:$0xff] }
 0x26b   : > { %v1946_v1 = vsel %vm1929_vm9, %v1913_v43, %v1636_v31  ;;  %v1642_v17 = vpop.permute.xlu0 %1641  ;;  %v1917_v39 = vsel %vm1896_vm8, %v1884_v25, %v9334_v0  ;;  %v1753_v4 = vsel %vm1731_vm3, %v1720_v36, %v9335_v9  ;;  %v9336_v20 = vld [vmem:[#allocation73_spill] sm:$0xff]  ;;  %v9337_v15 = vld [vmem:[#allocation138_spill] sm:$0xff]  ;;  %v9338_v3 = vld [vmem:[#allocation115_spill] sm:$0xff] }
 0x26c   : > { %4996 = vmatprep.mubr.msk.f32.mxu0 %vm1974_vm10, %v1946_v1  ;;  %v1949_v28 = vsel %vm1929_vm9, %v1916_v55, %v1642_v17  ;;  %v1721_v32 = vsel %vm297_vm0, %v5115_v42, %v9336_v20  ;;  %v1786_v50 = vsel %vm1764_vm4, %v1753_v4, %v9337_v15  ;;  %v9339_v61 = vld [vmem:[#allocation64_spill] sm:$0xff]  ;;  %v9340_v37 = vld [vmem:[#allocation137_spill] sm:$0xff]  ;;  %v9342_v5 = vld [vmem:[#allocation62_spill] sm:$0xff] }
 0x26d   : > { %4997 = vmatmul.mubr.msk.f32.gmra.mxu0 %vm1974_vm10, %v1947_v14  ;;  %v1754_v8 = vsel %vm1731_vm3, %v1721_v32, %v9338_v3  ;;  %v1819_v11 = vsel %vm1797_vm5, %v1786_v50, %v9339_v61  ;;  %v9341_v44 = vld [vmem:[#allocation153_spill] sm:$0xff]  ;;  %v9344_v49 = vld [vmem:[#allocation152_spill] sm:$0xff]  ;;  %v5116_v22 = vld [vmem:[#allocation2 + $0x110] sm:$0xff] }
 0x26e   : > { %v1640_v45 = vpop.permute.xlu1 %1639  ;;  %v1787_v23 = vsel %vm1764_vm4, %v1754_v8, %v9340_v37  ;;  %v1852_v16 = vsel %vm1830_vm6, %v1819_v11, %v9341_v44  ;;  %v9343_v13 = vld [vmem:[#allocation177_spill] sm:$0xff]  ;;  %v9345_v35 = vld [vmem:[#allocation176_spill] sm:$0xff]  ;;  %v9346_v34 = vld [vmem:[#allocation79_spill] sm:$0xff] }
 0x26f   : > { %v1948_v53 = vsel %vm1929_vm9, %v1915_v21, %v1640_v45  ;;  %v1644_v12 = vpop.permute.xlu0 %1643  ;;  %v1820_v62 = vsel %vm1797_vm5, %v1787_v23, %v9342_v5  ;;  %v1885_v18 = vsel %vm1863_vm7, %v1852_v16, %v9343_v13  ;;  %v1722_v1 = vsel %vm297_vm0, %v5116_v22, %v9346_v34  ;;  %v9347_v48 = vld [vmem:[#allocation118_spill] sm:$0xff]  ;;  %v5117_v2 = vld [vmem:[#allocation2 + $0x120] sm:$0xff]  ;;  %v9349_v38 = vld [vmem:[#allocation140_spill] sm:$0xff] }
 0x270   : > { %4999 = vmatprep.mubr.msk.f32.mxu0 %vm1974_vm10, %v1948_v53  ;;  %v1950_v60 = vsel %vm1929_vm9, %v1917_v39, %v1644_v12  ;;  %v1853_v43 = vsel %vm1830_vm6, %v1820_v62, %v9344_v49  ;;  %v1755_v27 = vsel %vm1731_vm3, %v1722_v1, %v9347_v48  ;;  %v9348_v14 = vld [vmem:[#allocation77_spill] sm:$0xff]  ;;  %v9351_v7 = vld [vmem:[#allocation68_spill] sm:$0xff]  ;;  %v9352_v47 = vld [vmem:[#allocation139_spill] sm:$0xff] }
 0x271   : > { %5000 = vmatmul.mubr.msk.f32.gmra.mxu0 %vm1974_vm10, %v1949_v28  ;;  %v1886_v26 = vsel %vm1863_vm7, %v1853_v43, %v9345_v35  ;;  %v1723_v17 = vsel %vm297_vm0, %v5117_v2, %v9348_v14  ;;  %v1788_v51 = vsel %vm1764_vm4, %v1755_v27, %v9349_v38  ;;  %v9350_v46 = vld [vmem:[#allocation117_spill] sm:$0xff]  ;;  %v9353_v29 = vld [vmem:[#allocation155_spill] sm:$0xff]  ;;  %v9354_v45 = vld [vmem:[#allocation66_spill] sm:$0xff] }
 0x272   : > { %v1518_v58 = vpop.permute.xlu1 %1517  ;;  %5002 = vmatprep.mubr.msk.f32.mxu0 %vm1974_vm10, %v1950_v60  ;;  %v1756_v40 = vsel %vm1731_vm3, %v1723_v17, %v9350_v46  ;;  %v1821_v6 = vsel %vm1797_vm5, %v1788_v51, %v9351_v7  ;;  %v9355_v25 = vld [vmem:[#allocation179_spill] sm:$0xff]  ;;  %v9356_v53 = vld [vmem:[#allocation154_spill] sm:$0xff]  ;;  %v9359_v20 = vld [vmem:[#allocation120_spill] sm:$0xff] }
 0x273   : > { %v1520_v24 = vpop.permute.xlu0 %1519  ;;  %v1918_v31 = vsel %vm1896_vm8, %v1885_v18, %v1518_v58  ;;  %v1789_v56 = vsel %vm1764_vm4, %v1756_v40, %v9352_v47  ;;  %v1854_v41 = vsel %vm1830_vm6, %v1821_v6, %v9353_v29  ;;  %v9357_v0 = vld [vmem:[#allocation178_spill] sm:$0xff]  ;;  %v9358_v9 = vld [vmem:[#allocation83_spill] sm:$0xff]  ;;  %v5119_v50 = vld [vmem:[#allocation2 + $0x138] sm:$0xff] }
 0x274   : > { %v1919_v33 = vsel %vm1896_vm8, %v1886_v26, %v1520_v24  ;;  %v1822_v57 = vsel %vm1797_vm5, %v1789_v56, %v9354_v45  ;;  %v1887_v55 = vsel %vm1863_vm7, %v1854_v41, %v9355_v25  ;;  %v5118_v12 = vld [vmem:[#allocation2 + $0x128] sm:$0xff]  ;;  %v9360_v58 = vld [vmem:[#allocation81_spill] sm:$0xff]  ;;  %v9362_v37 = vld [vmem:[#allocation119_spill] sm:$0xff] }
 0x275   : > { %v1855_v19 = vsel %vm1830_vm6, %v1822_v57, %v9356_v53  ;;  %v1724_v4 = vsel %vm297_vm0, %v5118_v12, %v9358_v9  ;;  %v1725_v3 = vsel %vm297_vm0, %v5119_v50, %v9360_v58  ;;  %v9361_v8 = vld [vmem:[#allocation142_spill] sm:$0xff]  ;;  %v9363_v44 = vld [vmem:[#allocation72_spill] sm:$0xff]  ;;  %v9364_v24 = vld [vmem:[#allocation141_spill] sm:$0xff] }
 0x276   : > { %v1646_v54 = vpop.permute.xlu1 %1645  ;;  %v1888_v39 = vsel %vm1863_vm7, %v1855_v19, %v9357_v0  ;;  %v1757_v32 = vsel %vm1731_vm3, %v1724_v4, %v9359_v20  ;;  %v1758_v23 = vsel %vm1731_vm3, %v1725_v3, %v9362_v37  ;;  %v9365_v62 = vld [vmem:[#allocation157_spill] sm:$0xff]  ;;  %v9366_v49 = vld [vmem:[#allocation70_spill] sm:$0xff]  ;;  %v9368_v35 = vld [vmem:[#allocation156_spill] sm:$0xff] }
 0x277   : > { %v1951_v10 = vsel %vm1929_vm9, %v1918_v31, %v1646_v54  ;;  %v1648_v59 = vpop.permute.xlu0 %1647  ;;  %v1790_v61 = vsel %vm1764_vm4, %v1757_v32, %v9361_v8  ;;  %v1791_v5 = vsel %vm1764_vm4, %v1758_v23, %v9364_v24  ;;  %v9367_v31 = vld [vmem:[#allocation181_spill] sm:$0xff]  ;;  %v9369_v34 = vld [vmem:[#allocation180_spill] sm:$0xff]  ;;  %v9370_v48 = vld [vmem:[#allocation87_spill] sm:$0xff] }
 0x278   : > { %5003 = vmatmul.mubr.msk.f32.gmra.mxu0 %vm1974_vm10, %v1951_v10  ;;  %v1952_v63 = vsel %vm1929_vm9, %v1919_v33, %v1648_v59  ;;  %v1823_v16 = vsel %vm1797_vm5, %v1790_v61, %v9363_v44  ;;  %v1824_v43 = vsel %vm1797_vm5, %v1791_v5, %v9366_v49  ;;  %v5120_v59 = vld [vmem:[#allocation2 + $0x140] sm:$0xff]  ;;  %v9371_v14 = vld [vmem:[#allocation122_spill] sm:$0xff]  ;;  %v5121_v51 = vld [vmem:[#allocation2 + $0x150] sm:$0xff] }
 0x279   : > { %5005 = vmatprep.mubr.msk.f32.mxu0 %vm1974_vm10, %v1952_v63  ;;  %v1856_v13 = vsel %vm1830_vm6, %v1823_v16, %v9365_v62  ;;  %v1857_v26 = vsel %vm1830_vm6, %v1824_v43, %v9368_v35  ;;  %v1726_v27 = vsel %vm297_vm0, %v5120_v59, %v9370_v48  ;;  %v9373_v40 = vld [vmem:[#allocation144_spill] sm:$0xff]  ;;  %v9374_v47 = vld [vmem:[#allocation121_spill] sm:$0xff]  ;;  %v9377_v57 = vld [vmem:[#allocation159_spill] sm:$0xff] }
 0x27a   : > { %v1522_v52 = vpop.permute.xlu1 %1521  ;;  %v1889_v54 = vsel %vm1863_vm7, %v1856_v13, %v9367_v31  ;;  %v1890_v1 = vsel %vm1863_vm7, %v1857_v26, %v9369_v34  ;;  %v1759_v17 = vsel %vm1731_vm3, %v1726_v27, %v9371_v14  ;;  %v9375_v29 = vld [vmem:[#allocation76_spill] sm:$0xff]  ;;  %v9378_v53 = vld [vmem:[#allocation74_spill] sm:$0xff]  ;;  %v9382_v20 = vld [vmem:[#allocation91_spill] sm:$0xff] }
 0x27b   : > { %v1524_v21 = vpop.permute.xlu0 %1523  ;;  %v1920_v30 = vsel %vm1896_vm8, %v1887_v55, %v1522_v52  ;;  %v9372_v52 = vld [vmem:[#allocation85_spill] sm:$0xff]  ;;  %v1792_v7 = vsel %vm1764_vm4, %v1759_v17, %v9373_v40  ;;  %v9380_v0 = vld [vmem:[#allocation158_spill] sm:$0xff]  ;;  %v9383_v58 = vld [vmem:[#allocation124_spill] sm:$0xff] }
 0x27c   : > { %v1921_v60 = vsel %vm1896_vm8, %v1888_v39, %v1524_v21  ;;  %v1727_v46 = vsel %vm297_vm0, %v5121_v51, %v9372_v52  ;;  %v1825_v41 = vsel %vm1797_vm5, %v1792_v7, %v9375_v29  ;;  %v9376_v21 = vld [vmem:[#allocation143_spill] sm:$0xff]  ;;  %v9381_v9 = vld [vmem:[#allocation182_spill] sm:$0xff]  ;;  %v9387_v62 = vld [vmem:[#allocation80_spill] sm:$0xff] }
 0x27d   : > { %v1760_v56 = vsel %vm1731_vm3, %v1727_v46, %v9374_v47  ;;  %v1858_v25 = vsel %vm1830_vm6, %v1825_v41, %v9377_v57  ;;  %v5123_v61 = vld [vmem:[#allocation2 + $0x168] sm:$0xff]  ;;  %v9386_v24 = vld [vmem:[#allocation123_spill] sm:$0xff]  ;;  %v9389_v43 = vld [vmem:[#allocation161_spill] sm:$0xff] }
 0x27e   : > { %v1650_v36 = vpop.permute.xlu1 %1649  ;;  %v1793_v45 = vsel %vm1764_vm4, %v1760_v56, %v9376_v21  ;;  %v9385_v23 = vld [vmem:[#allocation146_spill] sm:$0xff]  ;;  %v9393_v27 = vld [vmem:[#allocation184_spill] sm:$0xff]  ;;  %v5124_v17 = vld [vmem:[#allocation2 + $0x170] sm:$0xff] }
 0x27f   : > { %v1953_v28 = vsel %vm1929_vm9, %v1920_v30, %v1650_v36  ;;  %v1652_v42 = vpop.permute.xlu0 %1651  ;;  %v1826_v19 = vsel %vm1797_vm5, %v1793_v45, %v9378_v53  ;;  %v9379_v30 = vld [vmem:[#allocation183_spill] sm:$0xff]  ;;  %v9390_v35 = vld [vmem:[#allocation78_spill] sm:$0xff]  ;;  %v9395_v40 = vld [vmem:[#allocation125_spill] sm:$0xff] }
 0x280   : > { %5006 = vmatmul.mubr.msk.f32.gmra.mxu0 %vm1974_vm10, %v1953_v28  ;;  %v1954_v15 = vsel %vm1929_vm9, %v1921_v60, %v1652_v42  ;;  %v1891_v36 = vsel %vm1863_vm7, %v1858_v25, %v9379_v30  ;;  %v1859_v39 = vsel %vm1830_vm6, %v1826_v19, %v9380_v0  ;;  %v5122_v42 = vld [vmem:[#allocation2 + $0x158] sm:$0xff]  ;;  %v2493_v34 = vld [vmem:[#allocation2 + $0x9] sm:$0xff]  ;;  %v2492_v14 = vld [vmem:[#allocation2 + $0x1] sm:$0xff] }
 0x281   : > { %5008 = vmatprep.mubr.msk.f32.mxu0 %vm1974_vm10, %v1954_v15  ;;  %v1892_v4 = vsel %vm1863_vm7, %v1859_v39, %v9381_v9  ;;  %v1728_v32 = vsel %vm297_vm0, %v5122_v42, %v9382_v20  ;;  %2782 = vrot.lane.b32.xlu1 %v2493_v34, %s5148_s28  ;;  %v9396_v47 = vld [vmem:[#allocation147_spill] sm:$0xff]  ;;  %v9397_v41 = vld [vmem:[#allocation82_spill] sm:$0xff]  ;;  %v9402_v9 = vmov 0.0  }
 0x282   : > { %v1526_v11 = vpop.permute.xlu1 %1525  ;;  %v1761_v3 = vsel %vm1731_vm3, %v1728_v32, %v9383_v58  ;;  %2780 = vrot.lane.b32.xlu0 %v2492_v14, %s5148_s28  ;;  %v9398_v45 = vld [vmem:[#allocation162_spill] sm:$0xff] }
 0x283   : > { %v1528_v18 = vpop.permute.xlu0 %1527  ;;  %v1922_v10 = vsel %vm1896_vm8, %v1889_v54, %v1526_v11  ;;  %v9384_v11 = vld [vmem:[#allocation89_spill] sm:$0xff]  ;;  %v1794_v44 = vsel %vm1764_vm4, %v1761_v3, %v9385_v23  ;;  %v9399_v25 = vld [vmem:[#allocation186_spill] sm:$0xff] }
 0x284   : > { %v1923_v63 = vsel %vm1896_vm8, %v1890_v1, %v1528_v18  ;;  %v1729_v37 = vsel %vm297_vm0, %v5123_v61, %v9384_v11  ;;  %v1827_v13 = vsel %vm1797_vm5, %v1794_v44, %v9387_v62  ;;  %v9388_v18 = vld [vmem:[#allocation145_spill] sm:$0xff]  ;;  %v9392_v1 = vld [vmem:[#allocation160_spill] sm:$0xff] }
 0x285   : > { %v1762_v5 = vsel %vm1731_vm3, %v1729_v37, %v9386_v24  ;;  %v1860_v31 = vsel %vm1830_vm6, %v1827_v13, %v9389_v43 }
 0x286   : > { %v1654_v22 = vpop.permute.xlu1 %1653  ;;  %v1795_v49 = vsel %vm1764_vm4, %v1762_v5, %v9388_v18 }
 0x287   : > { %v1955_v33 = vsel %vm1929_vm9, %v1922_v10, %v1654_v22  ;;  %v1656_v2 = vpop.permute.xlu0 %1655  ;;  %v1828_v26 = vsel %vm1797_vm5, %v1795_v49, %v9390_v35  ;;  %v9391_v10 = vld [vmem:[#allocation185_spill] sm:$0xff] }
 0x288   : > { %5009 = vmatmul.mubr.msk.f32.gmra.mxu0 %vm1974_vm10, %v1955_v33  ;;  %v1956_v38 = vsel %vm1929_vm9, %v1923_v63, %v1656_v2  ;;  %v1893_v22 = vsel %vm1863_vm7, %v1860_v31, %v9391_v10  ;;  %v1861_v33 = vsel %vm1830_vm6, %v1828_v26, %v9392_v1 }
 0x289   : > { %5011 = vmatprep.mubr.msk.f32.mxu0 %vm1974_vm10, %v1956_v38  ;;  %v1894_v63 = vsel %vm1863_vm7, %v1861_v33, %v9393_v27  ;;  %v9394_v38 = vld [vmem:[#allocation95_spill] sm:$0xff] }
 0x28a   : > { %v1530_v6 = vpop.permute.xlu1 %1529  ;;  %v1730_v51 = vsel %vm297_vm0, %v5124_v17, %v9394_v38 }
 0x28b   : > { %v1532_v55 = vpop.permute.xlu0 %1531  ;;  %v1924_v28 = vsel %vm1896_vm8, %v1891_v36, %v1530_v6  ;;  %v1763_v7 = vsel %vm1731_vm3, %v1730_v51, %v9395_v40  ;;  %v7066_v36 = vld [vmem:[%s8840_s2] ss:$0 sm:$0xff] }
 0x28c   : > { %v1925_v15 = vsel %vm1896_vm8, %v1892_v4, %v1532_v55  ;;  %v1796_v56 = vsel %vm1764_vm4, %v1763_v7, %v9396_v47 }
 0x28d   : > { %v1829_v21 = vsel %vm1797_vm5, %v1796_v56, %v9397_v41 }
 0x28e   : > { %v1658_v12 = vpop.permute.xlu1 %1657  ;;  %v1862_v57 = vsel %vm1830_vm6, %v1829_v21, %v9398_v45 }
 0x28f   : > { %v1957_v60 = vsel %vm1929_vm9, %v1924_v28, %v1658_v12  ;;  %v1660_v50 = vpop.permute.xlu0 %1659  ;;  %v1895_v55 = vsel %vm1863_vm7, %v1862_v57, %v9399_v25 }
 0x290   : > { %5012 = vmatmul.mubr.msk.f32.gmra.mxu0 %vm1974_vm10, %v1957_v60  ;;  %v1958_v8 = vsel %vm1929_vm9, %v1925_v15, %v1660_v50 }
 0x291   : > { %5014 = vmatprep.mubr.msk.f32.mxu0 %vm1974_vm10, %v1958_v8 }
 0x292   : > { %v1534_v16 = vpop.permute.xlu1 %1533 }
 0x293   : > { %v1536_v54 = vpop.permute.xlu0 %1535  ;;  %v1926_v59 = vsel %vm1896_vm8, %v1893_v22, %v1534_v16 }
 0x294   : > { %v1927_v52 = vsel %vm1896_vm8, %v1894_v63, %v1536_v54 }
 0x296   : > { %v1662_v48 = vpop.permute.xlu1 %1661 }
 0x297   : > { %v1959_v2 = vsel %vm1929_vm9, %v1926_v59, %v1662_v48  ;;  %v1664_v46 = vpop.permute.xlu0 %1663 }
 0x298   : > { %5015 = vmatmul.mubr.msk.f32.gmra.mxu0 %vm1974_vm10, %v1959_v2  ;;  %v1960_v6 = vsel %vm1929_vm9, %v1927_v52, %v1664_v46 }
 0x299   : > { %5017 = vmatprep.mubr.msk.f32.mxu0 %vm1974_vm10, %v1960_v6 }
 0x29a   : > { %v1538_v29 = vpop.permute.xlu1 %1537 }
 0x29b   : > { %v1928_v53 = vsel %vm1896_vm8, %v1895_v55, %v1538_v29 }
 0x29e   : > { %v1666_v19 = vpop.permute.xlu1 %1665 }
 0x29f   : > { %v1961_v30 = vsel %vm1929_vm9, %v1928_v53, %v1666_v19 }
 0x2a0   : > { %5018 = vmatmul.mubr.msk.f32.gmra.mxu0 %vm1974_vm10, %v1961_v30 }
 0x30d   : > { %v4974_v0 = vpop.f32.mrf.mxu0 }
 0x30e   : > { %v7069_v39 = vadd.f32 %v4974_v0, %v7066_v36 }
 0x30f   : > { %v2141_v28 = vpop.f32.mrf.mxu0 }
 0x310   : > { %9400 = vst [vmem:[#allocation36_spill] sm:$0xff] %v7069_v39  ;;  %vm2301_vm11 = vcmp.gt.f32.partialorder %v7069_v39, 1.0  ;;  %v7073_v12 = vadd.f32 %v7066_v36, %v2141_v28 }
 0x311   : > { %v7076_v4 = vsel %vm2301_vm11, 1.0, %v9402_v9  ;;  %v4977_v60 = vpop.f32.mrf.mxu0 }
 0x312   : > { %9401 = vst [vmem:[#allocation38_spill] sm:$0xff] %v7073_v12  ;;  %9403 = vst [vmem:[#allocation93_spill] sm:$0xff] %v7076_v4  ;;  %vm2300_vm12 = vcmp.gt.f32.partialorder %v7073_v12, 1.0  ;;  %v7084_v20 = vadd.f32 %v4977_v60, %v7066_v36 }
 0x313   : > { %2429 = vst.msk [vmem:[#allocation2 + $0x21] sm:$0xff] %vm297_vm0, %v7076_v4  ;;  %v7087_v32 = vsel %vm2300_vm12, 1.0, %v9402_v9  ;;  %v2151_v15 = vpop.f32.mrf.mxu0 }
 0x314   : > { %9404 = vst [vmem:[#allocation40_spill] sm:$0xff] %v7084_v20  ;;  %9405 = vst [vmem:[#allocation98_spill] sm:$0xff] %v7087_v32  ;;  %vm2303_vm13 = vcmp.gt.f32.partialorder %v7084_v20, 1.0  ;;  %v7095_v58 = vadd.f32 %v7066_v36, %v2151_v15 }
 0x315   : > { %2428 = vst.msk [vmem:[#allocation2 + $0x19] sm:$0xff] %vm297_vm0, %v7087_v32  ;;  %v7098_v3 = vsel %vm2303_vm13, 1.0, %v9402_v9  ;;  %v4980_v8 = vpop.f32.mrf.mxu0 }
 0x316   : > { %9406 = vst [vmem:[#allocation42_spill] sm:$0xff] %v7095_v58  ;;  %9407 = vst [vmem:[#allocation43_spill] sm:$0xff] %v7098_v3  ;;  %vm2302_vm14 = vcmp.gt.f32.partialorder %v7095_v58, 1.0  ;;  %v7106_v11 = vadd.f32 %v4980_v8, %v7066_v36 }
 0x317   : > { %2431 = vst.msk [vmem:[#allocation2 + $0x39] sm:$0xff] %vm297_vm0, %v7098_v3  ;;  %v7109_v37 = vsel %vm2302_vm14, 1.0, %v9402_v9  ;;  %v2161_v23 = vpop.f32.mrf.mxu0 }
 0x318   : > { %9408 = vst [vmem:[#allocation97_spill] sm:$0xff] %v7106_v11  ;;  %9409 = vst [vmem:[#allocation101_spill] sm:$0xff] %v7109_v37  ;;  %vm2305_vm15 = vcmp.gt.f32.partialorder %v7106_v11, 1.0  ;;  %v7117_v16 = vadd.f32 %v7066_v36, %v2161_v23 }
 0x319   : > { %2430 = vst.msk [vmem:[#allocation2 + $0x31] sm:$0xff] %vm297_vm0, %v7109_v37  ;;  %v7120_v24 = vsel %vm2305_vm15, 1.0, %v9402_v9  ;;  %v4983_v5 = vpop.f32.mrf.mxu0 }
 0x31a   : > { %9410 = vst [vmem:[#allocation45_spill] sm:$0xff] %v7117_v16  ;;  %9411 = vst [vmem:[#allocation46_spill] sm:$0xff] %v7120_v24  ;;  %v7122_v62 = vld [vmem:[#allocation2 + $0x21] sm:$0xff]  ;;  %vm2304_vm1 = vcmp.gt.f32.partialorder %v7117_v16, 1.0  ;;  %v7130_v18 = vadd.f32 %v4983_v5, %v7066_v36 }
 0x31b   : > { %2433 = vst.msk [vmem:[#allocation2 + $0x51] sm:$0xff] %vm297_vm0, %v7120_v24  ;;  %2786 = vrot.lane.b32.xlu1 %v7122_v62, %s5148_s28  ;;  %v7135_v49 = vsel %vm2304_vm1, 1.0, %v9402_v9  ;;  %v2171_v43 = vpop.f32.mrf.mxu0 }
 0x31c   : > { %9412 = vst [vmem:[#allocation100_spill] sm:$0xff] %v7130_v18  ;;  %9413 = vst [vmem:[#allocation103_spill] sm:$0xff] %v7135_v49  ;;  %v7137_v31 = vld [vmem:[#allocation2 + $0x19] sm:$0xff]  ;;  %vm2307_vm11 = vcmp.gt.f32.partialorder %v7130_v18, 1.0  ;;  %v7145_v35 = vadd.f32 %v7066_v36, %v2171_v43 }
 0x31d   : > { %2432 = vst.msk [vmem:[#allocation2 + $0x49] sm:$0xff] %vm297_vm0, %v7135_v49  ;;  %2784 = vrot.lane.b32.xlu0 %v7137_v31, %s5148_s28  ;;  %v7150_v26 = vsel %vm2307_vm11, 1.0, %v9402_v9  ;;  %v4986_v10 = vpop.f32.mrf.mxu0 }
 0x31e   : > { %9414 = vst [vmem:[#allocation48_spill] sm:$0xff] %v7145_v35  ;;  %9415 = vst [vmem:[#allocation49_spill] sm:$0xff] %v7150_v26  ;;  %v7152_v22 = vld [vmem:[#allocation2 + $0x39] sm:$0xff]  ;;  %vm2306_vm12 = vcmp.gt.f32.partialorder %v7145_v35, 1.0  ;;  %v7160_v1 = vadd.f32 %v4986_v10, %v7066_v36 }
 0x31f   : > { %2435 = vst.msk [vmem:[#allocation2 + $0x69] sm:$0xff] %vm297_vm0, %v7150_v26  ;;  %2790 = vrot.lane.b32.xlu1 %v7152_v22, %s5148_s28  ;;  %v7165_v33 = vsel %vm2306_vm12, 1.0, %v9402_v9  ;;  %v2181_v59 = vpop.f32.mrf.mxu0 }
 0x320   : > { %9416 = vst [vmem:[#allocation102_spill] sm:$0xff] %v7160_v1  ;;  %9417 = vst [vmem:[#allocation51_spill] sm:$0xff] %v7165_v33  ;;  %v7167_v48 = vld [vmem:[#allocation2 + $0x31] sm:$0xff]  ;;  %vm2309_vm13 = vcmp.gt.f32.partialorder %v7160_v1, 1.0  ;;  %v7175_v63 = vadd.f32 %v7066_v36, %v2181_v59 }
 0x321   : > { %2434 = vst.msk [vmem:[#allocation2 + $0x61] sm:$0xff] %vm297_vm0, %v7165_v33  ;;  %2788 = vrot.lane.b32.xlu0 %v7167_v48, %s5148_s28  ;;  %v7180_v2 = vsel %vm2309_vm13, 1.0, %v9402_v9  ;;  %v4989_v14 = vpop.f32.mrf.mxu0 }
 0x322   : > { %9418 = vst [vmem:[#allocation53_spill] sm:$0xff] %v7175_v63  ;;  %9419 = vst [vmem:[#allocation104_spill] sm:$0xff] %v7180_v2  ;;  %v7182_v17 = vld [vmem:[#allocation2 + $0x51] sm:$0xff]  ;;  %vm2308_vm14 = vcmp.gt.f32.partialorder %v7175_v63, 1.0  ;;  %v7190_v51 = vadd.f32 %v4989_v14, %v7066_v36 }
 0x323   : > { %2437 = vst.msk [vmem:[#allocation2 + $0x81] sm:$0xff] %vm297_vm0, %v7180_v2  ;;  %2794 = vrot.lane.b32.xlu1 %v7182_v17, %s5148_s28  ;;  %v7195_v52 = vsel %vm2308_vm14, 1.0, %v9402_v9  ;;  %v2191_v46 = vpop.f32.mrf.mxu0 }
 0x324   : > { %9420 = vst [vmem:[#allocation55_spill] sm:$0xff] %v7190_v51  ;;  %9421 = vst [vmem:[#allocation57_spill] sm:$0xff] %v7195_v52  ;;  %v7197_v40 = vld [vmem:[#allocation2 + $0x49] sm:$0xff]  ;;  %vm2311_vm15 = vcmp.gt.f32.partialorder %v7190_v51, 1.0  ;;  %v7205_v6 = vadd.f32 %v7066_v36, %v2191_v46 }
 0x325   : > { %2436 = vst.msk [vmem:[#allocation2 + $0x79] sm:$0xff] %vm297_vm0, %v7195_v52  ;;  %2792 = vrot.lane.b32.xlu0 %v7197_v40, %s5148_s28  ;;  %v7210_v47 = vsel %vm2311_vm15, 1.0, %v9402_v9  ;;  %v4992_v56 = vpop.f32.mrf.mxu0  ;;  %v7584_v52 = vld [vmem:[#allocation2 + $0x20] sm:$0xff]  ;;  %v7604_v63 = vld [vmem:[#allocation2 + $0x50] sm:$0xff]  ;;  %v7610_v1 = vld [vmem:[#allocation2 + $0x48] sm:$0xff] }
 0x326   : > { %9422 = vst [vmem:[#allocation86_spill] sm:$0xff] %v7205_v6  ;;  %9423 = vst [vmem:[#allocation163_spill] sm:$0xff] %v7210_v47  ;;  %v7212_v29 = vld [vmem:[#allocation2 + $0x69] sm:$0xff]  ;;  %vm2310_vm1 = vcmp.gt.f32.partialorder %v7205_v6, 1.0  ;;  %v7220_v21 = vadd.f32 %v4992_v56, %v7066_v36 }
 0x327   : > { %2439 = vst.msk [vmem:[#allocation2 + $0x99] sm:$0xff] %vm297_vm0, %v7210_v47  ;;  %2798 = vrot.lane.b32.xlu1 %v7212_v29, %s5148_s28  ;;  %v7225_v45 = vsel %vm2310_vm1, 1.0, %v9402_v9  ;;  %v2201_v57 = vpop.f32.mrf.mxu0 }
 0x328   : > { %9424 = vst [vmem:[#allocation106_spill] sm:$0xff] %v7220_v21  ;;  %9425 = vst [vmem:[#allocation126_spill] sm:$0xff] %v7225_v45  ;;  %v7227_v25 = vld [vmem:[#allocation2 + $0x61] sm:$0xff]  ;;  %vm2313_vm11 = vcmp.gt.f32.partialorder %v7220_v21, 1.0  ;;  %v7235_v53 = vadd.f32 %v7066_v36, %v2201_v57 }
 0x329   : > { %2438 = vst.msk [vmem:[#allocation2 + $0x91] sm:$0xff] %vm297_vm0, %v7225_v45  ;;  %2796 = vrot.lane.b32.xlu0 %v7227_v25, %s5148_s28  ;;  %v7240_v19 = vsel %vm2313_vm11, 1.0, %v9402_v9  ;;  %v4995_v30 = vpop.f32.mrf.mxu0  ;;  %v7616_v35 = vld [vmem:[#allocation2 + $0x68] sm:$0xff]  ;;  %v7620_v26 = vld [vmem:[#allocation2 + $0x60] sm:$0xff] }
 0x32a   : > { %9426 = vst [vmem:[#allocation165_spill] sm:$0xff] %v7235_v53  ;;  %9427 = vst [vmem:[#allocation187_spill] sm:$0xff] %v7240_v19  ;;  %v2503_v0 = vld [vmem:[#allocation2 + $0x81] sm:$0xff]  ;;  %vm2312_vm12 = vcmp.gt.f32.partialorder %v7235_v53, 1.0  ;;  %v7248_v60 = vadd.f32 %v4995_v30, %v7066_v36 }
 0x32b   : > { %2441 = vst.msk [vmem:[#allocation2 + $0xb1] sm:$0xff] %vm297_vm0, %v7240_v19  ;;  %2802 = vrot.lane.b32.xlu1 %v2503_v0, %s5148_s28  ;;  %v7252_v15 = vsel %vm2312_vm12, 1.0, %v9402_v9  ;;  %v2211_v8 = vpop.f32.mrf.mxu0 }
 0x32c   : > { %9428 = vst [vmem:[#allocation128_spill] sm:$0xff] %v7248_v60  ;;  %9429 = vst [vmem:[#allocation37_spill] sm:$0xff] %v7252_v15  ;;  %v7254_v23 = vld [vmem:[#allocation2 + $0x79] sm:$0xff]  ;;  %vm2315_vm13 = vcmp.gt.f32.partialorder %v7248_v60, 1.0  ;;  %v7262_v43 = vadd.f32 %v7066_v36, %v2211_v8 }
 0x32d   : > { %2440 = vst.msk [vmem:[#allocation2 + $0xa9] sm:$0xff] %vm297_vm0, %v7252_v15  ;;  %2800 = vrot.lane.b32.xlu0 %v7254_v23, %s5148_s28  ;;  %v7267_v10 = vsel %vm2315_vm13, 1.0, %v9402_v9  ;;  %v4998_v59 = vpop.f32.mrf.mxu0  ;;  %v7626_v49 = vld [vmem:[#allocation2 + $0x80] sm:$0xff]  ;;  %v7632_v24 = vld [vmem:[#allocation2 + $0x78] sm:$0xff] }
 0x32e   : > { %9430 = vst [vmem:[#allocation189_spill] sm:$0xff] %v7262_v43  ;;  %9431 = vst [vmem:[#allocation59_spill] sm:$0xff] %v7267_v10  ;;  %v2505_v14 = vld [vmem:[#allocation2 + $0x99] sm:$0xff]  ;;  %vm2314_vm14 = vcmp.gt.f32.partialorder %v7262_v43, 1.0  ;;  %v7275_v56 = vadd.f32 %v4998_v59, %v7066_v36 }
 0x32f   : > { %2443 = vst.msk [vmem:[#allocation2 + $0xc9] sm:$0xff] %vm297_vm0, %v7267_v10  ;;  %2806 = vrot.lane.b32.xlu1 %v2505_v14, %s5148_s28  ;;  %v7279_v57 = vsel %vm2314_vm14, 1.0, %v9402_v9  ;;  %v2221_v30 = vpop.f32.mrf.mxu0 }
 0x330   : > { %9432 = vst [vmem:[#allocation41_spill] sm:$0xff] %v7275_v56  ;;  %9433 = vst [vmem:[#allocation84_spill] sm:$0xff] %v7279_v57  ;;  %v2504_v0 = vld [vmem:[#allocation2 + $0x91] sm:$0xff]  ;;  %vm2317_vm15 = vcmp.gt.f32.partialorder %v7275_v56, 1.0  ;;  %v7287_v46 = vadd.f32 %v7066_v36, %v2221_v30 }
 0x331   : > { %2442 = vst.msk [vmem:[#allocation2 + $0xc1] sm:$0xff] %vm297_vm0, %v7279_v57  ;;  %2804 = vrot.lane.b32.xlu0 %v2504_v0, %s5148_s28  ;;  %v7291_v59 = vsel %vm2317_vm15, 1.0, %v9402_v9  ;;  %v5001_v14 = vpop.f32.mrf.mxu0  ;;  %v7636_v11 = vld [vmem:[#allocation2 + $0x98] sm:$0xff]  ;;  %v7642_v58 = vld [vmem:[#allocation2 + $0x90] sm:$0xff] }
 0x332   : > { %9434 = vst [vmem:[#allocation61_spill] sm:$0xff] %v7287_v46  ;;  %9435 = vst [vmem:[#allocation105_spill] sm:$0xff] %v7291_v59  ;;  %v2507_v5 = vld [vmem:[#allocation2 + $0xb1] sm:$0xff]  ;;  %vm2316_vm1 = vcmp.gt.f32.partialorder %v7287_v46, 1.0  ;;  %v7299_v8 = vadd.f32 %v5001_v14, %v7066_v36 }
 0x333   : > { %2445 = vst.msk [vmem:[#allocation2 + $0xe1] sm:$0xff] %vm297_vm0, %v7291_v59  ;;  %2810 = vrot.lane.b32.xlu1 %v2507_v5, %s5148_s28  ;;  %v7303_v30 = vsel %vm2316_vm1, 1.0, %v9402_v9  ;;  %v2231_v0 = vpop.f32.mrf.mxu0  ;;  %9476 = vst [vmem:[#allocation111_spill] sm:$0xff] %v7636_v11 }
 0x334   : > { %9436 = vst [vmem:[#allocation90_spill] sm:$0xff] %v7299_v8  ;;  %9437 = vst [vmem:[#allocation164_spill] sm:$0xff] %v7303_v30  ;;  %v2506_v55 = vld [vmem:[#allocation2 + $0xa9] sm:$0xff]  ;;  %vm2319_vm11 = vcmp.gt.f32.partialorder %v7299_v8, 1.0  ;;  %v7311_v28 = vadd.f32 %v7066_v36, %v2231_v0 }
 0x335   : > { %2444 = vst.msk [vmem:[#allocation2 + $0xd9] sm:$0xff] %vm297_vm0, %v7303_v30  ;;  %2808 = vrot.lane.b32.xlu0 %v2506_v55, %s5148_s28  ;;  %v7315_v5 = vsel %vm2319_vm11, 1.0, %v9402_v9  ;;  %v7648_v20 = vld [vmem:[#allocation2 + $0xb0] sm:$0xff]  ;;  %v7652_v32 = vld [vmem:[#allocation2 + $0xa8] sm:$0xff] }
 0x336   : > { %9438 = vst [vmem:[#allocation108_spill] sm:$0xff] %v7311_v28  ;;  %9439 = vst [vmem:[#allocation127_spill] sm:$0xff] %v7315_v5  ;;  %v2509_v14 = vld [vmem:[#allocation2 + $0xc9] sm:$0xff]  ;;  %vm2318_vm12 = vcmp.gt.f32.partialorder %v7311_v28, 1.0 }
 0x337   : > { %2447 = vst.msk [vmem:[#allocation2 + $0xf9] sm:$0xff] %vm297_vm0, %v7315_v5  ;;  %2814 = vrot.lane.b32.xlu1 %v2509_v14, %s5148_s28  ;;  %v7324_v41 = vsel %vm2318_vm12, 1.0, %v9402_v9  ;;  %v7537_v28 = vld [vmem:[#allocation2 + $0xca] sm:$0xff]  ;;  %v7541_v5 = vpop.permute.xlu0 %2780  ;;  %9479 = vst [vmem:[#allocation170_spill] sm:$0xff] %v7648_v20 }
 0x338   : > { %9440 = vst [vmem:[#allocation167_spill] sm:$0xff] %v7324_v41  ;;  %v2508_v0 = vld [vmem:[#allocation2 + $0xc1] sm:$0xff]  ;;  %2446 = vst.msk [vmem:[#allocation2 + $0xf1] sm:$0xff] %vm297_vm0, %v7324_v41  ;;  %v5004_v38 = vpop.f32.mrf.mxu0  ;;  %v7535_v41 = vpop.permute.xlu1 %2782 }
 0x339   : > { %2812 = vrot.lane.b32.xlu0 %v2508_v0, %s5148_s28  ;;  %v7332_v7 = vadd.f32 %v5004_v38, %v7066_v36  ;;  %v7543_v8 = vld [vmem:[#allocation2 + $0xc2] sm:$0xff]  ;;  %9480 = vst [vmem:[#allocation114_spill] sm:$0xff] %v7652_v32 }
 0x33a   : > { %v2511_v27 = vld [vmem:[#allocation2 + $0xe1] sm:$0xff]  ;;  %v2241_v14 = vpop.f32.mrf.mxu0 }
 0x33b   : > { %9441 = vst [vmem:[#allocation188_spill] sm:$0xff] %v7332_v7  ;;  %2818 = vrot.lane.b32.xlu1 %v2511_v27, %s5148_s28  ;;  %vm2321_vm13 = vcmp.gt.f32.partialorder %v7332_v7, 1.0  ;;  %v7337_v34 = vadd.f32 %v7066_v36, %v2241_v14  ;;  %v7531_v7 = vld [vmem:[#allocation2 + $0xaa] sm:$0xff]  ;;  %v2543_v30 = vld [vmem:[#allocation2 + $0xe2] sm:$0xff] }
 0x33c   : > { %v2510_v54 = vld [vmem:[#allocation2 + $0xd9] sm:$0xff]  ;;  %v7340_v55 = vsel %vm2321_vm13, 1.0, %v9402_v9  ;;  %v7658_v4 = vld [vmem:[#allocation2 + $0xc8] sm:$0xff] }
 0x33d   : > { %9442 = vst [vmem:[#allocation130_spill] sm:$0xff] %v7337_v34  ;;  %9443 = vst [vmem:[#allocation39_spill] sm:$0xff] %v7340_v55  ;;  %2816 = vrot.lane.b32.xlu0 %v2510_v54, %s5148_s28  ;;  %vm2320_vm14 = vcmp.gt.f32.partialorder %v7337_v34, 1.0  ;;  %v7523_v34 = vld [vmem:[#allocation2 + $0x92] sm:$0xff]  ;;  %v7550_v59 = vld [vmem:[#allocation2 + $0xda] sm:$0xff] }
 0x33e   : > { %2449 = vst.msk [vmem:[#allocation2 + $0x111] sm:$0xff] %vm297_vm0, %v7340_v55  ;;  %v2513_v27 = vld [vmem:[#allocation2 + $0xf9] sm:$0xff]  ;;  %v7349_v38 = vsel %vm2320_vm14, 1.0, %v9402_v9 }
 0x33f   : > { %9444 = vst [vmem:[#allocation191_spill] sm:$0xff] %v7349_v38  ;;  %2822 = vrot.lane.b32.xlu1 %v2513_v27, %s5148_s28  ;;  %2448 = vst.msk [vmem:[#allocation2 + $0x109] sm:$0xff] %vm297_vm0, %v7349_v38  ;;  %v2512_v54 = vld [vmem:[#allocation2 + $0xf1] sm:$0xff]  ;;  %v2545_v57 = vld [vmem:[#allocation2 + $0xfa] sm:$0xff] }
 0x340   : > { %v5007_v13 = vpop.f32.mrf.mxu0  ;;  %v7527_v55 = vld [vmem:[#allocation2 + $0xb2] sm:$0xff] }
 0x341   : > { %2820 = vrot.lane.b32.xlu0 %v2512_v54, %s5148_s28  ;;  %v7358_v0 = vadd.f32 %v5007_v13, %v7066_v36  ;;  %v2544_v43 = vld [vmem:[#allocation2 + $0xf2] sm:$0xff] }
 0x342   : > { %v2251_v44 = vpop.f32.mrf.mxu0 }
 0x343   : > { %9445 = vst [vmem:[#allocation63_spill] sm:$0xff] %v7358_v0  ;;  %vm2323_vm15 = vcmp.gt.f32.partialorder %v7358_v0, 1.0  ;;  %v7362_v61 = vadd.f32 %v7066_v36, %v2251_v44 }
 0x344   : > { %v7365_v27 = vsel %vm2323_vm15, 1.0, %v9402_v9 }
 0x345   : > { %9446 = vst [vmem:[#allocation47_spill] sm:$0xff] %v7362_v61  ;;  %9447 = vst [vmem:[#allocation88_spill] sm:$0xff] %v7365_v27  ;;  %v2515_v14 = vld [vmem:[#allocation2 + $0x111] sm:$0xff]  ;;  %vm2322_vm1 = vcmp.gt.f32.partialorder %v7362_v61, 1.0 }
 0x346   : > { %2451 = vst.msk [vmem:[#allocation2 + $0x129] sm:$0xff] %vm297_vm0, %v7365_v27  ;;  %2826 = vrot.lane.b32.xlu1 %v2515_v14, %s5148_s28  ;;  %v7374_v13 = vsel %vm2322_vm1, 1.0, %v9402_v9  ;;  %v2514_v54 = vld [vmem:[#allocation2 + $0x109] sm:$0xff]  ;;  %v2547_v60 = vld [vmem:[#allocation2 + $0x112] sm:$0xff] }
 0x347   : > { %9448 = vst [vmem:[#allocation65_spill] sm:$0xff] %v7374_v13  ;;  %2450 = vst.msk [vmem:[#allocation2 + $0x121] sm:$0xff] %vm297_vm0, %v7374_v13  ;;  %2824 = vrot.lane.b32.xlu0 %v2514_v54, %s5148_s28 }
 0x348   : > { %v5010_v50 = vpop.f32.mrf.mxu0 }
 0x349   : > { %v7382_v42 = vadd.f32 %v5010_v50, %v7066_v36 }
 0x34a   : > { %v2261_v27 = vpop.f32.mrf.mxu0 }
 0x34b   : > { %9449 = vst [vmem:[#allocation107_spill] sm:$0xff] %v7382_v42  ;;  %vm2325_vm11 = vcmp.gt.f32.partialorder %v7382_v42, 1.0  ;;  %v7386_v14 = vadd.f32 %v7066_v36, %v2261_v27 }
 0x34c   : > { %v7389_v0 = vsel %vm2325_vm11, 1.0, %v9402_v9 }
 0x34d   : > { %9450 = vst [vmem:[#allocation94_spill] sm:$0xff] %v7386_v14  ;;  %9451 = vst [vmem:[#allocation166_spill] sm:$0xff] %v7389_v0  ;;  %v2517_v38 = vld [vmem:[#allocation2 + $0x129] sm:$0xff]  ;;  %vm2324_vm12 = vcmp.gt.f32.partialorder %v7386_v14, 1.0 }
 0x34e   : > { %2453 = vst.msk [vmem:[#allocation2 + $0x141] sm:$0xff] %vm297_vm0, %v7389_v0  ;;  %2830 = vrot.lane.b32.xlu1 %v2517_v38, %s5148_s28  ;;  %v7398_v50 = vsel %vm2324_vm12, 1.0, %v9402_v9  ;;  %v2516_v54 = vld [vmem:[#allocation2 + $0x121] sm:$0xff]  ;;  %v2549_v53 = vld [vmem:[#allocation2 + $0x12a] sm:$0xff] }
 0x34f   : > { %9452 = vst [vmem:[#allocation110_spill] sm:$0xff] %v7398_v50  ;;  %2452 = vst.msk [vmem:[#allocation2 + $0x139] sm:$0xff] %vm297_vm0, %v7398_v50  ;;  %2828 = vrot.lane.b32.xlu0 %v2516_v54, %s5148_s28  ;;  %v2548_v21 = vld [vmem:[#allocation2 + $0x122] sm:$0xff] }
 0x350   : > { %v5013_v44 = vpop.f32.mrf.mxu0 }
 0x351   : > { %v7406_v42 = vadd.f32 %v5013_v44, %v7066_v36 }
 0x352   : > { %v2271_v0 = vpop.f32.mrf.mxu0 }
 0x353   : > { %9453 = vst [vmem:[#allocation129_spill] sm:$0xff] %v7406_v42  ;;  %vm2327_vm13 = vcmp.gt.f32.partialorder %v7406_v42, 1.0  ;;  %v7410_v38 = vadd.f32 %v7066_v36, %v2271_v0 }
 0x354   : > { %v7413_v13 = vsel %vm2327_vm13, 1.0, %v9402_v9 }
 0x355   : > { %9454 = vst [vmem:[#allocation169_spill] sm:$0xff] %v7410_v38  ;;  %9455 = vst [vmem:[#allocation190_spill] sm:$0xff] %v7413_v13  ;;  %v2519_v61 = vld [vmem:[#allocation2 + $0x141] sm:$0xff]  ;;  %vm2326_vm14 = vcmp.gt.f32.partialorder %v7410_v38, 1.0 }
 0x356   : > { %2455 = vst.msk [vmem:[#allocation2 + $0x159] sm:$0xff] %vm297_vm0, %v7413_v13  ;;  %2834 = vrot.lane.b32.xlu1 %v2519_v61, %s5148_s28  ;;  %v7422_v44 = vsel %vm2326_vm14, 1.0, %v9402_v9  ;;  %v2518_v54 = vld [vmem:[#allocation2 + $0x139] sm:$0xff]  ;;  %v2551_v45 = vld [vmem:[#allocation2 + $0x142] sm:$0xff] }
 0x357   : > { %9456 = vst [vmem:[#allocation132_spill] sm:$0xff] %v7422_v44  ;;  %2454 = vst.msk [vmem:[#allocation2 + $0x151] sm:$0xff] %vm297_vm0, %v7422_v44  ;;  %2832 = vrot.lane.b32.xlu0 %v2518_v54, %s5148_s28 }
 0x358   : > { %v5016_v27 = vpop.f32.mrf.mxu0 }
 0x359   : > { %v7430_v42 = vadd.f32 %v5016_v27, %v7066_v36 }
 0x35a   : > { %v2281_v13 = vpop.f32.mrf.mxu0 }
 0x35b   : > { %9457 = vst [vmem:[#allocation44_spill] sm:$0xff] %v7430_v42  ;;  %vm2329_vm15 = vcmp.gt.f32.partialorder %v7430_v42, 1.0  ;;  %v7434_v61 = vadd.f32 %v7066_v36, %v2281_v13  ;;  %v2524_v13 = vld [vmem:[#allocation2 + $0x2] sm:$0xff] }
 0x35c   : > { %v7437_v50 = vsel %vm2329_vm15, 1.0, %v9402_v9 }
 0x35d   : > { %9458 = vst [vmem:[#allocation193_spill] sm:$0xff] %v7434_v61  ;;  %9459 = vst [vmem:[#allocation67_spill] sm:$0xff] %v7437_v50  ;;  %v2521_v14 = vld [vmem:[#allocation2 + $0x159] sm:$0xff]  ;;  %vm2328_vm1 = vcmp.gt.f32.partialorder %v7434_v61, 1.0 }
 0x35e   : > { %2457 = vst.msk [vmem:[#allocation2 + $0x171] sm:$0xff] %vm297_vm0, %v7437_v50  ;;  %2838 = vrot.lane.b32.xlu1 %v2521_v14, %s5148_s28  ;;  %v7446_v27 = vsel %vm2328_vm1, 1.0, %v9402_v9  ;;  %v2520_v54 = vld [vmem:[#allocation2 + $0x151] sm:$0xff]  ;;  %v7519_v61 = vld [vmem:[#allocation2 + $0x9a] sm:$0xff] }
 0x35f   : > { %9460 = vst [vmem:[#allocation52_spill] sm:$0xff] %v7446_v27  ;;  %2456 = vst.msk [vmem:[#allocation2 + $0x169] sm:$0xff] %vm297_vm0, %v7446_v27  ;;  %2836 = vrot.lane.b32.xlu0 %v2520_v54, %s5148_s28  ;;  %v7515_v27 = vld [vmem:[#allocation2 + $0x7a] sm:$0xff]  ;;  %v2552_v47 = vld [vmem:[#allocation2 + $0x152] sm:$0xff] }
 0x360   : > { %v5019_v0 = vpop.f32.mrf.mxu0 }
 0x361   : > { %v7454_v42 = vadd.f32 %v5019_v0, %v7066_v36 }
 0x362   : > { %v2291_v50 = vpop.f32.mrf.mxu0 }
 0x363   : > { %9461 = vst [vmem:[#allocation92_spill] sm:$0xff] %v7454_v42  ;;  %vm2331_vm11 = vcmp.gt.f32.partialorder %v7454_v42, 1.0  ;;  %v7458_v14 = vadd.f32 %v7066_v36, %v2291_v50  ;;  %v2525_v36 = vld [vmem:[#allocation2 + $0xa] sm:$0xff]  ;;  %v7487_v50 = vld [vmem:[#allocation2 + $0x3a] sm:$0xff]  ;;  %v7511_v42 = vld [vmem:[#allocation2 + $0x82] sm:$0xff] }
 0x364   : > { %v7461_v44 = vsel %vm2331_vm11, 1.0, %v9402_v9 }
 0x365   : > { %9462 = vst [vmem:[#allocation69_spill] sm:$0xff] %v7458_v14  ;;  %9463 = vst [vmem:[#allocation109_spill] sm:$0xff] %v7461_v44  ;;  %v2523_v38 = vld [vmem:[#allocation2 + $0x171] sm:$0xff]  ;;  %vm2330_vm12 = vcmp.gt.f32.partialorder %v7458_v14, 1.0  ;;  %v7507_v14 = vld [vmem:[#allocation2 + $0x62] sm:$0xff] }
 0x366   : > { %2459 = vst.msk [vmem:[#allocation2 + $0x189] sm:$0xff] %vm297_vm0, %v7461_v44  ;;  %2842 = vrot.lane.b32.xlu1 %v2523_v38, %s5148_s28  ;;  %v7470_v0 = vsel %vm2330_vm12, 1.0, %v9402_v9  ;;  %v2522_v54 = vld [vmem:[#allocation2 + $0x169] sm:$0xff]  ;;  %v7483_v38 = vld [vmem:[#allocation2 + $0x1a] sm:$0xff] }
 0x367   : > { %9464 = vst [vmem:[#allocation99_spill] sm:$0xff] %v7470_v0  ;;  %2458 = vst.msk [vmem:[#allocation2 + $0x181] sm:$0xff] %vm297_vm0, %v7470_v0  ;;  %2840 = vrot.lane.b32.xlu0 %v2522_v54, %s5148_s28  ;;  %v7479_v44 = vld [vmem:[#allocation2 + $0x22] sm:$0xff]  ;;  %v7491_v54 = vld [vmem:[#allocation2 + $0x32] sm:$0xff] }
 0x368   : > { %v7503_v0 = vld [vmem:[#allocation2 + $0x6a] sm:$0xff]  ;;  %v7664_v9 = vld [vmem:[#allocation2 + $0xc0] sm:$0xff] }
 0x36a   : > { %2910 = vrot.lane.b32.xlu1 %v2525_v36, %s5149_s29  ;;  %v7499_v36 = vld [vmem:[#allocation2 + $0x4a] sm:$0xff] }
 0x36b   : > { %2908 = vrot.lane.b32.xlu0 %v2524_v13, %s5149_s29  ;;  %v7495_v13 = vld [vmem:[#allocation2 + $0x52] sm:$0xff] }
 0x36e   : > { %2914 = vrot.lane.b32.xlu1 %v7479_v44, %s5149_s29 }
 0x36f   : > { %2912 = vrot.lane.b32.xlu0 %v7483_v38, %s5149_s29 }
 0x372   : > { %2918 = vrot.lane.b32.xlu1 %v7487_v50, %s5149_s29 }
 0x373   : > { %2916 = vrot.lane.b32.xlu0 %v7491_v54, %s5149_s29 }
 0x376   : > { %2922 = vrot.lane.b32.xlu1 %v7495_v13, %s5149_s29 }
 0x377   : > { %2920 = vrot.lane.b32.xlu0 %v7499_v36, %s5149_s29 }
 0x37a   : > { %2926 = vrot.lane.b32.xlu1 %v7503_v0, %s5149_s29 }
 0x37b   : > { %2924 = vrot.lane.b32.xlu0 %v7507_v14, %s5149_s29 }
 0x37e   : > { %2930 = vrot.lane.b32.xlu1 %v7511_v42, %s5149_s29 }
 0x37f   : > { %2928 = vrot.lane.b32.xlu0 %v7515_v27, %s5149_s29 }
 0x382   : > { %2934 = vrot.lane.b32.xlu1 %v7519_v61, %s5149_s29 }
 0x383   : > { %2932 = vrot.lane.b32.xlu0 %v7523_v34, %s5149_s29 }
 0x386   : > { %2938 = vrot.lane.b32.xlu1 %v7527_v55, %s5149_s29 }
 0x387   : > { %2936 = vrot.lane.b32.xlu0 %v7531_v7, %s5149_s29 }
 0x38a   : > { %2942 = vrot.lane.b32.xlu1 %v7537_v28, %s5149_s29 }
 0x38b   : > { %2940 = vrot.lane.b32.xlu0 %v7543_v8, %s5149_s29 }
 0x38d   : > { %v7547_v46 = vpop.permute.xlu1 %2786 }
 0x38e   : > { %2946 = vrot.lane.b32.xlu1 %v2543_v30, %s5149_s29  ;;  %v2546_v30 = vld [vmem:[#allocation2 + $0x10a] sm:$0xff] }
 0x38f   : > { %v7552_v56 = vpop.permute.xlu0 %2784  ;;  %2944 = vrot.lane.b32.xlu0 %v7550_v59, %s5149_s29 }
 0x391   : > { %v7557_v10 = vpop.permute.xlu1 %2790 }
 0x392   : > { %2950 = vrot.lane.b32.xlu1 %v2545_v57, %s5149_s29 }
 0x393   : > { %2948 = vrot.lane.b32.xlu0 %v2544_v43, %s5149_s29  ;;  %v7560_v15 = vpop.permute.xlu0 %2788  ;;  %v2550_v43 = vld [vmem:[#allocation2 + $0x13a] sm:$0xff] }
 0x395   : > { %v7564_v19 = vpop.permute.xlu1 %2794 }
 0x396   : > { %2954 = vrot.lane.b32.xlu1 %v2547_v60, %s5149_s29  ;;  %9465 = vst [vmem:[#allocation168_spill] sm:$0xff] %v7564_v19  ;;  %v2553_v60 = vld [vmem:[#allocation2 + $0x15a] sm:$0xff]  ;;  %v2488_v19 = vld [vmem:[#allocation2 + $0x150] sm:$0xff] }
 0x397   : > { %2952 = vrot.lane.b32.xlu0 %v2546_v30, %s5149_s29  ;;  %v7567_v57 = vpop.permute.xlu0 %2792 }
 0x399   : > { %v7571_v6 = vpop.permute.xlu1 %2798 }
 0x39a   : > { %2958 = vrot.lane.b32.xlu1 %v2549_v53, %s5149_s29  ;;  %9466 = vst [vmem:[#allocation112_spill] sm:$0xff] %v7571_v6  ;;  %v2555_v53 = vld [vmem:[#allocation2 + $0x172] sm:$0xff] }
 0x39b   : > { %2956 = vrot.lane.b32.xlu0 %v2548_v21, %s5149_s29  ;;  %v7574_v30 = vpop.permute.xlu0 %2796  ;;  %v2554_v21 = vld [vmem:[#allocation2 + $0x16a] sm:$0xff]  ;;  %v2486_v6 = vld [vmem:[#allocation2 + $0x138] sm:$0xff] }
 0x39c   : > { %9467 = vst [vmem:[#allocation131_spill] sm:$0xff] %v7574_v30 }
 0x39d   : > { %v7578_v51 = vpop.permute.xlu1 %2802 }
 0x39e   : > { %2962 = vrot.lane.b32.xlu1 %v2551_v45, %s5149_s29  ;;  %9468 = vst [vmem:[#allocation171_spill] sm:$0xff] %v7578_v51  ;;  %v7712_v51 = vld [vmem:[#allocation2 + $0x120] sm:$0xff] }
 0x39f   : > { %2960 = vrot.lane.b32.xlu0 %v2550_v43, %s5149_s29  ;;  %v7581_v45 = vpop.permute.xlu0 %2800  ;;  %v7588_v43 = vld [vmem:[#allocation2 + $0x18] sm:$0xff]  ;;  %9492 = vst [vmem:[#allocation172_spill] sm:$0xff] %v7712_v51 }
 0x3a0   : > { %9469 = vst [vmem:[#allocation192_spill] sm:$0xff] %v7581_v45  ;;  %v2487_v45 = vld [vmem:[#allocation2 + $0x140] sm:$0xff] }
 0x3a2   : > { %2966 = vrot.lane.b32.xlu1 %v2553_v60, %s5149_s29  ;;  %v7590_v60 = vpop.permute.xlu1 %2806 }
 0x3a3   : > { %2964 = vrot.lane.b32.xlu0 %v2552_v47, %s5149_s29  ;;  %9470 = vst [vmem:[#allocation134_spill] sm:$0xff] %v7590_v60  ;;  %v7594_v47 = vld [vmem:[#allocation2 + $0x38] sm:$0xff]  ;;  %v7700_v60 = vld [vmem:[#allocation2 + $0x108] sm:$0xff] }
 0x3a6   : > { %2970 = vrot.lane.b32.xlu1 %v2555_v53, %s5149_s29  ;;  %v7596_v53 = vpop.permute.xlu0 %2804  ;;  %v7606_v2 = vpop.permute.xlu1 %2810 }
 0x3a7   : > { %2968 = vrot.lane.b32.xlu0 %v2554_v21, %s5149_s29  ;;  %9471 = vst [vmem:[#allocation50_spill] sm:$0xff] %v7596_v53  ;;  %v7600_v21 = vld [vmem:[#allocation2 + $0x30] sm:$0xff]  ;;  %9472 = vst [vmem:[#allocation195_spill] sm:$0xff] %v7606_v2  ;;  %v7706_v53 = vld [vmem:[#allocation2 + $0x128] sm:$0xff] }
 0x3a8   : > { %v7688_v2 = vld [vmem:[#allocation2 + $0xf0] sm:$0xff]  ;;  %9490 = vst [vmem:[#allocation58_spill] sm:$0xff] %v7706_v53 }
 0x3aa   : > { %3038 = vrot.lane.b32.xlu1 %v7584_v52, %s5150_s30  ;;  %v7612_v33 = vpop.permute.xlu0 %2808  ;;  %v7622_v18 = vpop.permute.xlu1 %2814 }
 0x3ab   : > { %3036 = vrot.lane.b32.xlu0 %v7588_v43, %s5150_s30  ;;  %9473 = vst [vmem:[#allocation71_spill] sm:$0xff] %v7612_v33  ;;  %9474 = vst [vmem:[#allocation56_spill] sm:$0xff] %v7622_v18  ;;  %v7676_v18 = vld [vmem:[#allocation2 + $0xd8] sm:$0xff]  ;;  %v7694_v33 = vld [vmem:[#allocation2 + $0x110] sm:$0xff] }
 0x3ae   : > { %3042 = vrot.lane.b32.xlu1 %v7594_v47, %s5150_s30  ;;  %v7628_v16 = vpop.permute.xlu0 %2812  ;;  %v7638_v37 = vpop.permute.xlu1 %2818 }
 0x3af   : > { %3040 = vrot.lane.b32.xlu0 %v7600_v21, %s5150_s30  ;;  %9475 = vst [vmem:[#allocation96_spill] sm:$0xff] %v7628_v16  ;;  %9477 = vst [vmem:[#allocation113_spill] sm:$0xff] %v7638_v37  ;;  %v7682_v16 = vld [vmem:[#allocation2 + $0xf8] sm:$0xff] }
 0x3b2   : > { %3046 = vrot.lane.b32.xlu1 %v7604_v63, %s5150_s30  ;;  %v7644_v3 = vpop.permute.xlu0 %2816  ;;  %v7654_v12 = vpop.permute.xlu1 %2822 }
 0x3b3   : > { %3044 = vrot.lane.b32.xlu0 %v7610_v1, %s5150_s30  ;;  %9478 = vst [vmem:[#allocation149_spill] sm:$0xff] %v7644_v3  ;;  %9481 = vst [vmem:[#allocation133_spill] sm:$0xff] %v7654_v12  ;;  %v7670_v3 = vld [vmem:[#allocation2 + $0xe0] sm:$0xff] }
 0x3b6   : > { %3050 = vrot.lane.b32.xlu1 %v7616_v35, %s5150_s30  ;;  %v7660_v39 = vpop.permute.xlu0 %2820 }
 0x3b7   : > { %3048 = vrot.lane.b32.xlu0 %v7620_v26, %s5150_s30  ;;  %9482 = vst [vmem:[#allocation173_spill] sm:$0xff] %v7660_v39 }
 0x3b8   : > { %v7666_v37 = vpop.permute.xlu1 %2826 }
 0x3b9   : > { %9483 = vst [vmem:[#allocation194_spill] sm:$0xff] %v7666_v37 }
 0x3ba   : > { %3054 = vrot.lane.b32.xlu1 %v7626_v49, %s5150_s30  ;;  %v7672_v12 = vpop.permute.xlu0 %2824 }
 0x3bb   : > { %3052 = vrot.lane.b32.xlu0 %v7632_v24, %s5150_s30  ;;  %9484 = vst [vmem:[#allocation136_spill] sm:$0xff] %v7672_v12 }
 0x3be   : > { %3058 = vrot.lane.b32.xlu1 %v7636_v11, %s5150_s30 }
 0x3bf   : > { %3056 = vrot.lane.b32.xlu0 %v7642_v58, %s5150_s30 }
 0x3c0   : > { %v7678_v39 = vpop.permute.xlu1 %2830 }
 0x3c1   : > { %9485 = vst [vmem:[#allocation54_spill] sm:$0xff] %v7678_v39  ;;  %v7684_v37 = vpop.permute.xlu0 %2828 }
 0x3c2   : > { %3062 = vrot.lane.b32.xlu1 %v7648_v20, %s5150_s30  ;;  %9486 = vst [vmem:[#allocation197_spill] sm:$0xff] %v7684_v37 }
 0x3c3   : > { %3060 = vrot.lane.b32.xlu0 %v7652_v32, %s5150_s30 }
 0x3c6   : > { %3066 = vrot.lane.b32.xlu1 %v7658_v4, %s5150_s30 }
 0x3c7   : > { %3064 = vrot.lane.b32.xlu0 %v7664_v9, %s5150_s30 }
 0x3c8   : > { %v7690_v12 = vpop.permute.xlu1 %2834 }
 0x3c9   : > { %9487 = vst [vmem:[#allocation135_spill] sm:$0xff] %v7690_v12  ;;  %v7696_v39 = vpop.permute.xlu0 %2832 }
 0x3ca   : > { %3070 = vrot.lane.b32.xlu1 %v7670_v3, %s5150_s30  ;;  %9488 = vst [vmem:[#allocation60_spill] sm:$0xff] %v7696_v39 }
 0x3cb   : > { %3068 = vrot.lane.b32.xlu0 %v7676_v18, %s5150_s30 }
 0x3ce   : > { %3074 = vrot.lane.b32.xlu1 %v7682_v16, %s5150_s30 }
 0x3cf   : > { %3072 = vrot.lane.b32.xlu0 %v7688_v2, %s5150_s30 }
 0x3d0   : > { %v7702_v37 = vpop.permute.xlu1 %2838 }
 0x3d1   : > { %9489 = vst [vmem:[#allocation148_spill] sm:$0xff] %v7702_v37  ;;  %v7708_v12 = vpop.permute.xlu0 %2836 }
 0x3d2   : > { %3078 = vrot.lane.b32.xlu1 %v7694_v33, %s5150_s30  ;;  %9491 = vst [vmem:[#allocation151_spill] sm:$0xff] %v7708_v12  ;;  %v2489_v12 = vld [vmem:[#allocation2 + $0x158] sm:$0xff] }
 0x3d3   : > { %3076 = vrot.lane.b32.xlu0 %v7700_v60, %s5150_s30 }
 0x3d6   : > { %3082 = vrot.lane.b32.xlu1 %v7706_v53, %s5150_s30 }
 0x3d7   : > { %3080 = vrot.lane.b32.xlu0 %v7712_v51, %s5150_s30 }
 0x3d8   : > { %v7714_v39 = vpop.permute.xlu1 %2842 }
 0x3d9   : > { %9493 = vst [vmem:[#allocation150_spill] sm:$0xff] %v7714_v39  ;;  %v7719_v37 = vpop.permute.xlu0 %2840 }
 0x3da   : > { %3086 = vrot.lane.b32.xlu1 %v2487_v45, %s5150_s30  ;;  %9494 = vst [vmem:[#allocation175_spill] sm:$0xff] %v7719_v37 }
 0x3db   : > { %3084 = vrot.lane.b32.xlu0 %v2486_v6, %s5150_s30 }
 0x3dc   : > { %v7721_v30 = vpop.permute.xlu1 %2910 }
 0x3dd   : > { %v7725_v53 = vpop.permute.xlu0 %2908 }
 0x3de   : > { %3090 = vrot.lane.b32.xlu1 %v2489_v12, %s5150_s30  ;;  %v4032_v12 = vld [vmem:[%s8841_s3 + $0x20] sm:$0xf] }
 0x3df   : > { %3088 = vrot.lane.b32.xlu0 %v2488_v19, %s5150_s30  ;;  %5020 = vmatprep.subr.msk.mxu1 %vm2071_vm2, %v4032_v12 }
 0x3e0   : > { %v7727_v39 = vpop.permute.xlu1 %2914  ;;  %5021 = vmatpush3.msk.msra.mxu1 %vm2071_vm2, %v4032_v12  ;;  %v4029_v12 = vld [vmem:[%s8841_s3 + $0x8] sm:$0xff] }
 0x3e1   : > { %v7732_v45 = vpop.permute.xlu0 %2912 }
 0x3e2   : > { %3166 = vrot.lane.b32.xlu1 %v7122_v62, %s5151_s7  ;;  %v4031_v62 = vld [vmem:[%s8841_s3 + $0x18] sm:$0xff] }
 0x3e3   : > { %3164 = vrot.lane.b32.xlu0 %v7137_v31, %s5151_s7  ;;  %5022 = vmatprep.subr.mxu1 %v4031_v62  ;;  %v4030_v31 = vld [vmem:[%s8841_s3 + $0x10] sm:$0xff] }
 0x3e4   : > { %v7734_v37 = vpop.permute.xlu1 %2918  ;;  %5023 = vmatpush3.msra.mxu1 %v4031_v62 }
 0x3e5   : > { %v7744_v6 = vpop.permute.xlu0 %2916  ;;  %5024 = vmatprep.subr.mxu1 %v4030_v31 }
 0x3e6   : > { %3294 = vrot.lane.b32.xlu1 %v7479_v44, %s5152_s8  ;;  %5025 = vmatpush3.msra.mxu1 %v4030_v31 }
 0x3e7   : > { %3292 = vrot.lane.b32.xlu0 %v7483_v38, %s5152_s8  ;;  %5026 = vmatprep.subr.mxu1 %v4029_v12  ;;  %v4028_v38 = vld [vmem:[%s8841_s3] sm:$0xff] }
 0x3e8   : > { %v7750_v19 = vpop.permute.xlu1 %2922  ;;  %5027 = vmatpush3.msra.mxu1 %v4029_v12 }
 0x3e9   : > { %v7759_v44 = vpop.permute.xlu0 %2920  ;;  %5028 = vmatprep.subr.mxu1 %v4028_v38 }
 0x3ea   : > { %3422 = vrot.lane.b32.xlu1 %v7594_v47, %s5153_s9  ;;  %5029 = vmatpush3.msra.mxu1 %v4028_v38 }
 0x3eb   : > { %3420 = vrot.lane.b32.xlu0 %v7600_v21, %s5153_s9 }
 0x3ec   : > { %v7764_v51 = vpop.permute.xlu1 %2926 }
 0x3ed   : > { %9495 = vst [vmem:[#allocation196_spill] sm:$0xff] %v7764_v51  ;;  %v7773_v62 = vpop.permute.xlu0 %2924 }
 0x3ee   : > { %3168 = vrot.lane.b32.xlu1 %v7167_v48, %s5151_s7  ;;  %9496 = vst [vmem:[#allocation174_spill] sm:$0xff] %v7773_v62 }
 0x3ef   : > { %3548 = vrot.lane.b32.xlu0 %v7167_v48, %s5154_s10 }
 0x3f0   : > { %v7775_v31 = vpop.permute.xlu1 %2930 }
 0x3f1   : > { %9497 = vst [vmem:[#allocation75_spill] sm:$0xff] %v7775_v31  ;;  %v7781_v12 = vpop.permute.xlu0 %2928 }
 0x3f2   : > { %3676 = vrot.lane.b32.xlu1 %v7491_v54, %s5155_s22 }
 0x3f3   : > { %3550 = vrot.lane.b32.xlu0 %v7152_v22, %s5154_s10 }
 0x3f4   : > { %v7783_v51 = vpop.permute.xlu1 %2934 }
 0x3f5   : > { %9498 = vst [vmem:[#allocation35_spill] sm:$0xff] %v7783_v51  ;;  %v7789_v62 = vpop.permute.xlu0 %2932 }
 0x3f6   : > { %3296 = vrot.lane.b32.xlu1 %v7491_v54, %s5152_s8  ;;  %9499 = vst [vmem:[#allocation116_spill] sm:$0xff] %v7789_v62 }
 0x3f7   : > { %3170 = vrot.lane.b32.xlu0 %v7152_v22, %s5151_s7 }
 0x3f8   : > { %v7791_v38 = vpop.permute.xlu1 %2938 }
 0x3f9   : > { %9500 = vst [vmem:[#allocation73_spill] sm:$0xff] %v7791_v38  ;;  %v7797_v48 = vpop.permute.xlu0 %2936 }
 0x3fa   : > { %3298 = vrot.lane.b32.xlu1 %v7487_v50, %s5152_s8  ;;  %9501 = vst [vmem:[#allocation138_spill] sm:$0xff] %v7797_v48 }
 0x3fb   : > { %3678 = vrot.lane.b32.xlu0 %v7487_v50, %s5155_s22 }
 0x3fc   : > { %v7799_v31 = vpop.permute.xlu1 %2942 }
 0x3fd   : > { %9502 = vst [vmem:[#allocation115_spill] sm:$0xff] %v7799_v31  ;;  %v7805_v54 = vpop.permute.xlu0 %2940 }
 0x3fe   : > { %3426 = vrot.lane.b32.xlu1 %v7604_v63, %s5153_s9  ;;  %9503 = vst [vmem:[#allocation64_spill] sm:$0xff] %v7805_v54 }
 0x3ff   : > { %3424 = vrot.lane.b32.xlu0 %v7610_v1, %s5153_s9 }
 0x400   : > { %v7807_v51 = vpop.permute.xlu1 %2946 }
 0x401   : > { %9504 = vst [vmem:[#allocation137_spill] sm:$0xff] %v7807_v51  ;;  %v7813_v22 = vpop.permute.xlu0 %2944 }
 0x402   : > { %3172 = vrot.lane.b32.xlu1 %v7197_v40, %s5151_s7  ;;  %9505 = vst [vmem:[#allocation153_spill] sm:$0xff] %v7813_v22 }
 0x403   : > { %3552 = vrot.lane.b32.xlu0 %v7197_v40, %s5154_s10 }
 0x404   : > { %v7815_v38 = vpop.permute.xlu1 %2950 }
 0x405   : > { %9506 = vst [vmem:[#allocation62_spill] sm:$0xff] %v7815_v38  ;;  %v7821_v50 = vpop.permute.xlu0 %2948 }
 0x406   : > { %3680 = vrot.lane.b32.xlu1 %v7499_v36, %s5155_s22  ;;  %9507 = vst [vmem:[#allocation177_spill] sm:$0xff] %v7821_v50 }
 0x407   : > { %3554 = vrot.lane.b32.xlu0 %v7182_v17, %s5154_s10 }
 0x408   : > { %v7823_v31 = vpop.permute.xlu1 %2954 }
 0x409   : > { %9508 = vst [vmem:[#allocation152_spill] sm:$0xff] %v7823_v31  ;;  %v7829_v51 = vpop.permute.xlu0 %2952 }
 0x40a   : > { %3300 = vrot.lane.b32.xlu1 %v7499_v36, %s5152_s8  ;;  %9509 = vst [vmem:[#allocation176_spill] sm:$0xff] %v7829_v51 }
 0x40b   : > { %3174 = vrot.lane.b32.xlu0 %v7182_v17, %s5151_s7 }
 0x40c   : > { %v7831_v22 = vpop.permute.xlu1 %2958 }
 0x40d   : > { %9510 = vst [vmem:[#allocation79_spill] sm:$0xff] %v7831_v22  ;;  %v7837_v40 = vpop.permute.xlu0 %2956 }
 0x40e   : > { %3302 = vrot.lane.b32.xlu1 %v7495_v13, %s5152_s8  ;;  %9511 = vst [vmem:[#allocation118_spill] sm:$0xff] %v7837_v40  ;;  %v2691_v40 = vld [vmem:[#allocation2 + $0x81] sm:$0xff] }
 0x40f   : > { %3682 = vrot.lane.b32.xlu0 %v7495_v13, %s5155_s22 }
 0x410   : > { %v7839_v38 = vpop.permute.xlu1 %2962 }
 0x411   : > { %9512 = vst [vmem:[#allocation77_spill] sm:$0xff] %v7839_v38  ;;  %v7845_v36 = vpop.permute.xlu0 %2960 }
 0x412   : > { %3430 = vrot.lane.b32.xlu1 %v7616_v35, %s5153_s9  ;;  %9513 = vst [vmem:[#allocation140_spill] sm:$0xff] %v7845_v36 }
 0x413   : > { %3428 = vrot.lane.b32.xlu0 %v7620_v26, %s5153_s9 }
 0x414   : > { %v7847_v31 = vpop.permute.xlu1 %2966 }
 0x415   : > { %9514 = vst [vmem:[#allocation117_spill] sm:$0xff] %v7847_v31  ;;  %v7853_v17 = vpop.permute.xlu0 %2964 }
 0x416   : > { %3176 = vrot.lane.b32.xlu1 %v7227_v25, %s5151_s7  ;;  %9515 = vst [vmem:[#allocation68_spill] sm:$0xff] %v7853_v17 }
 0x417   : > { %3556 = vrot.lane.b32.xlu0 %v7227_v25, %s5154_s10 }
 0x418   : > { %v7855_v22 = vpop.permute.xlu1 %2970 }
 0x419   : > { %9516 = vst [vmem:[#allocation139_spill] sm:$0xff] %v7855_v22  ;;  %v7861_v13 = vpop.permute.xlu0 %2968 }
 0x41a   : > { %3684 = vrot.lane.b32.xlu1 %v7507_v14, %s5155_s22  ;;  %9517 = vst [vmem:[#allocation155_spill] sm:$0xff] %v7861_v13 }
 0x41b   : > { %3558 = vrot.lane.b32.xlu0 %v7212_v29, %s5154_s10 }
 0x41c   : > { %v7863_v38 = vpop.permute.xlu1 %3038 }
 0x41d   : > { %v7869_v31 = vpop.permute.xlu0 %3036 }
 0x41e   : > { %3304 = vrot.lane.b32.xlu1 %v7507_v14, %s5152_s8 }
 0x41f   : > { %3178 = vrot.lane.b32.xlu0 %v7212_v29, %s5151_s7 }
 0x420   : > { %v7871_v17 = vpop.permute.xlu1 %3042 }
 0x421   : > { %v7877_v25 = vpop.permute.xlu0 %3040 }
 0x422   : > { %3306 = vrot.lane.b32.xlu1 %v7503_v0, %s5152_s8 }
 0x423   : > { %3686 = vrot.lane.b32.xlu0 %v7503_v0, %s5155_s22 }
 0x424   : > { %v7879_v13 = vpop.permute.xlu1 %3046 }
 0x425   : > { %v7885_v14 = vpop.permute.xlu0 %3044 }
 0x426   : > { %3434 = vrot.lane.b32.xlu1 %v7626_v49, %s5153_s9 }
 0x427   : > { %3432 = vrot.lane.b32.xlu0 %v7632_v24, %s5153_s9 }
 0x428   : > { %v7887_v22 = vpop.permute.xlu1 %3050 }
 0x429   : > { %v7893_v29 = vpop.permute.xlu0 %3048 }
 0x42a   : > { %3180 = vrot.lane.b32.xlu1 %v7254_v23, %s5151_s7 }
 0x42b   : > { %3560 = vrot.lane.b32.xlu0 %v7254_v23, %s5154_s10 }
 0x42c   : > { %v7895_v36 = vpop.permute.xlu1 %3054 }
 0x42d   : > { %v7901_v0 = vpop.permute.xlu0 %3052 }
 0x42e   : > { %3688 = vrot.lane.b32.xlu1 %v7515_v27, %s5155_s22 }
 0x42f   : > { %3562 = vrot.lane.b32.xlu0 %v2691_v40, %s5154_s10 }
 0x430   : > { %v7903_v51 = vpop.permute.xlu1 %3058 }
 0x431   : > { %v7908_v50 = vpop.permute.xlu0 %3056 }
 0x432   : > { %3308 = vrot.lane.b32.xlu1 %v7515_v27, %s5152_s8 }
 0x433   : > { %3182 = vrot.lane.b32.xlu0 %v2691_v40, %s5151_s7  ;;  %v2598_v40 = vld [vmem:[#allocation2 + $0x91] sm:$0xff] }
 0x434   : > { %v7910_v54 = vpop.permute.xlu1 %3062 }
 0x435   : > { %9518 = vst [vmem:[#allocation66_spill] sm:$0xff] %v7910_v54  ;;  %v7915_v23 = vpop.permute.xlu0 %3060 }
 0x436   : > { %3310 = vrot.lane.b32.xlu1 %v7511_v42, %s5152_s8  ;;  %9519 = vst [vmem:[#allocation179_spill] sm:$0xff] %v7915_v23 }
 0x437   : > { %3690 = vrot.lane.b32.xlu0 %v7511_v42, %s5155_s22 }
 0x438   : > { %v7917_v48 = vpop.permute.xlu1 %3066 }
 0x439   : > { %9520 = vst [vmem:[#allocation154_spill] sm:$0xff] %v7917_v48  ;;  %v7923_v27 = vpop.permute.xlu0 %3064  ;;  %v2693_v48 = vld [vmem:[#allocation2 + $0x99] sm:$0xff] }
 0x43a   : > { %3438 = vrot.lane.b32.xlu1 %v7636_v11, %s5153_s9  ;;  %9521 = vst [vmem:[#allocation178_spill] sm:$0xff] %v7923_v27 }
 0x43b   : > { %3436 = vrot.lane.b32.xlu0 %v7642_v58, %s5153_s9 }
 0x43c   : > { %v7925_v62 = vpop.permute.xlu1 %3070 }
 0x43d   : > { %9522 = vst [vmem:[#allocation83_spill] sm:$0xff] %v7925_v62  ;;  %v7930_v54 = vpop.permute.xlu0 %3068 }
 0x43e   : > { %3184 = vrot.lane.b32.xlu1 %v2598_v40, %s5151_s7  ;;  %9523 = vst [vmem:[#allocation120_spill] sm:$0xff] %v7930_v54 }
 0x43f   : > { %3564 = vrot.lane.b32.xlu0 %v2598_v40, %s5154_s10 }
 0x440   : > { %v7932_v23 = vpop.permute.xlu1 %3074 }
 0x441   : > { %9524 = vst [vmem:[#allocation81_spill] sm:$0xff] %v7932_v23  ;;  %v7937_v42 = vpop.permute.xlu0 %3072 }
 0x442   : > { %3692 = vrot.lane.b32.xlu1 %v7523_v34, %s5155_s22  ;;  %9525 = vst [vmem:[#allocation142_spill] sm:$0xff] %v7937_v42 }
 0x443   : > { %3566 = vrot.lane.b32.xlu0 %v2693_v48, %s5154_s10 }
 0x444   : > { %v7939_v27 = vpop.permute.xlu1 %3078 }
 0x445   : > { %9526 = vst [vmem:[#allocation119_spill] sm:$0xff] %v7939_v27  ;;  %v7944_v62 = vpop.permute.xlu0 %3076 }
 0x446   : > { %3312 = vrot.lane.b32.xlu1 %v7523_v34, %s5152_s8  ;;  %9527 = vst [vmem:[#allocation72_spill] sm:$0xff] %v7944_v62 }
 0x447   : > { %3186 = vrot.lane.b32.xlu0 %v2693_v48, %s5151_s7  ;;  %v2600_v48 = vld [vmem:[#allocation2 + $0xa9] sm:$0xff] }
 0x448   : > { %v7946_v54 = vpop.permute.xlu1 %3082 }
 0x449   : > { %9528 = vst [vmem:[#allocation141_spill] sm:$0xff] %v7946_v54  ;;  %v7951_v40 = vpop.permute.xlu0 %3080 }
 0x44a   : > { %3314 = vrot.lane.b32.xlu1 %v7519_v61, %s5152_s8  ;;  %9529 = vst [vmem:[#allocation157_spill] sm:$0xff] %v7951_v40 }
 0x44b   : > { %3694 = vrot.lane.b32.xlu0 %v7519_v61, %s5155_s22 }
 0x44c   : > { %v7953_v23 = vpop.permute.xlu1 %3086 }
 0x44d   : > { %9530 = vst [vmem:[#allocation70_spill] sm:$0xff] %v7953_v23  ;;  %v7959_v34 = vpop.permute.xlu0 %3084  ;;  %v2695_v23 = vld [vmem:[#allocation2 + $0xb1] sm:$0xff] }
 0x44e   : > { %3442 = vrot.lane.b32.xlu1 %v7648_v20, %s5153_s9  ;;  %9531 = vst [vmem:[#allocation181_spill] sm:$0xff] %v7959_v34 }
 0x44f   : > { %3440 = vrot.lane.b32.xlu0 %v7652_v32, %s5153_s9 }
 0x450   : > { %v7961_v27 = vpop.permute.xlu1 %3090 }
 0x451   : > { %9532 = vst [vmem:[#allocation156_spill] sm:$0xff] %v7961_v27  ;;  %v7966_v54 = vpop.permute.xlu0 %3088  ;;  %v2460_v27 = vld [vmem:[#allocation2] sm:$0xff] }
 0x452   : > { %3188 = vrot.lane.b32.xlu1 %v2600_v48, %s5151_s7  ;;  %9533 = vst [vmem:[#allocation180_spill] sm:$0xff] %v7966_v54  ;;  %v3772_v54 = vsel %vm297_vm0, %v2460_v27, %v7541_v5 }
 0x453   : > { %3568 = vrot.lane.b32.xlu0 %v2600_v48, %s5154_s10  ;;  %v3804_v48 = vsel %vm1731_vm3, %v3772_v54, %v7725_v53 }
 0x454   : > { %v3167_v40 = vpop.permute.xlu1 %3166  ;;  %v3836_v32 = vsel %vm1764_vm4, %v3804_v48, %v7869_v31  ;;  %v2461_v31 = vld [vmem:[#allocation2 + $0x8] sm:$0xff] }
 0x455   : > { %v3165_v61 = vpop.permute.xlu0 %3164 }
 0x456   : > { %3696 = vrot.lane.b32.xlu1 %v7531_v7, %s5155_s22  ;;  %v3868_v11 = vsel %vm1797_vm5, %v3836_v32, %v3165_v61  ;;  %v2602_v32 = vld [vmem:[#allocation2 + $0xc1] sm:$0xff] }
 0x457   : > { %3570 = vrot.lane.b32.xlu0 %v2695_v23, %s5154_s10 }
 0x458   : > { %v3295_v62 = vpop.permute.xlu1 %3294 }
 0x459   : > { %v3293_v34 = vpop.permute.xlu0 %3292 }
 0x45a   : > { %3316 = vrot.lane.b32.xlu1 %v7531_v7, %s5152_s8 }
 0x45b   : > { %3190 = vrot.lane.b32.xlu0 %v2695_v23, %s5151_s7  ;;  %v3900_v23 = vsel %vm1830_vm6, %v3868_v11, %v3293_v34 }
 0x45c   : > { %v3423_v42 = vpop.permute.xlu1 %3422 }
 0x45d   : > { %v3421_v20 = vpop.permute.xlu0 %3420 }
 0x45e   : > { %3318 = vrot.lane.b32.xlu1 %v7527_v55, %s5152_s8  ;;  %v3932_v5 = vsel %vm1863_vm7, %v3900_v23, %v3421_v20  ;;  %v3773_v20 = vsel %vm297_vm0, %v2461_v31, %v7535_v41  ;;  %v2697_v23 = vld [vmem:[#allocation2 + $0xc9] sm:$0xff] }
 0x45f   : > { %3698 = vrot.lane.b32.xlu0 %v7527_v55, %s5155_s22  ;;  %v3805_v55 = vsel %vm1731_vm3, %v3773_v20, %v7721_v30 }
 0x460   : > { %v3169_v7 = vpop.permute.xlu1 %3168 }
 0x461   : > { %v3549_v53 = vpop.permute.xlu0 %3548 }
 0x462   : > { %3446 = vrot.lane.b32.xlu1 %v7658_v4, %s5153_s9  ;;  %v3964_v54 = vsel %vm1896_vm8, %v3932_v5, %v3549_v53 }
 0x463   : > { %3444 = vrot.lane.b32.xlu0 %v7664_v9, %s5153_s9  ;;  %v3837_v9 = vsel %vm1764_vm4, %v3805_v55, %v7863_v38 }
 0x464   : > { %v3677_v27 = vpop.permute.xlu1 %3676  ;;  %v3869_v48 = vsel %vm1797_vm5, %v3837_v9, %v3167_v40 }
 0x465   : > { %v3996_v61 = vsel %vm1929_vm9, %v3964_v54, %v3677_v27  ;;  %v3551_v11 = vpop.permute.xlu0 %3550  ;;  %v3901_v5 = vsel %vm1830_vm6, %v3869_v48, %v3295_v62  ;;  %v3774_v62 = vsel %vm297_vm0, %v7588_v43, %v7552_v56 }
 0x466   : > { %3192 = vrot.lane.b32.xlu1 %v2602_v32, %s5151_s7  ;;  %5030 = vmatprep.mubr.msk.f32.mxu1 %vm1974_vm10, %v3996_v61  ;;  %v3933_v41 = vsel %vm1863_vm7, %v3901_v5, %v3423_v42  ;;  %v3806_v42 = vsel %vm1731_vm3, %v3774_v62, %v7732_v45 }
 0x467   : > { %3572 = vrot.lane.b32.xlu0 %v2602_v32, %s5154_s10  ;;  %v3965_v54 = vsel %vm1896_vm8, %v3933_v41, %v3551_v11  ;;  %v2637_v41 = vld [vmem:[#allocation2 + $0xe2] sm:$0xff] }
 0x468   : > { %v3297_v4 = vpop.permute.xlu1 %3296 }
 0x469   : > { %v3171_v34 = vpop.permute.xlu0 %3170 }
 0x46a   : > { %3700 = vrot.lane.b32.xlu1 %v7543_v8, %s5155_s22 }
 0x46b   : > { %3574 = vrot.lane.b32.xlu0 %v2697_v23, %s5154_s10 }
 0x46c   : > { %v3299_v53 = vpop.permute.xlu1 %3298 }
 0x46d   : > { %v3679_v30 = vpop.permute.xlu0 %3678 }
 0x46e   : > { %3320 = vrot.lane.b32.xlu1 %v7543_v8, %s5152_s8  ;;  %v3997_v38 = vsel %vm1929_vm9, %v3965_v54, %v3679_v30  ;;  %v3838_v8 = vsel %vm1764_vm4, %v3806_v42, %v7877_v25 }
 0x46f   : > { %3194 = vrot.lane.b32.xlu0 %v2697_v23, %s5151_s7  ;;  %5031 = vmatmul.mubr.msk.f32.vlgmr.msra.gmra.mxu1 %vm1974_vm10, %v3997_v38  ;;  %v3870_v31 = vsel %vm1797_vm5, %v3838_v8, %v3169_v7  ;;  %v2604_v7 = vld [vmem:[#allocation2 + $0xd9] sm:$0xff]  ;;  %v3777_v8 = vsel %vm297_vm0, %v7594_v47, %v7557_v10 }
 0x470   : > { %v3427_v27 = vpop.permute.xlu1 %3426  ;;  %v3902_v61 = vsel %vm1830_vm6, %v3870_v31, %v3297_v4  ;;  %v2701_v47 = vld [vmem:[#allocation2 + $0xf9] sm:$0xff] }
 0x471   : > { %v3425_v40 = vpop.permute.xlu0 %3424 }
 0x472   : > { %3322 = vrot.lane.b32.xlu1 %v7537_v28, %s5152_s8  ;;  %v3934_v56 = vsel %vm1863_vm7, %v3902_v61, %v3425_v40  ;;  %v2606_v40 = vld [vmem:[#allocation2 + $0xf1] sm:$0xff] }
 0x473   : > { %3702 = vrot.lane.b32.xlu0 %v7537_v28, %s5155_s22  ;;  %v3775_v28 = vsel %vm297_vm0, %v7584_v52, %v7547_v46  ;;  %v2699_v46 = vld [vmem:[#allocation2 + $0xe1] sm:$0xff] }
 0x474   : > { %v3173_v32 = vpop.permute.xlu1 %3172 }
 0x475   : > { %v3553_v43 = vpop.permute.xlu0 %3552 }
 0x476   : > { %3450 = vrot.lane.b32.xlu1 %v7670_v3, %s5153_s9  ;;  %v3966_v45 = vsel %vm1896_vm8, %v3934_v56, %v3553_v43  ;;  %v3807_v3 = vsel %vm1731_vm3, %v3775_v28, %v7727_v39  ;;  %v2732_v56 = vld [vmem:[#allocation2 + $0xf2] sm:$0xff]  ;;  %v3778_v28 = vsel %vm297_vm0, %v7610_v1, %v7567_v57 }
 0x477   : > { %3448 = vrot.lane.b32.xlu0 %v7676_v18, %s5153_s9  ;;  %v3839_v4 = vsel %vm1764_vm4, %v3807_v3, %v7871_v17  ;;  %v3810_v3 = vsel %vm1731_vm3, %v3778_v28, %v7759_v44 }
 0x478   : > { %v3681_v11 = vpop.permute.xlu1 %3680  ;;  %v3871_v18 = vsel %vm1797_vm5, %v3839_v4, %v3171_v34 }
 0x479   : > { %v3998_v25 = vsel %vm1929_vm9, %v3966_v45, %v3681_v11  ;;  %v3555_v20 = vpop.permute.xlu0 %3554  ;;  %v3903_v9 = vsel %vm1830_vm6, %v3871_v18, %v3299_v53  ;;  %v3776_v53 = vsel %vm297_vm0, %v7600_v21, %v7560_v15 }
 0x47a   : > { %3196 = vrot.lane.b32.xlu1 %v2604_v7, %s5151_s7  ;;  %5033 = vmatprep.mubr.msk.f32.mxu1 %vm1974_vm10, %v3998_v25  ;;  %v3935_v39 = vsel %vm1863_vm7, %v3903_v9, %v3427_v27  ;;  %v3808_v54 = vsel %vm1731_vm3, %v3776_v53, %v7744_v6  ;;  %v2734_v53 = vld [vmem:[#allocation2 + $0x10a] sm:$0xff] }
 0x47b   : > { %3576 = vrot.lane.b32.xlu0 %v2604_v7, %s5154_s10  ;;  %v3967_v23 = vsel %vm1896_vm8, %v3935_v39, %v3555_v20  ;;  %v2639_v20 = vld [vmem:[#allocation2 + $0xfa] sm:$0xff] }
 0x47c   : > { %v3301_v55 = vpop.permute.xlu1 %3300  ;;  %v9534_v39 = vld [vmem:[#allocation168_spill] sm:$0xff] }
 0x47d   : > { %v3175_v52 = vpop.permute.xlu0 %3174 }
 0x47e   : > { %3704 = vrot.lane.b32.xlu1 %v7550_v59, %s5155_s22 }
 0x47f   : > { %3578 = vrot.lane.b32.xlu0 %v2699_v46, %s5154_s10 }
 0x480   : > { %v3303_v48 = vpop.permute.xlu1 %3302 }
 0x481   : > { %v3683_v17 = vpop.permute.xlu0 %3682 }
 0x482   : > { %3324 = vrot.lane.b32.xlu1 %v7550_v59, %s5152_s8  ;;  %v3999_v34 = vsel %vm1929_vm9, %v3967_v23, %v3683_v17  ;;  %v3840_v59 = vsel %vm1764_vm4, %v3808_v54, %v7885_v14  ;;  %v3779_v23 = vsel %vm297_vm0, %v7604_v63, %v9534_v39 }
 0x483   : > { %3198 = vrot.lane.b32.xlu0 %v2699_v46, %s5151_s7  ;;  %5034 = vmatmul.mubr.msk.f32.gmra.mxu1 %vm1974_vm10, %v3999_v34  ;;  %v3872_v38 = vsel %vm1797_vm5, %v3840_v59, %v3173_v32 }
 0x484   : > { %v3431_v5 = vpop.permute.xlu1 %3430  ;;  %v3904_v62 = vsel %vm1830_vm6, %v3872_v38, %v3301_v55  ;;  %v3842_v55 = vsel %vm1764_vm4, %v3810_v3, %v7893_v29  ;;  %v2705_v3 = vld [vmem:[#allocation2 + $0x129] sm:$0xff] }
 0x485   : > { %v3429_v30 = vpop.permute.xlu0 %3428 }
 0x486   : > { %3326 = vrot.lane.b32.xlu1 %v2637_v41, %s5152_s8  ;;  %v3936_v42 = vsel %vm1863_vm7, %v3904_v62, %v3429_v30  ;;  %v9535_v62 = vld [vmem:[#allocation131_spill] sm:$0xff] }
 0x487   : > { %3706 = vrot.lane.b32.xlu0 %v2637_v41, %s5155_s22  ;;  %v2703_v41 = vld [vmem:[#allocation2 + $0x111] sm:$0xff] }
 0x488   : > { %v3177_v27 = vpop.permute.xlu1 %3176 }
 0x489   : > { %v3557_v15 = vpop.permute.xlu0 %3556  ;;  %v3874_v18 = vsel %vm1797_vm5, %v3842_v55, %v3177_v27 }
 0x48a   : > { %3454 = vrot.lane.b32.xlu1 %v7682_v16, %s5153_s9  ;;  %v3968_v21 = vsel %vm1896_vm8, %v3936_v42, %v3557_v15  ;;  %v3809_v16 = vsel %vm1731_vm3, %v3777_v8, %v7734_v37  ;;  %v3780_v42 = vsel %vm297_vm0, %v7620_v26, %v9535_v62  ;;  %v2641_v15 = vld [vmem:[#allocation2 + $0x112] sm:$0xff]  ;;  %v9537_v26 = vld [vmem:[#allocation58_spill] sm:$0xff]  ;;  %v2738_v62 = vld [vmem:[#allocation2 + $0x13a] sm:$0xff] }
 0x48b   : > { %3452 = vrot.lane.b32.xlu0 %v7688_v2, %s5153_s9  ;;  %v3841_v32 = vsel %vm1764_vm4, %v3809_v16, %v7879_v13 }
 0x48c   : > { %v3685_v6 = vpop.permute.xlu1 %3684  ;;  %v3873_v2 = vsel %vm1797_vm5, %v3841_v32, %v3175_v52 }
 0x48d   : > { %v4000_v14 = vsel %vm1929_vm9, %v3968_v21, %v3685_v6  ;;  %v3559_v31 = vpop.permute.xlu0 %3558  ;;  %v3905_v43 = vsel %vm1830_vm6, %v3873_v2, %v3303_v48  ;;  %v2608_v48 = vld [vmem:[#allocation2 + $0x109] sm:$0xff] }
 0x48e   : > { %3200 = vrot.lane.b32.xlu1 %v2606_v40, %s5151_s7  ;;  %5036 = vmatprep.mubr.msk.f32.mxu1 %vm1974_vm10, %v4000_v14  ;;  %v3937_v37 = vsel %vm1863_vm7, %v3905_v43, %v3431_v5  ;;  %v9536_v21 = vld [vmem:[#allocation174_spill] sm:$0xff]  ;;  %v9539_v43 = vld [vmem:[#allocation112_spill] sm:$0xff] }
 0x48f   : > { %3580 = vrot.lane.b32.xlu0 %v2606_v40, %s5154_s10  ;;  %v3969_v11 = vsel %vm1896_vm8, %v3937_v37, %v3559_v31  ;;  %v3812_v6 = vsel %vm1731_vm3, %v3780_v42, %v9536_v21  ;;  %v2707_v42 = vld [vmem:[#allocation2 + $0x141] sm:$0xff] }
 0x490   : > { %v3305_v61 = vpop.permute.xlu1 %3304  ;;  %v3844_v40 = vsel %vm1764_vm4, %v3812_v6, %v7901_v0 }
 0x491   : > { %v3179_v10 = vpop.permute.xlu0 %3178  ;;  %v3906_v46 = vsel %vm1830_vm6, %v3874_v18, %v3305_v61 }
 0x492   : > { %3708 = vrot.lane.b32.xlu1 %v2732_v56, %s5155_s22 }
 0x493   : > { %3582 = vrot.lane.b32.xlu0 %v2701_v47, %s5154_s10 }
 0x494   : > { %v3307_v45 = vpop.permute.xlu1 %3306 }
 0x495   : > { %v3687_v13 = vpop.permute.xlu0 %3686 }
 0x496   : > { %3328 = vrot.lane.b32.xlu1 %v2732_v56, %s5152_s8  ;;  %v4001_v25 = vsel %vm1929_vm9, %v3969_v11, %v3687_v13  ;;  %v9540_v11 = vld [vmem:[#allocation196_spill] sm:$0xff] }
 0x497   : > { %3202 = vrot.lane.b32.xlu0 %v2701_v47, %s5151_s7  ;;  %5037 = vmatmul.mubr.msk.f32.gmra.mxu1 %vm1974_vm10, %v4001_v25  ;;  %v2610_v47 = vld [vmem:[#allocation2 + $0x121] sm:$0xff] }
 0x498   : > { %v3435_v7 = vpop.permute.xlu1 %3434 }
 0x499   : > { %v3433_v4 = vpop.permute.xlu0 %3432 }
 0x49a   : > { %3330 = vrot.lane.b32.xlu1 %v2639_v20, %s5152_s8  ;;  %v3938_v9 = vsel %vm1863_vm7, %v3906_v46, %v3433_v4 }
 0x49b   : > { %3710 = vrot.lane.b32.xlu0 %v2639_v20, %s5155_s22  ;;  %v2736_v20 = vld [vmem:[#allocation2 + $0x122] sm:$0xff] }
 0x49c   : > { %v3181_v52 = vpop.permute.xlu1 %3180 }
 0x49d   : > { %v3561_v1 = vpop.permute.xlu0 %3560  ;;  %v3876_v8 = vsel %vm1797_vm5, %v3844_v40, %v3181_v52 }
 0x49e   : > { %3458 = vrot.lane.b32.xlu1 %v7694_v33, %s5153_s9  ;;  %v3970_v57 = vsel %vm1896_vm8, %v3938_v9, %v3561_v1  ;;  %v3811_v33 = vsel %vm1731_vm3, %v3779_v23, %v7750_v19  ;;  %v9541_v1 = vld [vmem:[#allocation192_spill] sm:$0xff] }
 0x49f   : > { %3456 = vrot.lane.b32.xlu0 %v7700_v60, %s5153_s9  ;;  %v3843_v34 = vsel %vm1764_vm4, %v3811_v33, %v7887_v22 }
 0x4a0   : > { %v3689_v44 = vpop.permute.xlu1 %3688  ;;  %v3875_v60 = vsel %vm1797_vm5, %v3843_v34, %v3179_v10  ;;  %v9538_v10 = vld [vmem:[#allocation172_spill] sm:$0xff]  ;;  %v2675_v34 = vld [vmem:[#allocation2 + $0x140] sm:$0xff] }
 0x4a1   : > { %v4002_v29 = vsel %vm1929_vm9, %v3970_v57, %v3689_v44  ;;  %v3563_v17 = vpop.permute.xlu0 %3562  ;;  %v3907_v54 = vsel %vm1830_vm6, %v3875_v60, %v3307_v45  ;;  %v3781_v45 = vsel %vm297_vm0, %v7616_v35, %v9539_v43  ;;  %v3782_v57 = vsel %vm297_vm0, %v7632_v24, %v9541_v1  ;;  %v2643_v44 = vld [vmem:[#allocation2 + $0x12a] sm:$0xff]  ;;  %v2674_v60 = vld [vmem:[#allocation2 + $0x138] sm:$0xff] }
 0x4a2   : > { %3204 = vrot.lane.b32.xlu1 %v2608_v48, %s5151_s7  ;;  %5039 = vmatprep.mubr.msk.f32.mxu1 %vm1974_vm10, %v4002_v29  ;;  %v3939_v19 = vsel %vm1863_vm7, %v3907_v54, %v3435_v7  ;;  %v3813_v13 = vsel %vm1731_vm3, %v3781_v45, %v9540_v11  ;;  %v3814_v29 = vsel %vm1731_vm3, %v3782_v57, %v7781_v12  ;;  %v2677_v45 = vld [vmem:[#allocation2 + $0x158] sm:$0xff] }
 0x4a3   : > { %3584 = vrot.lane.b32.xlu0 %v2608_v48, %s5154_s10  ;;  %v3971_v59 = vsel %vm1896_vm8, %v3939_v19, %v3563_v17  ;;  %v3845_v25 = vsel %vm1764_vm4, %v3813_v13, %v7895_v36  ;;  %v3846_v39 = vsel %vm1764_vm4, %v3814_v29, %v7908_v50  ;;  %v9543_v19 = vld [vmem:[#allocation75_spill] sm:$0xff] }
 0x4a4   : > { %v3309_v5 = vpop.permute.xlu1 %3308  ;;  %v2676_v13 = vld [vmem:[#allocation2 + $0x150] sm:$0xff] }
 0x4a5   : > { %v3183_v63 = vpop.permute.xlu0 %3182  ;;  %v3908_v16 = vsel %vm1830_vm6, %v3876_v8, %v3309_v5  ;;  %v2740_v1 = vld [vmem:[#allocation2 + $0x152] sm:$0xff] }
 0x4a6   : > { %3712 = vrot.lane.b32.xlu1 %v2734_v53, %s5155_s22  ;;  %v3877_v28 = vsel %vm1797_vm5, %v3845_v25, %v3183_v63  ;;  %v2612_v63 = vld [vmem:[#allocation2 + $0x139] sm:$0xff] }
 0x4a7   : > { %3586 = vrot.lane.b32.xlu0 %v2703_v41, %s5154_s10 }
 0x4a8   : > { %v3311_v30 = vpop.permute.xlu1 %3310 }
 0x4a9   : > { %v3691_v22 = vpop.permute.xlu0 %3690  ;;  %v3909_v4 = vsel %vm1830_vm6, %v3877_v28, %v3311_v30  ;;  %v2614_v28 = vld [vmem:[#allocation2 + $0x151] sm:$0xff] }
 0x4aa   : > { %3332 = vrot.lane.b32.xlu1 %v2734_v53, %s5152_s8  ;;  %v4003_v38 = vsel %vm1929_vm9, %v3971_v59, %v3691_v22 }
 0x4ab   : > { %3206 = vrot.lane.b32.xlu0 %v2703_v41, %s5151_s7  ;;  %5040 = vmatmul.mubr.msk.f32.gmra.mxu1 %vm1974_vm10, %v4003_v38  ;;  %v9542_v41 = vld [vmem:[#allocation171_spill] sm:$0xff] }
 0x4ac   : > { %v3439_v27 = vpop.permute.xlu1 %3438  ;;  %v3783_v54 = vsel %vm297_vm0, %v7626_v49, %v9542_v41  ;;  %v9554_v41 = vld [vmem:[#allocation178_spill] sm:$0xff] }
 0x4ad   : > { %v3437_v14 = vpop.permute.xlu0 %3436  ;;  %v3941_v18 = vsel %vm1863_vm7, %v3909_v4, %v3439_v27  ;;  %v3815_v59 = vsel %vm1731_vm3, %v3783_v54, %v9543_v19 }
 0x4ae   : > { %3334 = vrot.lane.b32.xlu1 %v2641_v15, %s5152_s8  ;;  %v3940_v32 = vsel %vm1863_vm7, %v3908_v16, %v3437_v14  ;;  %v3847_v22 = vsel %vm1764_vm4, %v3815_v59, %v7903_v51 }
 0x4af   : > { %3714 = vrot.lane.b32.xlu0 %v2641_v15, %s5155_s22 }
 0x4b0   : > { %v3185_v31 = vpop.permute.xlu1 %3184 }
 0x4b1   : > { %v3565_v61 = vpop.permute.xlu0 %3564  ;;  %v3878_v23 = vsel %vm1797_vm5, %v3846_v39, %v3185_v31  ;;  %v9544_v31 = vld [vmem:[#allocation50_spill] sm:$0xff] }
 0x4b2   : > { %3462 = vrot.lane.b32.xlu1 %v9537_v26, %s5153_s9  ;;  %v3972_v2 = vsel %vm1896_vm8, %v3940_v32, %v3565_v61  ;;  %v3784_v16 = vsel %vm297_vm0, %v7642_v58, %v9544_v31  ;;  %v2645_v32 = vld [vmem:[#allocation2 + $0x142] sm:$0xff]  ;;  %v9545_v26 = vld [vmem:[#allocation116_spill] sm:$0xff]  ;;  %v2679_v31 = vld [vmem:[#allocation2 + $0x170] sm:$0xff] }
 0x4b3   : > { %3460 = vrot.lane.b32.xlu0 %v9538_v10, %s5153_s9  ;;  %v3816_v61 = vsel %vm1731_vm3, %v3784_v16, %v9545_v26  ;;  %v9558_v16 = vld [vmem:[#allocation154_spill] sm:$0xff] }
 0x4b4   : > { %v3693_v56 = vpop.permute.xlu1 %3692 }
 0x4b5   : > { %v4004_v0 = vsel %vm1929_vm9, %v3972_v2, %v3693_v56  ;;  %v3567_v37 = vpop.permute.xlu0 %3566  ;;  %v9546_v56 = vld [vmem:[#allocation179_spill] sm:$0xff] }
 0x4b6   : > { %3208 = vrot.lane.b32.xlu1 %v2610_v47, %s5151_s7  ;;  %5042 = vmatprep.mubr.msk.f32.mxu1 %vm1974_vm10, %v4004_v0  ;;  %v3973_v52 = vsel %vm1896_vm8, %v3941_v18, %v3567_v37  ;;  %v3848_v10 = vsel %vm1764_vm4, %v3816_v61, %v9546_v56 }
 0x4b7   : > { %3588 = vrot.lane.b32.xlu0 %v2610_v47, %s5154_s10 }
 0x4b8   : > { %v3313_v7 = vpop.permute.xlu1 %3312 }
 0x4b9   : > { %v3187_v35 = vpop.permute.xlu0 %3186  ;;  %v3910_v33 = vsel %vm1830_vm6, %v3878_v23, %v3313_v7 }
 0x4ba   : > { %3716 = vrot.lane.b32.xlu1 %v2736_v20, %s5155_s22  ;;  %v3879_v27 = vsel %vm1797_vm5, %v3847_v22, %v3187_v35  ;;  %v9548_v35 = vld [vmem:[#allocation111_spill] sm:$0xff]  ;;  %v2584_v22 = vld [vmem:[#allocation2 + $0x168] sm:$0xff] }
 0x4bb   : > { %3590 = vrot.lane.b32.xlu0 %v2705_v3, %s5154_s10 }
 0x4bc   : > { %v3315_v55 = vpop.permute.xlu1 %3314 }
 0x4bd   : > { %v3695_v36 = vpop.permute.xlu0 %3694  ;;  %v3911_v15 = vsel %vm1830_vm6, %v3879_v27, %v3315_v55  ;;  %v9549_v55 = vld [vmem:[#allocation35_spill] sm:$0xff] }
 0x4be   : > { %3336 = vrot.lane.b32.xlu1 %v2736_v20, %s5152_s8  ;;  %v4005_v46 = vsel %vm1929_vm9, %v3973_v52, %v3695_v36  ;;  %v9547_v20 = vld [vmem:[#allocation134_spill] sm:$0xff] }
 0x4bf   : > { %3210 = vrot.lane.b32.xlu0 %v2705_v3, %s5151_s7  ;;  %5043 = vmatmul.mubr.msk.f32.gmra.mxu1 %vm1974_vm10, %v4005_v46  ;;  %v3785_v3 = vsel %vm297_vm0, %v9548_v35, %v9547_v20  ;;  %v9550_v52 = vld [vmem:[#allocation66_spill] sm:$0xff] }
 0x4c0   : > { %v3443_v9 = vpop.permute.xlu1 %3442  ;;  %v3817_v18 = vsel %vm1731_vm3, %v3785_v3, %v9549_v55  ;;  %v9561_v3 = vld [vmem:[#allocation120_spill] sm:$0xff] }
 0x4c1   : > { %v3441_v48 = vpop.permute.xlu0 %3440  ;;  %v3943_v6 = vsel %vm1863_vm7, %v3911_v15, %v3443_v9  ;;  %v3849_v36 = vsel %vm1764_vm4, %v3817_v18, %v9550_v52  ;;  %v2710_v15 = vld [vmem:[#allocation2 + $0x169] sm:$0xff] }
 0x4c2   : > { %3338 = vrot.lane.b32.xlu1 %v2643_v44, %s5152_s8  ;;  %v3942_v24 = vsel %vm1863_vm7, %v3910_v33, %v3441_v48 }
 0x4c3   : > { %3718 = vrot.lane.b32.xlu0 %v2643_v44, %s5155_s22  ;;  %v2709_v44 = vld [vmem:[#allocation2 + $0x159] sm:$0xff] }
 0x4c4   : > { %v3189_v17 = vpop.permute.xlu1 %3188 }
 0x4c5   : > { %v3569_v5 = vpop.permute.xlu0 %3568  ;;  %v3880_v0 = vsel %vm1797_vm5, %v3848_v10, %v3189_v17 }
 0x4c6   : > { %3466 = vrot.lane.b32.xlu1 %v2675_v34, %s5153_s9  ;;  %v3974_v12 = vsel %vm1896_vm8, %v3942_v24, %v3569_v5  ;;  %v9551_v24 = vld [vmem:[#allocation71_spill] sm:$0xff]  ;;  %v9552_v5 = vld [vmem:[#allocation114_spill] sm:$0xff] }
 0x4c7   : > { %3464 = vrot.lane.b32.xlu0 %v2674_v60, %s5153_s9  ;;  %v2647_v60 = vld [vmem:[#allocation2 + $0x15a] sm:$0xff] }
 0x4c8   : > { %v3697_v53 = vpop.permute.xlu1 %3696 }
 0x4c9   : > { %v4006_v50 = vsel %vm1929_vm9, %v3974_v12, %v3697_v53  ;;  %v3571_v30 = vpop.permute.xlu0 %3570  ;;  %v3786_v12 = vsel %vm297_vm0, %v9552_v5, %v9551_v24  ;;  %v9553_v53 = vld [vmem:[#allocation138_spill] sm:$0xff]  ;;  %v9564_v24 = vld [vmem:[#allocation83_spill] sm:$0xff] }
 0x4ca   : > { %3212 = vrot.lane.b32.xlu1 %v2612_v63, %s5151_s7  ;;  %5045 = vmatprep.mubr.msk.f32.mxu1 %vm1974_vm10, %v4006_v50  ;;  %v3975_v14 = vsel %vm1896_vm8, %v3943_v6, %v3571_v30  ;;  %v3818_v50 = vsel %vm1731_vm3, %v3786_v12, %v9553_v53  ;;  %v9556_v6 = vld [vmem:[#allocation170_spill] sm:$0xff] }
 0x4cb   : > { %3592 = vrot.lane.b32.xlu0 %v2612_v63, %s5154_s10  ;;  %v3850_v54 = vsel %vm1764_vm4, %v3818_v50, %v9554_v41  ;;  %v2712_v53 = vld [vmem:[#allocation2 + $0x181] sm:$0xff] }
 0x4cc   : > { %v3317_v38 = vpop.permute.xlu1 %3316 }
 0x4cd   : > { %v3191_v49 = vpop.permute.xlu0 %3190  ;;  %v3912_v43 = vsel %vm1830_vm6, %v3880_v0, %v3317_v38 }
 0x4ce   : > { %3720 = vrot.lane.b32.xlu1 %v2738_v62, %s5155_s22  ;;  %v3881_v9 = vsel %vm1797_vm5, %v3849_v36, %v3191_v49  ;;  %v2649_v36 = vld [vmem:[#allocation2 + $0x172] sm:$0xff] }
 0x4cf   : > { %3594 = vrot.lane.b32.xlu0 %v2707_v42, %s5154_s10 }
 0x4d0   : > { %v3319_v21 = vpop.permute.xlu1 %3318 }
 0x4d1   : > { %v3699_v51 = vpop.permute.xlu0 %3698  ;;  %v3913_v29 = vsel %vm1830_vm6, %v3881_v9, %v3319_v21  ;;  %v9555_v21 = vld [vmem:[#allocation195_spill] sm:$0xff] }
 0x4d2   : > { %3340 = vrot.lane.b32.xlu1 %v2738_v62, %s5152_s8  ;;  %v4007_v40 = vsel %vm1929_vm9, %v3975_v14, %v3699_v51  ;;  %v3787_v14 = vsel %vm297_vm0, %v9556_v6, %v9555_v21 }
 0x4d3   : > { %3214 = vrot.lane.b32.xlu0 %v2707_v42, %s5151_s7  ;;  %5046 = vmatmul.mubr.msk.f32.gmra.mxu1 %vm1974_vm10, %v4007_v40  ;;  %v9557_v40 = vld [vmem:[#allocation73_spill] sm:$0xff] }
 0x4d4   : > { %v3447_v8 = vpop.permute.xlu1 %3446 }
 0x4d5   : > { %v3445_v2 = vpop.permute.xlu0 %3444  ;;  %v3945_v39 = vsel %vm1863_vm7, %v3913_v29, %v3447_v8  ;;  %v3819_v8 = vsel %vm1731_vm3, %v3787_v14, %v9557_v40  ;;  %v2586_v29 = vld [vmem:[#allocation2 + $0x180] sm:$0xff]  ;;  %v9567_v14 = vld [vmem:[#allocation142_spill] sm:$0xff] }
 0x4d6   : > { %3342 = vrot.lane.b32.xlu1 %v2645_v32, %s5152_s8  ;;  %v3944_v58 = vsel %vm1863_vm7, %v3912_v43, %v3445_v2  ;;  %v2713_v40 = vld [vmem:[#allocation2 + $0x189] sm:$0xff] }
 0x4d7   : > { %3722 = vrot.lane.b32.xlu0 %v2645_v32, %s5155_s22  ;;  %v3851_v32 = vsel %vm1764_vm4, %v3819_v8, %v9558_v16 }
 0x4d8   : > { %v3193_v47 = vpop.permute.xlu1 %3192 }
 0x4d9   : > { %v3573_v37 = vpop.permute.xlu0 %3572  ;;  %v3882_v30 = vsel %vm1797_vm5, %v3850_v54, %v3193_v47  ;;  %v2742_v47 = vld [vmem:[#allocation2 + $0x16a] sm:$0xff] }
 0x4da   : > { %3470 = vrot.lane.b32.xlu1 %v2677_v45, %s5153_s9  ;;  %v3976_v11 = vsel %vm1896_vm8, %v3944_v58, %v3573_v37  ;;  %v2711_v37 = vld [vmem:[#allocation2 + $0x171] sm:$0xff] }
 0x4db   : > { %3468 = vrot.lane.b32.xlu0 %v2676_v13, %s5153_s9  ;;  %v5125_v13 = vld [vmem:[#allocation2 + $0xc0] sm:$0xff] }
 0x4dc   : > { %v3701_v25 = vpop.permute.xlu1 %3700 }
 0x4dd   : > { %v4008_v7 = vsel %vm1929_vm9, %v3976_v11, %v3701_v25  ;;  %v3575_v4 = vpop.permute.xlu0 %3574  ;;  %v9559_v25 = vld [vmem:[#allocation96_spill] sm:$0xff] }
 0x4de   : > { %3216 = vrot.lane.b32.xlu1 %v2614_v28, %s5151_s7  ;;  %5048 = vmatprep.mubr.msk.f32.mxu1 %vm1974_vm10, %v4008_v7  ;;  %v3977_v23 = vsel %vm1896_vm8, %v3945_v39, %v3575_v4  ;;  %v3788_v7 = vsel %vm297_vm0, %v5125_v13, %v9559_v25  ;;  %v9562_v39 = vld [vmem:[#allocation56_spill] sm:$0xff]  ;;  %v9570_v13 = vld [vmem:[#allocation81_spill] sm:$0xff] }
 0x4df   : > { %3596 = vrot.lane.b32.xlu0 %v2614_v28, %s5154_s10  ;;  %v9560_v28 = vld [vmem:[#allocation64_spill] sm:$0xff] }
 0x4e0   : > { %v3321_v46 = vpop.permute.xlu1 %3320  ;;  %v3820_v20 = vsel %vm1731_vm3, %v3788_v7, %v9560_v28 }
 0x4e1   : > { %v3195_v57 = vpop.permute.xlu0 %3194  ;;  %v3914_v59 = vsel %vm1830_vm6, %v3882_v30, %v3321_v46  ;;  %v3852_v4 = vsel %vm1764_vm4, %v3820_v20, %v9561_v3  ;;  %v2682_v20 = vld [vmem:[#allocation2 + $0x198] sm:$0xff]  ;;  %v2715_v3 = vld [vmem:[#allocation2 + $0x1a1] sm:$0xff] }
 0x4e2   : > { %3724 = vrot.lane.b32.xlu1 %v2740_v1, %s5155_s22  ;;  %v3883_v61 = vsel %vm1797_vm5, %v3851_v32, %v3195_v57 }
 0x4e3   : > { %3598 = vrot.lane.b32.xlu0 %v2709_v44, %s5154_s10 }
 0x4e4   : > { %v3323_v48 = vpop.permute.xlu1 %3322 }
 0x4e5   : > { %v3703_v17 = vpop.permute.xlu0 %3702  ;;  %v3915_v56 = vsel %vm1830_vm6, %v3883_v61, %v3323_v48  ;;  %v5126_v48 = vld [vmem:[#allocation2 + $0xc8] sm:$0xff] }
 0x4e6   : > { %3344 = vrot.lane.b32.xlu1 %v2740_v1, %s5152_s8  ;;  %v4009_v33 = vsel %vm1929_vm9, %v3977_v23, %v3703_v17  ;;  %v3789_v23 = vsel %vm297_vm0, %v5126_v48, %v9562_v39  ;;  %v2746_v39 = vld [vmem:[#allocation2 + $0x19a] sm:$0xff] }
 0x4e7   : > { %3218 = vrot.lane.b32.xlu0 %v2709_v44, %s5151_s7  ;;  %5049 = vmatmul.mubr.msk.f32.gmra.mxu1 %vm1974_vm10, %v4009_v33  ;;  %v9563_v33 = vld [vmem:[#allocation115_spill] sm:$0xff] }
 0x4e8   : > { %v3451_v34 = vpop.permute.xlu1 %3450 }
 0x4e9   : > { %v3449_v63 = vpop.permute.xlu0 %3448  ;;  %v3947_v0 = vsel %vm1863_vm7, %v3915_v56, %v3451_v34  ;;  %v3821_v34 = vsel %vm1731_vm3, %v3789_v23, %v9563_v33  ;;  %v9572_v23 = vld [vmem:[#allocation177_spill] sm:$0xff] }
 0x4ea   : > { %3346 = vrot.lane.b32.xlu1 %v2647_v60, %s5152_s8  ;;  %v3946_v38 = vsel %vm1863_vm7, %v3914_v59, %v3449_v63  ;;  %v3853_v5 = vsel %vm1764_vm4, %v3821_v34, %v9564_v24  ;;  %v2681_v63 = vld [vmem:[#allocation2 + $0x188] sm:$0xff]  ;;  %v9573_v34 = vld [vmem:[#allocation72_spill] sm:$0xff] }
 0x4eb   : > { %3726 = vrot.lane.b32.xlu0 %v2647_v60, %s5155_s22 }
 0x4ec   : > { %v3197_v19 = vpop.permute.xlu1 %3196 }
 0x4ed   : > { %v3577_v27 = vpop.permute.xlu0 %3576  ;;  %v3884_v55 = vsel %vm1797_vm5, %v3852_v4, %v3197_v19 }
 0x4ee   : > { %3092 = vrot.lane.b32.xlu1 %v2584_v22, %s5150_s30  ;;  %v3978_v62 = vsel %vm1896_vm8, %v3946_v38, %v3577_v27  ;;  %v5127_v27 = vld [vmem:[#allocation2 + $0xd8] sm:$0xff] }
 0x4ef   : > { %3472 = vrot.lane.b32.xlu0 %v2584_v22, %s5153_s9 }
 0x4f0   : > { %v3705_v49 = vpop.permute.xlu1 %3704 }
 0x4f1   : > { %v4010_v42 = vsel %vm1929_vm9, %v3978_v62, %v3705_v49  ;;  %v3579_v51 = vpop.permute.xlu0 %3578  ;;  %v9565_v62 = vld [vmem:[#allocation149_spill] sm:$0xff] }
 0x4f2   : > { %3600 = vrot.lane.b32.xlu1 %v2710_v15, %s5154_s10  ;;  %5051 = vmatprep.mubr.msk.f32.mxu1 %vm1974_vm10, %v4010_v42  ;;  %v3979_v43 = vsel %vm1896_vm8, %v3947_v0, %v3579_v51  ;;  %v3790_v49 = vsel %vm297_vm0, %v5127_v27, %v9565_v62  ;;  %v2744_v42 = vld [vmem:[#allocation2 + $0x182] sm:$0xff] }
 0x4f3   : > { %3474 = vrot.lane.b32.xlu0 %v2679_v31, %s5153_s9  ;;  %v5128_v0 = vld [vmem:[#allocation2 + $0xe0] sm:$0xff]  ;;  %v9575_v27 = vld [vmem:[#allocation62_spill] sm:$0xff] }
 0x4f4   : > { %v3325_v26 = vpop.permute.xlu1 %3324 }
 0x4f5   : > { %v3199_v2 = vpop.permute.xlu0 %3198  ;;  %v3916_v52 = vsel %vm1830_vm6, %v3884_v55, %v3325_v26 }
 0x4f6   : > { %3220 = vrot.lane.b32.xlu1 %v2710_v15, %s5151_s7  ;;  %v3885_v60 = vsel %vm1797_vm5, %v3853_v5, %v3199_v2  ;;  %v9566_v15 = vld [vmem:[#allocation153_spill] sm:$0xff] }
 0x4f7   : > { %3094 = vrot.lane.b32.xlu0 %v2679_v31, %s5150_s30  ;;  %v3822_v21 = vsel %vm1731_vm3, %v3790_v49, %v9566_v15  ;;  %v9576_v49 = vld [vmem:[#allocation119_spill] sm:$0xff] }
 0x4f8   : > { %v3327_v10 = vpop.permute.xlu1 %3326  ;;  %v3854_v51 = vsel %vm1764_vm4, %v3822_v21, %v9567_v14 }
 0x4f9   : > { %v3707_v45 = vpop.permute.xlu0 %3706  ;;  %v3917_v41 = vsel %vm1830_vm6, %v3885_v60, %v3327_v10  ;;  %v2651_v10 = vld [vmem:[#allocation2 + $0x18a] sm:$0xff] }
 0x4fa   : > { %3728 = vrot.lane.b32.xlu1 %v2742_v47, %s5155_s22  ;;  %v4011_v58 = vsel %vm1929_vm9, %v3979_v43, %v3707_v45 }
 0x4fb   : > { %3602 = vrot.lane.b32.xlu0 %v2711_v37, %s5154_s10  ;;  %5052 = vmatmul.mubr.msk.f32.gmra.mxu1 %vm1974_vm10, %v4011_v58  ;;  %v9569_v58 = vld [vmem:[#allocation137_spill] sm:$0xff] }
 0x4fc   : > { %v3455_v11 = vpop.permute.xlu1 %3454 }
 0x4fd   : > { %v3453_v35 = vpop.permute.xlu0 %3452  ;;  %v3949_v30 = vsel %vm1863_vm7, %v3917_v41, %v3455_v11  ;;  %v2683_v11 = vld [vmem:[#allocation2 + $0x1a0] sm:$0xff] }
 0x4fe   : > { %3348 = vrot.lane.b32.xlu1 %v2742_v47, %s5152_s8  ;;  %v3948_v46 = vsel %vm1863_vm7, %v3916_v52, %v3453_v35  ;;  %v9568_v47 = vld [vmem:[#allocation113_spill] sm:$0xff] }
 0x4ff   : > { %3222 = vrot.lane.b32.xlu0 %v2711_v37, %s5151_s7  ;;  %v3791_v43 = vsel %vm297_vm0, %v5128_v0, %v9568_v47  ;;  %v2714_v52 = vld [vmem:[#allocation2 + $0x199] sm:$0xff] }
 0x500   : > { %v3201_v18 = vpop.permute.xlu1 %3200  ;;  %v3823_v37 = vsel %vm1731_vm3, %v3791_v43, %v9569_v58  ;;  %v9580_v58 = vld [vmem:[#allocation93_spill] sm:$0xff] }
 0x501   : > { %v3581_v9 = vpop.permute.xlu0 %3580  ;;  %v3886_v8 = vsel %vm1797_vm5, %v3854_v51, %v3201_v18  ;;  %v3855_v25 = vsel %vm1764_vm4, %v3823_v37, %v9570_v13 }
 0x502   : > { %3350 = vrot.lane.b32.xlu1 %v2649_v36, %s5152_s8  ;;  %v3980_v1 = vsel %vm1896_vm8, %v3948_v46, %v3581_v9 }
 0x503   : > { %3730 = vrot.lane.b32.xlu0 %v2649_v36, %s5155_s22 }
 0x504   : > { %v3709_v57 = vpop.permute.xlu1 %3708 }
 0x505   : > { %v4012_v44 = vsel %vm1929_vm9, %v3980_v1, %v3709_v57  ;;  %v3583_v17 = vpop.permute.xlu0 %3582  ;;  %v2747_v1 = vld [vmem:[#allocation2 + $0x1a2] sm:$0xff] }
 0x506   : > { %3096 = vrot.lane.b32.xlu1 %v2586_v29, %s5150_s30  ;;  %5054 = vmatprep.mubr.msk.f32.mxu1 %vm1974_vm10, %v4012_v44  ;;  %v3981_v19 = vsel %vm1896_vm8, %v3949_v30, %v3583_v17  ;;  %v5129_v44 = vld [vmem:[#allocation2 + $0xf0] sm:$0xff]  ;;  %v5130_v30 = vld [vmem:[#allocation2 + $0xf8] sm:$0xff] }
 0x507   : > { %3476 = vrot.lane.b32.xlu0 %v2586_v29, %s5153_s9  ;;  %v9571_v29 = vld [vmem:[#allocation173_spill] sm:$0xff] }
 0x508   : > { %v3329_v12 = vpop.permute.xlu1 %3328  ;;  %v3792_v48 = vsel %vm297_vm0, %v5129_v44, %v9571_v29  ;;  %v9588_v44 = vld [vmem:[#allocation157_spill] sm:$0xff] }
 0x509   : > { %v3203_v50 = vpop.permute.xlu0 %3202  ;;  %v3918_v16 = vsel %vm1830_vm6, %v3886_v8, %v3329_v12  ;;  %v3824_v17 = vsel %vm1731_vm3, %v3792_v48, %v9572_v23 }
 0x50a   : > { %3604 = vrot.lane.b32.xlu1 %v2712_v53, %s5154_s10  ;;  %v3887_v28 = vsel %vm1797_vm5, %v3855_v25, %v3203_v50  ;;  %v3856_v24 = vsel %vm1764_vm4, %v3824_v17, %v9573_v34  ;;  %v9582_v25 = vld [vmem:[#allocation3_spill] sm:$0xff] }
 0x50b   : > { %3478 = vrot.lane.b32.xlu0 %v2681_v63, %s5153_s9 }
 0x50c   : > { %v3331_v54 = vpop.permute.xlu1 %3330 }
 0x50d   : > { %v3711_v59 = vpop.permute.xlu0 %3710  ;;  %v3919_v4 = vsel %vm1830_vm6, %v3887_v28, %v3331_v54 }
 0x50e   : > { %3224 = vrot.lane.b32.xlu1 %v2712_v53, %s5151_s7  ;;  %v4013_v22 = vsel %vm1929_vm9, %v3981_v19, %v3711_v59  ;;  %v9574_v19 = vld [vmem:[#allocation133_spill] sm:$0xff] }
 0x50f   : > { %3098 = vrot.lane.b32.xlu0 %v2681_v63, %s5150_s30  ;;  %5055 = vmatmul.mubr.msk.f32.gmra.mxu1 %vm1974_vm10, %v4013_v22  ;;  %v3793_v59 = vsel %vm297_vm0, %v5130_v30, %v9574_v19  ;;  %v9591_v30 = vld [vmem:[#allocation141_spill] sm:$0xff] }
 0x510   : > { %v3459_v38 = vpop.permute.xlu1 %3458  ;;  %v3825_v62 = vsel %vm1731_vm3, %v3793_v59, %v9575_v27 }
 0x511   : > { %v3457_v6 = vpop.permute.xlu0 %3456  ;;  %v3951_v18 = vsel %vm1863_vm7, %v3919_v4, %v3459_v38  ;;  %v8366_v38 = vld [vmem:[%s8842_s4] ss:$0 sm:$0xff] }
 0x512   : > { %3732 = vrot.lane.b32.xlu1 %v2744_v42, %s5155_s22  ;;  %v3950_v32 = vsel %vm1863_vm7, %v3918_v16, %v3457_v6  ;;  %v9577_v16 = vmov 0.0  }
 0x513   : > { %3606 = vrot.lane.b32.xlu0 %v2713_v40, %s5154_s10 }
 0x514   : > { %v3205_v31 = vpop.permute.xlu1 %3204 }
 0x515   : > { %v3585_v26 = vpop.permute.xlu0 %3584  ;;  %v3888_v5 = vsel %vm1797_vm5, %v3856_v24, %v3205_v31 }
 0x516   : > { %3352 = vrot.lane.b32.xlu1 %v2744_v42, %s5152_s8  ;;  %v3982_v61 = vsel %vm1896_vm8, %v3950_v32, %v3585_v26  ;;  %v3857_v42 = vsel %vm1764_vm4, %v3825_v62, %v9576_v49 }
 0x517   : > { %3226 = vrot.lane.b32.xlu0 %v2713_v40, %s5151_s7 }
 0x518   : > { %v3713_v2 = vpop.permute.xlu1 %3712 }
 0x519   : > { %v4014_v56 = vsel %vm1929_vm9, %v3982_v61, %v3713_v2  ;;  %v3587_v45 = vpop.permute.xlu0 %3586 }
 0x51a   : > { %3354 = vrot.lane.b32.xlu1 %v2651_v10, %s5152_s8  ;;  %5057 = vmatprep.mubr.msk.f32.mxu1 %vm1974_vm10, %v4014_v56  ;;  %v3983_v36 = vsel %vm1896_vm8, %v3951_v18, %v3587_v45  ;;  %v9578_v56 = vld [vmem:[#allocation5_spill] sm:$0xff]  ;;  %v9579_v45 = vld [vmem:[#allocation36_spill] sm:$0xff]  ;;  %v9584_v18 = vld [vmem:[#allocation38_spill] sm:$0xff] }
 0x51b   : > { %3734 = vrot.lane.b32.xlu0 %v2651_v10, %s5155_s22  ;;  %v9581_v37 = vsub.f32 %v9579_v45, %v9580_v58 }
 0x51c   : > { %v3333_v7 = vpop.permute.xlu1 %3332 }
 0x51d   : > { %v3207_v35 = vpop.permute.xlu0 %3206  ;;  %v3920_v60 = vsel %vm1830_vm6, %v3888_v5, %v3333_v7 }
 0x51e   : > { %3482 = vrot.lane.b32.xlu1 %v2683_v11, %s5153_s9  ;;  %v3889_v6 = vsel %vm1797_vm5, %v3857_v42, %v3207_v35  ;;  %v5131_v35 = vld [vmem:[#allocation2 + $0x108] sm:$0xff] }
 0x51f   : > { %3480 = vrot.lane.b32.xlu0 %v2682_v20, %s5153_s9 }
 0x520   : > { %v3335_v55 = vpop.permute.xlu1 %3334 }
 0x521   : > { %v3715_v46 = vpop.permute.xlu0 %3714  ;;  %v3921_v31 = vsel %vm1830_vm6, %v3889_v6, %v3335_v55 }
 0x522   : > { %3610 = vrot.lane.b32.xlu1 %v2715_v3, %s5154_s10  ;;  %v4015_v9 = vsel %vm1929_vm9, %v3983_v36, %v3715_v46  ;;  %v9583_v3 = vld [vmem:[#allocation136_spill] sm:$0xff] }
 0x523   : > { %3608 = vrot.lane.b32.xlu0 %v2714_v52, %s5154_s10  ;;  %5058 = vmatmul.mubr.msk.f32.gmra.mxu1 %vm1974_vm10, %v4015_v9  ;;  %s8380_s10 = scalar_lea.vmem %s8843_s5, %s5317_s24  ;;  %v3794_v4 = vsel %vm297_vm0, %v5131_v35, %v9583_v3  ;;  %v9585_v52 = vld [vmem:[#allocation98_spill] sm:$0xff]  ;;  %v9587_v9 = vld [vmem:[#allocation176_spill] sm:$0xff] }
 0x524   : > { %v3463_v57 = vpop.permute.xlu1 %3462  ;;  %v9586_v36 = vsub.f32 %v9584_v18, %v9585_v52  ;;  %v9602_v52 = vld [vmem:[#allocation181_spill] sm:$0xff] }
 0x525   : > { %v3461_v33 = vpop.permute.xlu0 %3460  ;;  %v3953_v61 = vsel %vm1863_vm7, %v3921_v31, %v3463_v57  ;;  %v9592_v31 = vld [vmem:[#allocation7_spill] sm:$0xff] }
 0x526   : > { %3738 = vrot.lane.b32.xlu1 %v2747_v1, %s5155_s22  ;;  %v3952_v53 = vsel %vm1863_vm7, %v3920_v60, %v3461_v33  ;;  %v3826_v1 = vsel %vm1731_vm3, %v3794_v4, %v9587_v9  ;;  %v9601_v4 = vld [vmem:[#allocation118_spill] sm:$0xff] }
 0x527   : > { %3736 = vrot.lane.b32.xlu0 %v2746_v39, %s5155_s22  ;;  %v3858_v29 = vsel %vm1764_vm4, %v3826_v1, %v9588_v44 }
 0x528   : > { %v3209_v12 = vpop.permute.xlu1 %3208 }
 0x529   : > { %v3589_v50 = vpop.permute.xlu0 %3588  ;;  %v3890_v39 = vsel %vm1797_vm5, %v3858_v29, %v3209_v12  ;;  %v9590_v12 = vld [vmem:[#allocation152_spill] sm:$0xff] }
 0x52a   : > { %v3984_v63 = vsel %vm1896_vm8, %v3952_v53, %v3589_v50  ;;  %v5132_v53 = vld [vmem:[#allocation2 + $0x110] sm:$0xff]  ;;  %v9589_v50 = vld [vmem:[#allocation194_spill] sm:$0xff] }
 0x52c   : > { %v3717_v41 = vpop.permute.xlu1 %3716 }
 0x52d   : > { %v4016_v54 = vsel %vm1929_vm9, %v3984_v63, %v3717_v41  ;;  %v3591_v22 = vpop.permute.xlu0 %3590  ;;  %v3795_v63 = vsel %vm297_vm0, %v5132_v53, %v9589_v50  ;;  %v9605_v53 = vld [vmem:[#allocation70_spill] sm:$0xff] }
 0x52e   : > { %5060 = vmatprep.mubr.msk.f32.mxu1 %vm1974_vm10, %v4016_v54  ;;  %v3985_v0 = vsel %vm1896_vm8, %v3953_v61, %v3591_v22  ;;  %v3827_v54 = vsel %vm1731_vm3, %v3795_v63, %v9590_v12 }
 0x52f   : > { %v5032_v21 = vpop.f32.mrf.mxu1  ;;  %v3859_v19 = vsel %vm1764_vm4, %v3827_v54, %v9591_v30 }
 0x530   : > { %v3337_v15 = vpop.permute.xlu1 %3336  ;;  %v4211_v14 = vadd.f32 %v5032_v21, %v8366_v38 }
 0x531   : > { %v4205_v51 = vpop.f32.mrf.mxu1  ;;  %v3211_v40 = vpop.permute.xlu0 %3210  ;;  %v3922_v17 = vsel %vm1830_vm6, %v3890_v39, %v3337_v15 }
 0x532   : > { %vm4365_vm2 = vcmp.gt.f32.partialorder %v4211_v14, 1.0  ;;  %v4206_v8 = vadd.f32 %v8366_v38, %v4205_v51  ;;  %v3891_v27 = vsel %vm1797_vm5, %v3859_v19, %v3211_v40 }
 0x533   : > { %v4852_v32 = vsel %vm4365_vm2, 1.0, %v9577_v16 }
 0x534   : > { %v3339_v26 = vpop.permute.xlu1 %3338  ;;  %v4461_v2 = vsub.f32 %v4211_v14, %v4852_v32  ;;  %v4493_v10 = vadd.f32 %v4852_v32, %v9578_v56  ;;  %vm4364_vm13 = vcmp.gt.f32.partialorder %v4206_v8, 1.0  ;;  %v9593_v56 = vld [vmem:[#allocation40_spill] sm:$0xff] }
 0x535   : > { %v4851_v47 = vsel %vm4364_vm13, 1.0, %v9577_v16  ;;  %v3719_v43 = vpop.permute.xlu0 %3718  ;;  %v3923_v21 = vsel %vm1830_vm6, %v3891_v27, %v3339_v26  ;;  %v9594_v26 = vld [vmem:[#allocation43_spill] sm:$0xff] }
 0x536   : > { %4525 = vst.msk [vmem:[%s8380_s10 + $0x8] sm:$0xff] %vm297_vm0, %v4493_v10  ;;  %v4557_v11 = vadd.f32 %v4461_v2, %v9581_v37  ;;  %v4460_v13 = vsub.f32 %v4206_v8, %v4851_v47  ;;  %v4492_v7 = vadd.f32 %v4851_v47, %v9582_v25  ;;  %v4017_v28 = vsel %vm1929_vm9, %v3985_v0, %v3719_v43  ;;  %v9596_v43 = vld [vmem:[#allocation4_spill] sm:$0xff] }
 0x537   : > { %5061 = vmatmul.mubr.msk.f32.gmra.mxu1 %vm1974_vm10, %v4017_v28  ;;  %v9595_v10 = vsub.f32 %v9593_v56, %v9594_v26  ;;  %v9598_v28 = vld [vmem:[#allocation42_spill] sm:$0xff] }
 0x538   : > { %v3467_v20 = vpop.permute.xlu1 %3466  ;;  %v4589_v55 = vmul.f32 0.5, %v4557_v11  ;;  %4524 = vst.msk [vmem:[%s8380_s10] sm:$0xff] %vm297_vm0, %v4492_v7  ;;  %v4556_v46 = vadd.f32 %v4460_v13, %v9586_v36  ;;  %v5133_v11 = vld [vmem:[#allocation2 + $0x120] sm:$0xff] }
 0x539   : > { %v3465_v57 = vpop.permute.xlu0 %3464  ;;  %v3955_v51 = vsel %vm1863_vm7, %v3923_v21, %v3467_v20  ;;  %v9597_v13 = vld [vmem:[#allocation197_spill] sm:$0xff] }
 0x53a   : > { %4621 = vst.msk [vmem:[%s8398_s19 + $0x8] sm:$0xff] %vm297_vm0, %v4589_v55  ;;  %v4588_v48 = vmul.f32 0.5, %v4556_v46  ;;  %v3954_v33 = vsel %vm1863_vm7, %v3922_v17, %v3465_v57  ;;  %v3796_v25 = vsel %vm297_vm0, %v5133_v11, %v9597_v13  ;;  %v9599_v20 = vld [vmem:[#allocation101_spill] sm:$0xff]  ;;  %v5135_v13 = vld [vmem:[#allocation2 + $0x138] sm:$0xff] }
 0x53b   : > { %v9600_v35 = vsub.f32 %v9598_v28, %v9599_v20  ;;  %v3828_v55 = vsel %vm1731_vm3, %v3796_v25, %v9601_v4  ;;  %v9606_v21 = vld [vmem:[#allocation9_spill] sm:$0xff]  ;;  %v9614_v25 = vld [vmem:[#allocation60_spill] sm:$0xff] }
 0x53c   : > { %v3213_v23 = vpop.permute.xlu1 %3212  ;;  %4620 = vst.msk [vmem:[%s8398_s19] sm:$0xff] %vm297_vm0, %v4588_v48  ;;  %v3860_v36 = vsel %vm1764_vm4, %v3828_v55, %v9602_v52  ;;  %v9615_v20 = vld [vmem:[#allocation140_spill] sm:$0xff] }
 0x53d   : > { %v3593_v34 = vpop.permute.xlu0 %3592  ;;  %v3892_v9 = vsel %vm1797_vm5, %v3860_v36, %v3213_v23  ;;  %v9604_v23 = vld [vmem:[#allocation79_spill] sm:$0xff] }
 0x53e   : > { %v3986_v24 = vsel %vm1896_vm8, %v3954_v33, %v3593_v34  ;;  %v5134_v33 = vld [vmem:[#allocation2 + $0x128] sm:$0xff] }
 0x53f   : > { %v9603_v34 = vld [vmem:[#allocation54_spill] sm:$0xff] }
 0x540   : > { %v3721_v5 = vpop.permute.xlu1 %3720 }
 0x541   : > { %v4018_v60 = vsel %vm1929_vm9, %v3986_v24, %v3721_v5  ;;  %v3595_v41 = vpop.permute.xlu0 %3594  ;;  %v3797_v24 = vsel %vm297_vm0, %v5134_v33, %v9603_v34  ;;  %v9617_v33 = vld [vmem:[#allocation135_spill] sm:$0xff] }
 0x542   : > { %5063 = vmatprep.mubr.msk.f32.mxu1 %vm1974_vm10, %v4018_v60  ;;  %v3987_v40 = vsel %vm1896_vm8, %v3955_v51, %v3595_v41  ;;  %v3829_v60 = vsel %vm1731_vm3, %v3797_v24, %v9604_v23 }
 0x543   : > { %v5035_v22 = vpop.f32.mrf.mxu1  ;;  %v3861_v50 = vsel %vm1764_vm4, %v3829_v60, %v9605_v53  ;;  %v9619_v53 = vld [vmem:[#allocation156_spill] sm:$0xff] }
 0x544   : > { %v3341_v59 = vpop.permute.xlu1 %3340  ;;  %v4221_v62 = vadd.f32 %v5035_v22, %v8366_v38 }
 0x545   : > { %v4215_v49 = vpop.f32.mrf.mxu1  ;;  %v3215_v42 = vpop.permute.xlu0 %3214  ;;  %v3924_v57 = vsel %vm1830_vm6, %v3892_v9, %v3341_v59 }
 0x546   : > { %vm4367_vm14 = vcmp.gt.f32.partialorder %v4221_v62, 1.0  ;;  %v4216_v15 = vadd.f32 %v8366_v38, %v4215_v49  ;;  %v3893_v12 = vsel %vm1797_vm5, %v3861_v50, %v3215_v42 }
 0x547   : > { %v4854_v6 = vsel %vm4367_vm14, 1.0, %v9577_v16 }
 0x548   : > { %v3343_v14 = vpop.permute.xlu1 %3342  ;;  %v4463_v8 = vsub.f32 %v4221_v62, %v4854_v6  ;;  %v4495_v32 = vadd.f32 %v4854_v6, %v9592_v31  ;;  %vm4366_vm15 = vcmp.gt.f32.partialorder %v4216_v15, 1.0  ;;  %v9607_v31 = vld [vmem:[#allocation97_spill] sm:$0xff] }
 0x549   : > { %v4853_v61 = vsel %vm4366_vm15, 1.0, %v9577_v16  ;;  %v3723_v2 = vpop.permute.xlu0 %3722  ;;  %v3925_v22 = vsel %vm1830_vm6, %v3893_v12, %v3343_v14  ;;  %v9608_v14 = vld [vmem:[#allocation46_spill] sm:$0xff] }
 0x54a   : > { %4527 = vst.msk [vmem:[%s8380_s10 + $0x18] sm:$0xff] %vm297_vm0, %v4495_v32  ;;  %v4559_v0 = vadd.f32 %v4463_v8, %v9595_v10  ;;  %v4462_v47 = vsub.f32 %v4216_v15, %v4853_v61  ;;  %v4494_v45 = vadd.f32 %v4853_v61, %v9596_v43  ;;  %v4019_v58 = vsel %vm1929_vm9, %v3987_v40, %v3723_v2  ;;  %v9610_v2 = vld [vmem:[#allocation6_spill] sm:$0xff]  ;;  %v9612_v43 = vld [vmem:[#allocation103_spill] sm:$0xff] }
 0x54b   : > { %5064 = vmatmul.mubr.msk.f32.gmra.mxu1 %vm1974_vm10, %v4019_v58  ;;  %v9609_v32 = vsub.f32 %v9607_v31, %v9608_v14 }
 0x54c   : > { %v3471_v37 = vpop.permute.xlu1 %3470  ;;  %v4591_v7 = vmul.f32 0.5, %v4559_v0  ;;  %4526 = vst.msk [vmem:[%s8380_s10 + $0x10] sm:$0xff] %vm297_vm0, %v4494_v45  ;;  %v4558_v3 = vadd.f32 %v4462_v47, %v9600_v35  ;;  %v9611_v47 = vld [vmem:[#allocation45_spill] sm:$0xff] }
 0x54d   : > { %v3469_v18 = vpop.permute.xlu0 %3468  ;;  %v3957_v49 = vsel %vm1863_vm7, %v3925_v22, %v3471_v37  ;;  %v9613_v45 = vsub.f32 %v9611_v47, %v9612_v43 }
 0x54e   : > { %4623 = vst.msk [vmem:[%s8398_s19 + $0x18] sm:$0xff] %vm297_vm0, %v4591_v7  ;;  %v4590_v46 = vmul.f32 0.5, %v4558_v3  ;;  %v3956_v44 = vsel %vm1863_vm7, %v3924_v57, %v3469_v18  ;;  %v3798_v7 = vsel %vm297_vm0, %v5135_v13, %v9614_v25  ;;  %v9616_v3 = vld [vmem:[#allocation180_spill] sm:$0xff] }
 0x54f   : > { %v3830_v35 = vsel %vm1731_vm3, %v3798_v7, %v9615_v20  ;;  %v9629_v25 = vld [vmem:[#allocation68_spill] sm:$0xff] }
 0x550   : > { %v3217_v1 = vpop.permute.xlu1 %3216  ;;  %4622 = vst.msk [vmem:[%s8398_s19 + $0x10] sm:$0xff] %vm297_vm0, %v4590_v46  ;;  %v3862_v4 = vsel %vm1764_vm4, %v3830_v35, %v9616_v3 }
 0x551   : > { %v3597_v29 = vpop.permute.xlu0 %3596  ;;  %v3894_v18 = vsel %vm1797_vm5, %v3862_v4, %v3217_v1 }
 0x552   : > { %v3988_v48 = vsel %vm1896_vm8, %v3956_v44, %v3597_v29 }
 0x554   : > { %v3725_v39 = vpop.permute.xlu1 %3724 }
 0x555   : > { %v4020_v17 = vsel %vm1929_vm9, %v3988_v48, %v3725_v39  ;;  %v3599_v5 = vpop.permute.xlu0 %3598 }
 0x556   : > { %5066 = vmatprep.mubr.msk.f32.mxu1 %vm1974_vm10, %v4020_v17  ;;  %v3989_v42 = vsel %vm1896_vm8, %v3957_v49, %v3599_v5  ;;  %v5136_v17 = vld [vmem:[#allocation2 + $0x140] sm:$0xff]  ;;  %v9621_v49 = vld [vmem:[#allocation100_spill] sm:$0xff] }
 0x557   : > { %v5038_v41 = vpop.f32.mrf.mxu1  ;;  %v3799_v34 = vsel %vm297_vm0, %v5136_v17, %v9617_v33  ;;  %v9618_v5 = vld [vmem:[#allocation77_spill] sm:$0xff] }
 0x558   : > { %v3345_v63 = vpop.permute.xlu1 %3344  ;;  %v4231_v54 = vadd.f32 %v5038_v41, %v8366_v38  ;;  %v3831_v23 = vsel %vm1731_vm3, %v3799_v34, %v9618_v5  ;;  %v5138_v34 = vld [vmem:[#allocation2 + $0x158] sm:$0xff] }
 0x559   : > { %v3219_v30 = vpop.permute.xlu0 %3218  ;;  %v4225_v19 = vpop.f32.mrf.mxu1  ;;  %v3926_v52 = vsel %vm1830_vm6, %v3894_v18, %v3345_v63  ;;  %v3863_v50 = vsel %vm1764_vm4, %v3831_v23, %v9619_v53 }
 0x55a   : > { %vm4369_vm1 = vcmp.gt.f32.partialorder %v4231_v54, 1.0  ;;  %v4226_v59 = vadd.f32 %v8366_v38, %v4225_v19  ;;  %v3895_v12 = vsel %vm1797_vm5, %v3863_v50, %v3219_v30  ;;  %v9620_v19 = vld [vmem:[#allocation11_spill] sm:$0xff]  ;;  %v9633_v50 = vld [vmem:[#allocation102_spill] sm:$0xff] }
 0x55b   : > { %v4856_v27 = vsel %vm4369_vm1, 1.0, %v9577_v16 }
 0x55c   : > { %v3347_v62 = vpop.permute.xlu1 %3346  ;;  %v4465_v15 = vsub.f32 %v4231_v54, %v4856_v27  ;;  %v4497_v6 = vadd.f32 %v4856_v27, %v9606_v21  ;;  %vm4368_vm11 = vcmp.gt.f32.partialorder %v4226_v59, 1.0 }
 0x55d   : > { %v4855_v51 = vsel %vm4368_vm11, 1.0, %v9577_v16  ;;  %v3727_v8 = vpop.permute.xlu0 %3726  ;;  %v3927_v30 = vsel %vm1830_vm6, %v3895_v12, %v3347_v62 }
 0x55e   : > { %4529 = vst.msk [vmem:[%s8380_s10 + $0x28] sm:$0xff] %vm297_vm0, %v4497_v6  ;;  %v4561_v40 = vadd.f32 %v4465_v15, %v9609_v32  ;;  %v4464_v61 = vsub.f32 %v4226_v59, %v4855_v51  ;;  %v4496_v56 = vadd.f32 %v4855_v51, %v9610_v2  ;;  %v4021_v26 = vsel %vm1929_vm9, %v3989_v42, %v3727_v8  ;;  %v9622_v15 = vld [vmem:[#allocation49_spill] sm:$0xff]  ;;  %v9624_v51 = vld [vmem:[#allocation8_spill] sm:$0xff] }
 0x55f   : > { %5067 = vmatmul.mubr.msk.f32.gmra.mxu1 %vm1974_vm10, %v4021_v26  ;;  %v9623_v21 = vsub.f32 %v9621_v49, %v9622_v15 }
 0x560   : > { %v8488_v10 = vpop.permute.xlu1 %3092  ;;  %v4593_v0 = vmul.f32 0.5, %v4561_v40  ;;  %4528 = vst.msk [vmem:[%s8380_s10 + $0x20] sm:$0xff] %vm297_vm0, %v4496_v56  ;;  %v4560_v58 = vadd.f32 %v4464_v61, %v9613_v45  ;;  %v9625_v40 = vld [vmem:[#allocation48_spill] sm:$0xff]  ;;  %v9626_v61 = vld [vmem:[#allocation51_spill] sm:$0xff] }
 0x561   : > { %v3473_v37 = vpop.permute.xlu0 %3472  ;;  %v9627_v2 = vsub.f32 %v9625_v40, %v9626_v61 }
 0x562   : > { %4625 = vst.msk [vmem:[%s8398_s19 + $0x28] sm:$0xff] %vm297_vm0, %v4593_v0  ;;  %v4592_v11 = vmul.f32 0.5, %v4560_v58  ;;  %v3958_v46 = vsel %vm1863_vm7, %v3926_v52, %v3473_v37  ;;  %v5137_v58 = vld [vmem:[#allocation2 + $0x150] sm:$0xff] }
 0x563   : > { %v9628_v37 = vld [vmem:[#allocation151_spill] sm:$0xff] }
 0x564   : > { %v3601_v28 = vpop.permute.xlu1 %3600  ;;  %4624 = vst.msk [vmem:[%s8398_s19 + $0x20] sm:$0xff] %vm297_vm0, %v4592_v11  ;;  %v3800_v11 = vsel %vm297_vm0, %v5137_v58, %v9628_v37  ;;  %v2490_v58 = vld [vmem:[#allocation2 + $0x168] sm:$0xff] }
 0x565   : > { %v3475_v55 = vpop.permute.xlu0 %3474  ;;  %v3990_v57 = vsel %vm1896_vm8, %v3958_v46, %v3601_v28  ;;  %v3832_v7 = vsel %vm1731_vm3, %v3800_v11, %v9629_v25  ;;  %v9642_v11 = vld [vmem:[#allocation175_spill] sm:$0xff] }
 0x566   : > { %v3959_v14 = vsel %vm1863_vm7, %v3927_v30, %v3475_v55  ;;  %v3864_v28 = vsel %vm1764_vm4, %v3832_v7, %v8488_v10 }
 0x568   : > { %v3221_v36 = vpop.permute.xlu1 %3220 }
 0x569   : > { %v8509_v9 = vpop.permute.xlu0 %3094  ;;  %v3896_v35 = vsel %vm1797_vm5, %v3864_v28, %v3221_v36 }
 0x56b   : > { %v5041_v29 = vpop.f32.mrf.mxu1 }
 0x56c   : > { %v3729_v44 = vpop.permute.xlu1 %3728  ;;  %v4241_v39 = vadd.f32 %v5041_v29, %v8366_v38 }
 0x56d   : > { %v4022_v48 = vsel %vm1929_vm9, %v3990_v57, %v3729_v44  ;;  %v3603_v1 = vpop.permute.xlu0 %3602  ;;  %v4235_v24 = vpop.f32.mrf.mxu1 }
 0x56e   : > { %5069 = vmatprep.mubr.msk.f32.mxu1 %vm1974_vm10, %v4022_v48  ;;  %vm4371_vm12 = vcmp.gt.f32.partialorder %v4241_v39, 1.0  ;;  %v4236_v60 = vadd.f32 %v8366_v38, %v4235_v24  ;;  %v3991_v26 = vsel %vm1896_vm8, %v3959_v14, %v3603_v1  ;;  %v9631_v1 = vld [vmem:[#allocation148_spill] sm:$0xff] }
 0x56f   : > { %v4858_v63 = vsel %vm4371_vm12, 1.0, %v9577_v16  ;;  %v3801_v24 = vsel %vm297_vm0, %v5138_v34, %v9631_v1 }
 0x570   : > { %v3349_v41 = vpop.permute.xlu1 %3348  ;;  %v4467_v54 = vsub.f32 %v4241_v39, %v4858_v63  ;;  %v4499_v59 = vadd.f32 %v4858_v63, %v9620_v19  ;;  %vm4370_vm2 = vcmp.gt.f32.partialorder %v4236_v60, 1.0  ;;  %v9630_v39 = vld [vmem:[#allocation13_spill] sm:$0xff]  ;;  %v9634_v63 = vld [vmem:[#allocation104_spill] sm:$0xff]  ;;  %v9636_v19 = vld [vmem:[#allocation10_spill] sm:$0xff] }
 0x571   : > { %v4857_v22 = vsel %vm4370_vm2, 1.0, %v9577_v16  ;;  %v3223_v27 = vpop.permute.xlu0 %3222  ;;  %v3928_v3 = vsel %vm1830_vm6, %v3896_v35, %v3349_v41  ;;  %v9635_v41 = vsub.f32 %v9633_v50, %v9634_v63  ;;  %v9648_v63 = vld [vmem:[#allocation12_spill] sm:$0xff] }
 0x572   : > { %4531 = vst.msk [vmem:[%s8380_s10 + $0x38] sm:$0xff] %vm297_vm0, %v4499_v59  ;;  %v4563_v6 = vadd.f32 %v4467_v54, %v9623_v21  ;;  %v4466_v42 = vsub.f32 %v4236_v60, %v4857_v22  ;;  %v4498_v8 = vadd.f32 %v4857_v22, %v9624_v51  ;;  %v9632_v60 = vld [vmem:[#allocation117_spill] sm:$0xff] }
 0x573   : > { %v3833_v53 = vsel %vm1731_vm3, %v3801_v24, %v9632_v60 }
 0x574   : > { %v3351_v31 = vpop.permute.xlu1 %3350  ;;  %v4595_v32 = vmul.f32 0.5, %v4563_v6  ;;  %4530 = vst.msk [vmem:[%s8380_s10 + $0x30] sm:$0xff] %vm297_vm0, %v4498_v8  ;;  %v4562_v56 = vadd.f32 %v4466_v42, %v9627_v2  ;;  %v3865_v22 = vsel %vm1764_vm4, %v3833_v53, %v8509_v9  ;;  %v9637_v6 = vld [vmem:[#allocation53_spill] sm:$0xff] }
 0x575   : > { %v3731_v0 = vpop.permute.xlu0 %3730  ;;  %v3897_v15 = vsel %vm1797_vm5, %v3865_v22, %v3223_v27  ;;  %v9638_v42 = vld [vmem:[#allocation57_spill] sm:$0xff]  ;;  %v9650_v22 = vld [vmem:[#allocation126_spill] sm:$0xff] }
 0x576   : > { %4627 = vst.msk [vmem:[%s8398_s19 + $0x38] sm:$0xff] %vm297_vm0, %v4595_v32  ;;  %v4594_v47 = vmul.f32 0.5, %v4562_v56  ;;  %v4023_v43 = vsel %vm1929_vm9, %v3991_v26, %v3731_v0  ;;  %v9639_v51 = vsub.f32 %v9637_v6, %v9638_v42  ;;  %v3929_v32 = vsel %vm1830_vm6, %v3897_v15, %v3351_v31  ;;  %v2491_v56 = vld [vmem:[#allocation2 + $0x170] sm:$0xff]  ;;  %v9640_v0 = vld [vmem:[#allocation150_spill] sm:$0xff] }
 0x577   : > { %5070 = vmatmul.mubr.msk.f32.gmra.mxu1 %vm1974_vm10, %v4023_v43  ;;  %v9641_v43 = vld [vmem:[#allocation139_spill] sm:$0xff] }
 0x578   : > { %v8543_v45 = vpop.permute.xlu1 %3096  ;;  %4626 = vst.msk [vmem:[%s8398_s19 + $0x30] sm:$0xff] %vm297_vm0, %v4594_v47  ;;  %v3803_v47 = vsel %vm297_vm0, %v2491_v56, %v9640_v0  ;;  %v9656_v0 = vld [vmem:[#allocation14_spill] sm:$0xff] }
 0x579   : > { %v3477_v62 = vpop.permute.xlu0 %3476  ;;  %v3835_v31 = vsel %vm1731_vm3, %v3803_v47, %v9641_v43 }
 0x57a   : > { %v3960_v18 = vsel %vm1863_vm7, %v3928_v3, %v3477_v62 }
 0x57c   : > { %v3605_v13 = vpop.permute.xlu1 %3604 }
 0x57d   : > { %v3479_v20 = vpop.permute.xlu0 %3478  ;;  %v3992_v29 = vsel %vm1896_vm8, %v3960_v18, %v3605_v13  ;;  %v3802_v13 = vsel %vm297_vm0, %v2490_v58, %v9642_v11 }
 0x57e   : > { %v3961_v61 = vsel %vm1863_vm7, %v3929_v32, %v3479_v20  ;;  %v9643_v20 = vld [vmem:[#allocation155_spill] sm:$0xff]  ;;  %v9652_v32 = vld [vmem:[#allocation17_spill] sm:$0xff] }
 0x57f   : > { %v5044_v55 = vpop.f32.mrf.mxu1  ;;  %v3834_v35 = vsel %vm1731_vm3, %v3802_v13, %v9643_v20 }
 0x580   : > { %v3225_v4 = vpop.permute.xlu1 %3224  ;;  %v4251_v52 = vadd.f32 %v5044_v55, %v8366_v38  ;;  %v3866_v55 = vsel %vm1764_vm4, %v3834_v35, %v8543_v45  ;;  %v9644_v45 = vld [vmem:[#allocation15_spill] sm:$0xff] }
 0x581   : > { %v3099_v46 = vpop.permute.xlu0 %3098  ;;  %v4245_v57 = vpop.f32.mrf.mxu1 }
 0x582   : > { %vm4373_vm13 = vcmp.gt.f32.partialorder %v4251_v52, 1.0  ;;  %v4246_v44 = vadd.f32 %v8366_v38, %v4245_v57  ;;  %v3867_v37 = vsel %vm1764_vm4, %v3835_v31, %v3099_v46  ;;  %v3898_v57 = vsel %vm1797_vm5, %v3866_v55, %v3225_v4  ;;  %v9657_v31 = vld [vmem:[#allocation165_spill] sm:$0xff] }
 0x583   : > { %v4860_v10 = vsel %vm4373_vm13, 1.0, %v9577_v16 }
 0x584   : > { %v3733_v48 = vpop.permute.xlu1 %3732  ;;  %v4469_v36 = vsub.f32 %v4251_v52, %v4860_v10  ;;  %v4501_v17 = vadd.f32 %v4860_v10, %v9630_v39  ;;  %vm4372_vm14 = vcmp.gt.f32.partialorder %v4246_v44, 1.0 }
 0x585   : > { %v4024_v33 = vsel %vm1929_vm9, %v3992_v29, %v3733_v48  ;;  %v4859_v5 = vsel %vm4372_vm14, 1.0, %v9577_v16  ;;  %v3607_v23 = vpop.permute.xlu0 %3606 }
 0x586   : > { %5072 = vmatprep.mubr.msk.f32.mxu1 %vm1974_vm10, %v4024_v33  ;;  %4533 = vst.msk [vmem:[%s8380_s10 + $0x48] sm:$0xff] %vm297_vm0, %v4501_v17  ;;  %v4565_v12 = vadd.f32 %v4469_v36, %v9635_v41  ;;  %v4468_v54 = vsub.f32 %v4246_v44, %v4859_v5  ;;  %v4500_v59 = vadd.f32 %v4859_v5, %v9636_v19  ;;  %v9645_v5 = vld [vmem:[#allocation55_spill] sm:$0xff] }
 0x587   : > { %v3993_v9 = vsel %vm1896_vm8, %v3961_v61, %v3607_v23  ;;  %v9646_v23 = vld [vmem:[#allocation163_spill] sm:$0xff] }
 0x588   : > { %v3353_v49 = vpop.permute.xlu1 %3352  ;;  %v4597_v21 = vmul.f32 0.5, %v4565_v12  ;;  %4532 = vst.msk [vmem:[%s8380_s10 + $0x40] sm:$0xff] %vm297_vm0, %v4500_v59  ;;  %v4564_v8 = vadd.f32 %v4468_v54, %v9639_v51  ;;  %v9647_v60 = vsub.f32 %v9645_v5, %v9646_v23  ;;  %v9649_v59 = vld [vmem:[#allocation86_spill] sm:$0xff] }
 0x589   : > { %v3227_v30 = vpop.permute.xlu0 %3226  ;;  %v3930_v29 = vsel %vm1830_vm6, %v3898_v57, %v3353_v49  ;;  %v9651_v49 = vsub.f32 %v9649_v59, %v9650_v22  ;;  %v9662_v57 = vld [vmem:[#allocation59_spill] sm:$0xff]  ;;  %v9672_v22 = vld [vmem:[#allocation18_spill] sm:$0xff] }
 0x58a   : > { %4629 = vst.msk [vmem:[%s8398_s19 + $0x48] sm:$0xff] %vm297_vm0, %v4597_v21  ;;  %v4596_v14 = vmul.f32 0.5, %v4564_v8  ;;  %v3899_v25 = vsel %vm1797_vm5, %v3867_v37, %v3227_v30 }
 0x58c   : > { %v3355_v40 = vpop.permute.xlu1 %3354  ;;  %4628 = vst.msk [vmem:[%s8398_s19 + $0x40] sm:$0xff] %vm297_vm0, %v4596_v14 }
 0x58d   : > { %v3735_v27 = vpop.permute.xlu0 %3734  ;;  %v3931_v46 = vsel %vm1830_vm6, %v3899_v25, %v3355_v40 }
 0x58e   : > { %v4025_v2 = vsel %vm1929_vm9, %v3993_v9, %v3735_v27  ;;  %v9653_v9 = vld [vmem:[#allocation106_spill] sm:$0xff]  ;;  %v9654_v27 = vld [vmem:[#allocation187_spill] sm:$0xff] }
 0x58f   : > { %5073 = vmatmul.mubr.msk.f32.gmra.mxu1 %vm1974_vm10, %v4025_v2  ;;  %v9655_v2 = vsub.f32 %v9653_v9, %v9654_v27  ;;  %v9676_v27 = vld [vmem:[#allocation23_spill] sm:$0xff] }
 0x590   : > { %v3483_v26 = vpop.permute.xlu1 %3482 }
 0x591   : > { %v3481_v62 = vpop.permute.xlu0 %3480  ;;  %v3963_v10 = vsel %vm1863_vm7, %v3931_v46, %v3483_v26 }
 0x592   : > { %v3962_v36 = vsel %vm1863_vm7, %v3930_v29, %v3481_v62  ;;  %v9658_v62 = vld [vmem:[#allocation37_spill] sm:$0xff] }
 0x593   : > { %v5047_v28 = vpop.f32.mrf.mxu1  ;;  %v9659_v58 = vsub.f32 %v9657_v31, %v9658_v62  ;;  %v9680_v62 = vld [vmem:[#allocation20_spill] sm:$0xff] }
 0x594   : > { %v3611_v7 = vpop.permute.xlu1 %3610  ;;  %v4261_v3 = vadd.f32 %v5047_v28, %v8366_v38 }
 0x595   : > { %v3609_v18 = vpop.permute.xlu0 %3608  ;;  %v4255_v52 = vpop.f32.mrf.mxu1  ;;  %v3995_v33 = vsel %vm1896_vm8, %v3963_v10, %v3611_v7  ;;  %v9664_v10 = vld [vmem:[#allocation16_spill] sm:$0xff] }
 0x596   : > { %vm4375_vm15 = vcmp.gt.f32.partialorder %v4261_v3, 1.0  ;;  %v4256_v44 = vadd.f32 %v8366_v38, %v4255_v52  ;;  %v3994_v34 = vsel %vm1896_vm8, %v3962_v36, %v3609_v18  ;;  %v9661_v52 = vld [vmem:[#allocation128_spill] sm:$0xff] }
 0x597   : > { %v4862_v48 = vsel %vm4375_vm15, 1.0, %v9577_v16  ;;  %v9663_v46 = vsub.f32 %v9661_v52, %v9662_v57  ;;  %v9684_v57 = vld [vmem:[#allocation25_spill] sm:$0xff] }
 0x598   : > { %v4471_v39 = vsub.f32 %v4261_v3, %v4862_v48  ;;  %v4503_v17 = vadd.f32 %v4862_v48, %v9644_v45  ;;  %vm4374_vm3 = vcmp.gt.f32.partialorder %v4256_v44, 1.0  ;;  %v3739_v4 = vpop.permute.xlu1 %3738  ;;  %v9660_v3 = vld [vmem:[#allocation19_spill] sm:$0xff]  ;;  %v9666_v45 = vld [vmem:[#allocation84_spill] sm:$0xff] }
 0x599   : > { %v4861_v1 = vsel %vm4374_vm3, 1.0, %v9577_v16  ;;  %v3737_v24 = vpop.permute.xlu0 %3736  ;;  %v4027_v54 = vsel %vm1929_vm9, %v3995_v33, %v3739_v4 }
 0x59a   : > { %4535 = vst.msk [vmem:[%s8380_s10 + $0x58] sm:$0xff] %vm297_vm0, %v4503_v17  ;;  %v4567_v53 = vadd.f32 %v4471_v39, %v9647_v60  ;;  %v4470_v50 = vsub.f32 %v4256_v44, %v4861_v1  ;;  %v4502_v41 = vadd.f32 %v4861_v1, %v9648_v63  ;;  %v4026_v12 = vsel %vm1929_vm9, %v3994_v34, %v3737_v24  ;;  %v9665_v39 = vld [vmem:[#allocation189_spill] sm:$0xff] }
 0x59b   : > { %5075 = vmatprep.mubr.msk.f32.mxu1 %vm1974_vm10, %v4026_v12  ;;  %v9667_v17 = vsub.f32 %v9665_v39, %v9666_v45  ;;  %v9670_v12 = vld [vmem:[#allocation105_spill] sm:$0xff]  ;;  %v9688_v45 = vld [vmem:[#allocation22_spill] sm:$0xff] }
 0x59c   : > { %v4599_v19 = vmul.f32 0.5, %v4567_v53  ;;  %4534 = vst.msk [vmem:[%s8380_s10 + $0x50] sm:$0xff] %vm297_vm0, %v4502_v41  ;;  %v4566_v15 = vadd.f32 %v4470_v50, %v9651_v49  ;;  %5076 = vmatmul.mubr.msk.f32.gmra.mxu1 %vm1974_vm10, %v4027_v54  ;;  %v9668_v53 = vld [vmem:[#allocation21_spill] sm:$0xff] }
 0x59d   : > { %v9669_v41 = vld [vmem:[#allocation41_spill] sm:$0xff] }
 0x59e   : > { %4631 = vst.msk [vmem:[%s8398_s19 + $0x58] sm:$0xff] %vm297_vm0, %v4599_v19  ;;  %v4598_v21 = vmul.f32 0.5, %v4566_v15  ;;  %v9671_v54 = vsub.f32 %v9669_v41, %v9670_v12  ;;  %v9692_v12 = vld [vmem:[#allocation27_spill] sm:$0xff] }
 0x5a0   : > { %4630 = vst.msk [vmem:[%s8398_s19 + $0x50] sm:$0xff] %vm297_vm0, %v4598_v21  ;;  %v9673_v21 = vld [vmem:[#allocation61_spill] sm:$0xff] }
 0x5a7   : > { %v5050_v6 = vpop.f32.mrf.mxu1 }
 0x5a8   : > { %v4271_v42 = vadd.f32 %v5050_v6, %v8366_v38  ;;  %v9674_v6 = vld [vmem:[#allocation164_spill] sm:$0xff] }
 0x5a9   : > { %v4265_v51 = vpop.f32.mrf.mxu1 }
 0x5aa   : > { %vm4377_vm4 = vcmp.gt.f32.partialorder %v4271_v42, 1.0  ;;  %v4266_v8 = vadd.f32 %v8366_v38, %v4265_v51 }
 0x5ab   : > { %v4864_v30 = vsel %vm4377_vm4, 1.0, %v9577_v16 }
 0x5ac   : > { %v4473_v14 = vsub.f32 %v4271_v42, %v4864_v30  ;;  %v4505_v40 = vadd.f32 %v4864_v30, %v9652_v32  ;;  %vm4376_vm5 = vcmp.gt.f32.partialorder %v4266_v8, 1.0  ;;  %v9675_v42 = vsub.f32 %v9673_v21, %v9674_v6  ;;  %v9696_v6 = vld [vmem:[#allocation24_spill] sm:$0xff] }
 0x5ad   : > { %v4863_v61 = vsel %vm4376_vm5, 1.0, %v9577_v16 }
 0x5ae   : > { %4537 = vst.msk [vmem:[%s8380_s10 + $0x68] sm:$0xff] %vm297_vm0, %v4505_v40  ;;  %v4569_v56 = vadd.f32 %v4473_v14, %v9655_v2  ;;  %v4472_v26 = vsub.f32 %v4266_v8, %v4863_v61  ;;  %v4504_v47 = vadd.f32 %v4863_v61, %v9656_v0  ;;  %v9678_v0 = vld [vmem:[#allocation127_spill] sm:$0xff] }
 0x5b0   : > { %v4601_v43 = vmul.f32 0.5, %v4569_v56  ;;  %4536 = vst.msk [vmem:[%s8380_s10 + $0x60] sm:$0xff] %vm297_vm0, %v4504_v47  ;;  %v4568_v37 = vadd.f32 %v4472_v26, %v9659_v58  ;;  %v9677_v26 = vld [vmem:[#allocation90_spill] sm:$0xff] }
 0x5b1   : > { %v9679_v47 = vsub.f32 %v9677_v26, %v9678_v0  ;;  %v9700_v0 = vld [vmem:[#allocation29_spill] sm:$0xff] }
 0x5b2   : > { %4633 = vst.msk [vmem:[%s8398_s19 + $0x68] sm:$0xff] %vm297_vm0, %v4601_v43  ;;  %v4600_v11 = vmul.f32 0.5, %v4568_v37 }
 0x5b4   : > { %4632 = vst.msk [vmem:[%s8398_s19 + $0x60] sm:$0xff] %vm297_vm0, %v4600_v11  ;;  %v9681_v11 = vld [vmem:[#allocation108_spill] sm:$0xff] }
 0x5bb   : > { %v5053_v13 = vpop.f32.mrf.mxu1 }
 0x5bc   : > { %v4281_v25 = vadd.f32 %v5053_v13, %v8366_v38  ;;  %v9682_v13 = vld [vmem:[#allocation167_spill] sm:$0xff] }
 0x5bd   : > { %v4275_v7 = vpop.f32.mrf.mxu1 }
 0x5be   : > { %vm4379_vm6 = vcmp.gt.f32.partialorder %v4281_v25, 1.0  ;;  %v4276_v28 = vadd.f32 %v8366_v38, %v4275_v7 }
 0x5bf   : > { %v4866_v20 = vsel %vm4379_vm6, 1.0, %v9577_v16 }
 0x5c0   : > { %v4475_v35 = vsub.f32 %v4281_v25, %v4866_v20  ;;  %v4507_v55 = vadd.f32 %v4866_v20, %v9660_v3  ;;  %vm4378_vm7 = vcmp.gt.f32.partialorder %v4276_v28, 1.0  ;;  %v9683_v25 = vsub.f32 %v9681_v11, %v9682_v13  ;;  %v9704_v13 = vld [vmem:[#allocation26_spill] sm:$0xff] }
 0x5c1   : > { %v4865_v18 = vsel %vm4378_vm7, 1.0, %v9577_v16 }
 0x5c2   : > { %4539 = vst.msk [vmem:[%s8380_s10 + $0x78] sm:$0xff] %vm297_vm0, %v4507_v55  ;;  %v4571_v44 = vadd.f32 %v4475_v35, %v9663_v46  ;;  %v4474_v29 = vsub.f32 %v4276_v28, %v4865_v18  ;;  %v4506_v48 = vadd.f32 %v4865_v18, %v9664_v10  ;;  %v9686_v10 = vld [vmem:[#allocation39_spill] sm:$0xff] }
 0x5c4   : > { %v4603_v36 = vmul.f32 0.5, %v4571_v44  ;;  %4538 = vst.msk [vmem:[%s8380_s10 + $0x70] sm:$0xff] %vm297_vm0, %v4506_v48  ;;  %v4570_v4 = vadd.f32 %v4474_v29, %v9667_v17  ;;  %v9685_v29 = vld [vmem:[#allocation188_spill] sm:$0xff] }
 0x5c5   : > { %v9687_v48 = vsub.f32 %v9685_v29, %v9686_v10  ;;  %v9708_v10 = vld [vmem:[#allocation31_spill] sm:$0xff] }
 0x5c6   : > { %4635 = vst.msk [vmem:[%s8398_s19 + $0x78] sm:$0xff] %vm297_vm0, %v4603_v36  ;;  %v4602_v33 = vmul.f32 0.5, %v4570_v4 }
 0x5c8   : > { %4634 = vst.msk [vmem:[%s8398_s19 + $0x70] sm:$0xff] %vm297_vm0, %v4602_v33  ;;  %v9689_v33 = vld [vmem:[#allocation130_spill] sm:$0xff] }
 0x5cf   : > { %v5056_v34 = vpop.f32.mrf.mxu1 }
 0x5d0   : > { %v4291_v1 = vadd.f32 %v5056_v34, %v8366_v38  ;;  %v9690_v34 = vld [vmem:[#allocation191_spill] sm:$0xff] }
 0x5d1   : > { %v4285_v24 = vpop.f32.mrf.mxu1 }
 0x5d2   : > { %vm4381_vm8 = vcmp.gt.f32.partialorder %v4291_v1, 1.0  ;;  %v4286_v5 = vadd.f32 %v8366_v38, %v4285_v24 }
 0x5d3   : > { %v4868_v23 = vsel %vm4381_vm8, 1.0, %v9577_v16 }
 0x5d4   : > { %v4477_v60 = vsub.f32 %v4291_v1, %v4868_v23  ;;  %v4509_v50 = vadd.f32 %v4868_v23, %v9668_v53  ;;  %vm4380_vm9 = vcmp.gt.f32.partialorder %v4286_v5, 1.0  ;;  %v9691_v1 = vsub.f32 %v9689_v33, %v9690_v34  ;;  %v9712_v34 = vld [vmem:[#allocation28_spill] sm:$0xff] }
 0x5d5   : > { %v4867_v63 = vsel %vm4380_vm9, 1.0, %v9577_v16 }
 0x5d6   : > { %4541 = vst.msk [vmem:[%s8380_s10 + $0x88] sm:$0xff] %vm297_vm0, %v4509_v50  ;;  %v4573_v19 = vadd.f32 %v4477_v60, %v9671_v54  ;;  %v4476_v59 = vsub.f32 %v4286_v5, %v4867_v63  ;;  %v4508_v49 = vadd.f32 %v4867_v63, %v9672_v22  ;;  %v9694_v22 = vld [vmem:[#allocation88_spill] sm:$0xff] }
 0x5d8   : > { %v4605_v15 = vmul.f32 0.5, %v4573_v19  ;;  %4540 = vst.msk [vmem:[%s8380_s10 + $0x80] sm:$0xff] %vm297_vm0, %v4508_v49  ;;  %v4572_v51 = vadd.f32 %v4476_v59, %v9675_v42  ;;  %v9693_v59 = vld [vmem:[#allocation63_spill] sm:$0xff] }
 0x5d9   : > { %v9695_v49 = vsub.f32 %v9693_v59, %v9694_v22  ;;  %v9716_v22 = vld [vmem:[#allocation32_spill] sm:$0xff] }
 0x5da   : > { %4637 = vst.msk [vmem:[%s8398_s19 + $0x88] sm:$0xff] %vm297_vm0, %v4605_v15  ;;  %v4604_v8 = vmul.f32 0.5, %v4572_v51 }
 0x5dc   : > { %4636 = vst.msk [vmem:[%s8398_s19 + $0x80] sm:$0xff] %vm297_vm0, %v4604_v8  ;;  %v9697_v8 = vld [vmem:[#allocation47_spill] sm:$0xff] }
 0x5e3   : > { %v5059_v30 = vpop.f32.mrf.mxu1 }
 0x5e4   : > { %v4301_v14 = vadd.f32 %v5059_v30, %v8366_v38  ;;  %v9698_v30 = vld [vmem:[#allocation65_spill] sm:$0xff] }
 0x5e5   : > { %v4295_v32 = vpop.f32.mrf.mxu1 }
 0x5e6   : > { %vm4383_vm10 = vcmp.gt.f32.partialorder %v4301_v14, 1.0  ;;  %v4296_v40 = vadd.f32 %v8366_v38, %v4295_v32 }
 0x5e7   : > { %v4870_v61 = vsel %vm4383_vm10, 1.0, %v9577_v16 }
 0x5e8   : > { %v4479_v9 = vsub.f32 %v4301_v14, %v4870_v61  ;;  %v4511_v2 = vadd.f32 %v4870_v61, %v9676_v27  ;;  %vm4382_vm1 = vcmp.gt.f32.partialorder %v4296_v40, 1.0  ;;  %v9699_v14 = vsub.f32 %v9697_v8, %v9698_v30  ;;  %v9720_v30 = vld [vmem:[#allocation30_spill] sm:$0xff] }
 0x5e9   : > { %v4869_v56 = vsel %vm4382_vm1, 1.0, %v9577_v16 }
 0x5ea   : > { %4543 = vst.msk [vmem:[%s8380_s10 + $0x98] sm:$0xff] %vm297_vm0, %v4511_v2  ;;  %v4575_v43 = vadd.f32 %v4479_v9, %v9679_v47  ;;  %v4478_v31 = vsub.f32 %v4296_v40, %v4869_v56  ;;  %v4510_v58 = vadd.f32 %v4869_v56, %v9680_v62  ;;  %v9702_v62 = vld [vmem:[#allocation166_spill] sm:$0xff] }
 0x5ec   : > { %v4607_v37 = vmul.f32 0.5, %v4575_v43  ;;  %4542 = vst.msk [vmem:[%s8380_s10 + $0x90] sm:$0xff] %vm297_vm0, %v4510_v58  ;;  %v4574_v7 = vadd.f32 %v4478_v31, %v9683_v25  ;;  %v9701_v31 = vld [vmem:[#allocation107_spill] sm:$0xff] }
 0x5ed   : > { %v9703_v58 = vsub.f32 %v9701_v31, %v9702_v62  ;;  %v9724_v62 = vld [vmem:[#allocation34_spill] sm:$0xff] }
 0x5ee   : > { %4639 = vst.msk [vmem:[%s8398_s19 + $0x98] sm:$0xff] %vm297_vm0, %v4607_v37  ;;  %v4606_v28 = vmul.f32 0.5, %v4574_v7 }
 0x5f0   : > { %4638 = vst.msk [vmem:[%s8398_s19 + $0x90] sm:$0xff] %vm297_vm0, %v4606_v28  ;;  %v9705_v28 = vld [vmem:[#allocation94_spill] sm:$0xff] }
 0x5f7   : > { %v5062_v20 = vpop.f32.mrf.mxu1 }
 0x5f8   : > { %v4311_v35 = vadd.f32 %v5062_v20, %v8366_v38  ;;  %v9706_v20 = vld [vmem:[#allocation110_spill] sm:$0xff] }
 0x5f9   : > { %v4305_v3 = vpop.f32.mrf.mxu1 }
 0x5fa   : > { %vm4385_vm11 = vcmp.gt.f32.partialorder %v4311_v35, 1.0  ;;  %v4306_v55 = vadd.f32 %v8366_v38, %v4305_v3 }
 0x5fb   : > { %v4872_v18 = vsel %vm4385_vm11, 1.0, %v9577_v16 }
 0x5fc   : > { %v4481_v52 = vsub.f32 %v4311_v35, %v4872_v18  ;;  %v4513_v46 = vadd.f32 %v4872_v18, %v9684_v57  ;;  %vm4384_vm12 = vcmp.gt.f32.partialorder %v4306_v55, 1.0  ;;  %v9707_v35 = vsub.f32 %v9705_v28, %v9706_v20  ;;  %v9728_v20 = vld [vmem:[#allocation33_spill] sm:$0xff] }
 0x5fd   : > { %v4871_v44 = vsel %vm4384_vm12, 1.0, %v9577_v16 }
 0x5fe   : > { %4545 = vst.msk [vmem:[%s8380_s10 + $0xa8] sm:$0xff] %vm297_vm0, %v4513_v46  ;;  %v4577_v36 = vadd.f32 %v4481_v52, %v9687_v48  ;;  %v4480_v39 = vsub.f32 %v4306_v55, %v4871_v44  ;;  %v4512_v17 = vadd.f32 %v4871_v44, %v9688_v45  ;;  %v9710_v45 = vld [vmem:[#allocation190_spill] sm:$0xff] }
 0x600   : > { %v4609_v4 = vmul.f32 0.5, %v4577_v36  ;;  %4544 = vst.msk [vmem:[%s8380_s10 + $0xa0] sm:$0xff] %vm297_vm0, %v4512_v17  ;;  %v4576_v24 = vadd.f32 %v4480_v39, %v9691_v1  ;;  %v9709_v39 = vld [vmem:[#allocation129_spill] sm:$0xff] }
 0x601   : > { %v9711_v17 = vsub.f32 %v9709_v39, %v9710_v45 }
 0x602   : > { %4641 = vst.msk [vmem:[%s8398_s19 + $0xa8] sm:$0xff] %vm297_vm0, %v4609_v4  ;;  %v4608_v5 = vmul.f32 0.5, %v4576_v24 }
 0x604   : > { %4640 = vst.msk [vmem:[%s8398_s19 + $0xa0] sm:$0xff] %vm297_vm0, %v4608_v5  ;;  %v9713_v5 = vld [vmem:[#allocation169_spill] sm:$0xff] }
 0x60b   : > { %v5065_v23 = vpop.f32.mrf.mxu1 }
 0x60c   : > { %v4321_v60 = vadd.f32 %v5065_v23, %v8366_v38  ;;  %v9714_v23 = vld [vmem:[#allocation132_spill] sm:$0xff] }
 0x60d   : > { %v4315_v53 = vpop.f32.mrf.mxu1 }
 0x60e   : > { %vm4387_vm2 = vcmp.gt.f32.partialorder %v4321_v60, 1.0  ;;  %v4316_v50 = vadd.f32 %v8366_v38, %v4315_v53 }
 0x60f   : > { %v4874_v63 = vsel %vm4387_vm2, 1.0, %v9577_v16 }
 0x610   : > { %v4483_v41 = vsub.f32 %v4321_v60, %v4874_v63  ;;  %v4515_v54 = vadd.f32 %v4874_v63, %v9692_v12  ;;  %vm4386_vm13 = vcmp.gt.f32.partialorder %v4316_v50, 1.0  ;;  %v9715_v60 = vsub.f32 %v9713_v5, %v9714_v23 }
 0x611   : > { %v4873_v19 = vsel %vm4386_vm13, 1.0, %v9577_v16 }
 0x612   : > { %4547 = vst.msk [vmem:[%s8380_s10 + $0xb8] sm:$0xff] %vm297_vm0, %v4515_v54  ;;  %v4579_v15 = vadd.f32 %v4483_v41, %v9695_v49  ;;  %v4482_v21 = vsub.f32 %v4316_v50, %v4873_v19  ;;  %v4514_v42 = vadd.f32 %v4873_v19, %v9696_v6  ;;  %v9718_v6 = vld [vmem:[#allocation67_spill] sm:$0xff] }
 0x614   : > { %v4611_v51 = vmul.f32 0.5, %v4579_v15  ;;  %4546 = vst.msk [vmem:[%s8380_s10 + $0xb0] sm:$0xff] %vm297_vm0, %v4514_v42  ;;  %v4578_v32 = vadd.f32 %v4482_v21, %v9699_v14  ;;  %v9717_v21 = vld [vmem:[#allocation44_spill] sm:$0xff] }
 0x615   : > { %v9719_v42 = vsub.f32 %v9717_v21, %v9718_v6 }
 0x616   : > { %4643 = vst.msk [vmem:[%s8398_s19 + $0xb8] sm:$0xff] %vm297_vm0, %v4611_v51  ;;  %v4610_v40 = vmul.f32 0.5, %v4578_v32 }
 0x618   : > { %4642 = vst.msk [vmem:[%s8398_s19 + $0xb0] sm:$0xff] %vm297_vm0, %v4610_v40  ;;  %v9721_v40 = vld [vmem:[#allocation193_spill] sm:$0xff] }
 0x61f   : > { %v5068_v61 = vpop.f32.mrf.mxu1 }
 0x620   : > { %v4331_v9 = vadd.f32 %v5068_v61, %v8366_v38  ;;  %v9722_v61 = vld [vmem:[#allocation52_spill] sm:$0xff] }
 0x621   : > { %v4325_v27 = vpop.f32.mrf.mxu1 }
 0x622   : > { %vm4389_vm14 = vcmp.gt.f32.partialorder %v4331_v9, 1.0  ;;  %v4326_v2 = vadd.f32 %v8366_v38, %v4325_v27 }
 0x623   : > { %v4876_v56 = vsel %vm4389_vm14, 1.0, %v9577_v16 }
 0x624   : > { %v4485_v26 = vsub.f32 %v4331_v9, %v4876_v56  ;;  %v4517_v47 = vadd.f32 %v4876_v56, %v9700_v0  ;;  %vm4388_vm15 = vcmp.gt.f32.partialorder %v4326_v2, 1.0  ;;  %v9723_v9 = vsub.f32 %v9721_v40, %v9722_v61 }
 0x625   : > { %v4875_v43 = vsel %vm4388_vm15, 1.0, %v9577_v16 }
 0x626   : > { %4549 = vst.msk [vmem:[%s8380_s10 + $0xc8] sm:$0xff] %vm297_vm0, %v4517_v47  ;;  %v4581_v37 = vadd.f32 %v4485_v26, %v9703_v58  ;;  %v4484_v11 = vsub.f32 %v4326_v2, %v4875_v43  ;;  %v4516_v25 = vadd.f32 %v4875_v43, %v9704_v13  ;;  %v9726_v13 = vld [vmem:[#allocation109_spill] sm:$0xff] }
 0x628   : > { %v4613_v7 = vmul.f32 0.5, %v4581_v37  ;;  %4548 = vst.msk [vmem:[%s8380_s10 + $0xc0] sm:$0xff] %vm297_vm0, %v4516_v25  ;;  %v4580_v3 = vadd.f32 %v4484_v11, %v9707_v35  ;;  %v9725_v11 = vld [vmem:[#allocation92_spill] sm:$0xff] }
 0x629   : > { %v9727_v25 = vsub.f32 %v9725_v11, %v9726_v13 }
 0x62a   : > { %4645 = vst.msk [vmem:[%s8398_s19 + $0xc8] sm:$0xff] %vm297_vm0, %v4613_v7  ;;  %v4612_v55 = vmul.f32 0.5, %v4580_v3 }
 0x62c   : > { %4644 = vst.msk [vmem:[%s8398_s19 + $0xc0] sm:$0xff] %vm297_vm0, %v4612_v55  ;;  %v9730_v55 = vld [vmem:[#allocation99_spill] sm:$0xff] }
 0x637   : > { %v5071_v18 = vpop.f32.mrf.mxu1 }
 0x638   : > { %v4341_v52 = vadd.f32 %v5071_v18, %v8366_v38 }
 0x639   : > { %v4335_v57 = vpop.f32.mrf.mxu1 }
 0x63a   : > { %vm4391_vm3 = vcmp.gt.f32.partialorder %v4341_v52, 1.0  ;;  %v4336_v46 = vadd.f32 %v8366_v38, %v4335_v57 }
 0x63b   : > { %v4878_v44 = vsel %vm4391_vm3, 1.0, %v9577_v16 }
 0x63c   : > { %v4487_v29 = vsub.f32 %v4341_v52, %v4878_v44  ;;  %v4519_v48 = vadd.f32 %v4878_v44, %v9708_v10  ;;  %vm4390_vm4 = vcmp.gt.f32.partialorder %v4336_v46, 1.0 }
 0x63d   : > { %v4877_v36 = vsel %vm4390_vm4, 1.0, %v9577_v16 }
 0x63e   : > { %4551 = vst.msk [vmem:[%s8380_s10 + $0xd8] sm:$0xff] %vm297_vm0, %v4519_v48  ;;  %v4583_v4 = vadd.f32 %v4487_v29, %v9711_v17  ;;  %v4486_v33 = vsub.f32 %v4336_v46, %v4877_v36  ;;  %v4518_v1 = vadd.f32 %v4877_v36, %v9712_v34 }
 0x640   : > { %v4615_v24 = vmul.f32 0.5, %v4583_v4  ;;  %4550 = vst.msk [vmem:[%s8380_s10 + $0xd0] sm:$0xff] %vm297_vm0, %v4518_v1  ;;  %v4582_v53 = vadd.f32 %v4486_v33, %v9715_v60 }
 0x642   : > { %4647 = vst.msk [vmem:[%s8398_s19 + $0xd8] sm:$0xff] %vm297_vm0, %v4615_v24  ;;  %v4614_v50 = vmul.f32 0.5, %v4582_v53 }
 0x644   : > { %4646 = vst.msk [vmem:[%s8398_s19 + $0xd0] sm:$0xff] %vm297_vm0, %v4614_v50 }
 0x64f   : > { %v5074_v63 = vpop.f32.mrf.mxu1 }
 0x650   : > { %v4351_v41 = vadd.f32 %v5074_v63, %v8366_v38 }
 0x651   : > { %v4345_v12 = vpop.f32.mrf.mxu1 }
 0x652   : > { %vm4393_vm5 = vcmp.gt.f32.partialorder %v4351_v41, 1.0  ;;  %v4346_v54 = vadd.f32 %v8366_v38, %v4345_v12 }
 0x653   : > { %v4880_v19 = vsel %vm4393_vm5, 1.0, %v9577_v16 }
 0x654   : > { %v4489_v59 = vsub.f32 %v4351_v41, %v4880_v19  ;;  %v4521_v49 = vadd.f32 %v4880_v19, %v9716_v22  ;;  %vm4392_vm6 = vcmp.gt.f32.partialorder %v4346_v54, 1.0 }
 0x655   : > { %v4879_v15 = vsel %vm4392_vm6, 1.0, %v9577_v16 }
 0x656   : > { %4553 = vst.msk [vmem:[%s8380_s10 + $0xe8] sm:$0xff] %vm297_vm0, %v4521_v49  ;;  %v4585_v51 = vadd.f32 %v4489_v59, %v9719_v42  ;;  %v4488_v8 = vsub.f32 %v4346_v54, %v4879_v15  ;;  %v4520_v14 = vadd.f32 %v4879_v15, %v9720_v30 }
 0x658   : > { %v4617_v32 = vmul.f32 0.5, %v4585_v51  ;;  %4552 = vst.msk [vmem:[%s8380_s10 + $0xe0] sm:$0xff] %vm297_vm0, %v4520_v14  ;;  %v4584_v27 = vadd.f32 %v4488_v8, %v9723_v9 }
 0x65a   : > { %4649 = vst.msk [vmem:[%s8398_s19 + $0xe8] sm:$0xff] %vm297_vm0, %v4617_v32  ;;  %v4616_v2 = vmul.f32 0.5, %v4584_v27 }
 0x65c   : > { %4648 = vst.msk [vmem:[%s8398_s19 + $0xe0] sm:$0xff] %vm297_vm0, %v4616_v2  ;;  %v5077_v56 = vpop.f32.mrf.mxu1 }
 0x65d   : > { %v4361_v26 = vadd.f32 %v5077_v56, %v8366_v38 }
 0x65e   : > { %v4355_v0 = vpop.f32.mrf.mxu1 }
 0x65f   : > { %vm4395_vm7 = vcmp.gt.f32.partialorder %v4361_v26, 1.0  ;;  %v4356_v47 = vadd.f32 %v8366_v38, %v4355_v0  ;;  %v9729_v38 = vld [vmem:[#allocation69_spill] sm:$0xff] }
 0x660   : > { %v4882_v43 = vsel %vm4395_vm7, 1.0, %v9577_v16  ;;  %v9731_v18 = vsub.f32 %v9729_v38, %v9730_v55 }
 0x661   : > { %v4491_v31 = vsub.f32 %v4361_v26, %v4882_v43  ;;  %v4523_v58 = vadd.f32 %v4882_v43, %v9724_v62  ;;  %vm4394_vm8 = vcmp.gt.f32.partialorder %v4356_v47, 1.0 }
 0x662   : > { %v4881_v37 = vsel %vm4394_vm8, 1.0, %v9577_v16 }
 0x663   : > { %4555 = vst.msk [vmem:[%s8380_s10 + $0xf8] sm:$0xff] %vm297_vm0, %v4523_v58  ;;  %v4587_v7 = vadd.f32 %v4491_v31, %v9727_v25  ;;  %v4490_v28 = vsub.f32 %v4356_v47, %v4881_v37  ;;  %v4522_v35 = vadd.f32 %v4881_v37, %v9728_v20 }
 0x665   : > { %v4619_v3 = vmul.f32 0.5, %v4587_v7  ;;  %4554 = vst.msk [vmem:[%s8380_s10 + $0xf0] sm:$0xff] %vm297_vm0, %v4522_v35  ;;  %v4586_v52 = vadd.f32 %v4490_v28, %v9731_v18 }
 0x667   : > { %4651 = vst.msk [vmem:[%s8398_s19 + $0xf8] sm:$0xff] %vm297_vm0, %v4619_v3  ;;  %v4618_v57 = vmul.f32 0.5, %v4586_v52 }
 0x669   : > { %4650 = vst.msk [vmem:[%s8398_s19 + $0xf0] sm:$0xff] %vm297_vm0, %v4618_v57 }
 0x66a PF: > { %s17_s21 = sadd.s32 1, %s5145_s21  }
 0x66b   : > { %p14_p4 = scmp.ge.s32.totalorder %s17_s21, 4  }
 0x66d   :  { %16 = sbr.rel (!%p14_p4) target bundleno = 1 (0x1), region = 84 }

</bundles_post_ra>
